<compile_context>
chip_gen: v7x
topology: tpu7x:2x2x1
jax: 0.10.0
libtpu: 0.0.40
codegen_flags: <defaults>
</compile_context>

<pallas_src>
import jax
import jax.numpy as jnp
from jax import lax
from jax.experimental import pallas as pl
from jax.experimental.pallas import tpu as pltpu


# Geometry fixed by the PyTorch module (3x32x32 CIFAR input implied by 16*5*5).
C1, H1, W1, K = 3, 32, 32, 5
O1 = 6
OH1, OW1 = H1 - K + 1, W1 - K + 1          # 28, 28
H2, W2 = OH1 // 2, OW1 // 2                # 14, 14
O2 = 16
OH2, OW2 = H2 - K + 1, W2 - K + 1          # 10, 10
H3, W3 = OH2 // 2, OW2 // 2                # 5, 5
F1, F2, F3 = 120, 84, 10


# ----------------------------------------------------------------------------
# Fused kernel (one sample per grid step; weights are grid-invariant in VMEM)
# ----------------------------------------------------------------------------
def _mm(a, b):
    """bf16 MXU matmul with f32 accumulation."""
    return jnp.dot(a.astype(jnp.bfloat16), b.astype(jnp.bfloat16),
                   preferred_element_type=jnp.float32)


def _net_kernel(x_ref, a1_ref, b1_ref, pr1_ref, pc1_ref,
                a2_ref, b2_ref, pr2_ref, pc2_ref,
                w1_ref, fb1_ref, w2_ref, fb2_ref, w3_ref, fb3_ref,
                o_ref):
    xb = x_ref[0].astype(jnp.bfloat16)                              # (C1*H1, W1)

    # conv1 + bias + relu: rows (o1, oh), cols ow
    acc = _mm(a1_ref[0], xb[:, 0:OW1])
    for j in range(1, K):
        acc = acc + _mm(a1_ref[j], xb[:, j:j + OW1])
    h = jnp.maximum(acc + b1_ref[...], 0.0).astype(jnp.bfloat16)    # (O1*OH1, OW1)

    # maxpool 2x2: even/odd selection matmuls + pairwise VPU maxima
    rp = jnp.maximum(_mm(pr1_ref[0], h), _mm(pr1_ref[1], h))
    rp = rp.astype(jnp.bfloat16)                                    # (O1*H2, OW1)
    p1 = jnp.maximum(_mm(rp, pc1_ref[0]), _mm(rp, pc1_ref[1]))
    p1 = p1.astype(jnp.bfloat16)                                    # (O1*H2, W2)

    # conv2 + bias + relu
    acc = _mm(a2_ref[0], p1[:, 0:OW2])
    for j in range(1, K):
        acc = acc + _mm(a2_ref[j], p1[:, j:j + OW2])
    h = jnp.maximum(acc + b2_ref[...], 0.0).astype(jnp.bfloat16)    # (O2*OH2, OW2)

    # maxpool 2x2
    rp = jnp.maximum(_mm(pr2_ref[0], h), _mm(pr2_ref[1], h))
    rp = rp.astype(jnp.bfloat16)                                    # (O2*H3, OW2)
    p2 = jnp.maximum(_mm(rp, pc2_ref[0]), _mm(rp, pc2_ref[1]))
    p2 = p2.astype(jnp.bfloat16)                                    # (O2*H3, W3)

    # fc1 (torch .view flatten absorbed into per-column weight slabs) + relu
    z = _mm(w1_ref[0], p2[:, 0:1])
    for w in range(1, W3):
        z = z + _mm(w1_ref[w], p2[:, w:w + 1])
    z = jnp.maximum(z + fb1_ref[...], 0.0).astype(jnp.bfloat16)     # (F1, 1)

    # fc2 + relu, fc3
    z = jnp.maximum(_mm(w2_ref[...], z) + fb2_ref[...], 0.0)        # (F2, 1)
    z = _mm(w3_ref[...], z) + fb3_ref[...]                          # (F3, 1)

    o_ref[0] = z


# ----------------------------------------------------------------------------
# One-time parameter preparation (runs once, batch-size independent)
# ----------------------------------------------------------------------------
def _block_diag(m, blocks):
    """m: (..., R, C) -> (..., blocks*R, blocks*C) block-diagonal repeat."""
    eye = jnp.eye(blocks, dtype=m.dtype)
    out = jnp.einsum("bd,...rc->...brdc", eye, m)
    return out.reshape(m.shape[:-2] + (blocks * m.shape[-2], blocks * m.shape[-1]))


def _band_matrices(w, h_in):
    """w: (O, C, KH, KW) -> A: (KW, O*OH, C*h_in) with
    A[j, o*OH+oh, c*h_in+h] = w[o, c, h-oh, j]  (0 if h-oh outside [0, KH))."""
    o_, c_, kh, kw = w.shape
    oh_ = h_in - kh + 1
    diff = jnp.arange(h_in)[None, :] - jnp.arange(oh_)[:, None]   # (OH, H)
    valid = (diff >= 0) & (diff < kh)
    idx = jnp.clip(diff, 0, kh - 1)
    wg = jnp.take(w, idx, axis=2)                                 # (O, C, OH, H, KW)
    a = jnp.where(valid[None, None, :, :, None], wg, 0.0)
    return a.transpose(4, 0, 2, 1, 3).reshape(kw, o_ * oh_, c_ * h_in)


def _pool_row_select(nblocks, rows):
    half = rows // 2
    base = jnp.zeros((2, half, rows), jnp.float32)
    base = base.at[0, jnp.arange(half), 2 * jnp.arange(half)].set(1.0)
    base = base.at[1, jnp.arange(half), 2 * jnp.arange(half) + 1].set(1.0)
    return _block_diag(base, nblocks)              # (2, nblocks*half, nblocks*rows)


def _pool_col_select(cols):
    half = cols // 2
    base = jnp.zeros((2, cols, half), jnp.float32)
    base = base.at[0, 2 * jnp.arange(half), jnp.arange(half)].set(1.0)
    base = base.at[1, 2 * jnp.arange(half) + 1, jnp.arange(half)].set(1.0)
    return base                                    # (2, cols, half)


def _bias_col(b, reps):
    return jnp.repeat(b, reps)[:, None].astype(jnp.float32)


def prepare_params(params):
    bf = jnp.bfloat16
    a1 = _band_matrices(params["conv1_w"], H1).astype(bf)          # (K, O1*OH1, C1*H1)
    a2 = _band_matrices(params["conv2_w"], H2).astype(bf)          # (K, O2*OH2, O1*H2)
    pr1 = _pool_row_select(O1, OH1).astype(bf)                     # (2, O1*H2, O1*OH1)
    pc1 = _pool_col_select(OW1).astype(bf)                         # (2, OW1, W2)
    pr2 = _pool_row_select(O2, OH2).astype(bf)                     # (2, O2*H3, O2*OH2)
    pc2 = _pool_col_select(OW2).astype(bf)                         # (2, OW2, W3)
    w1 = jnp.moveaxis(params["fc1_w"].reshape(F1, O2 * H3, W3), 2, 0).astype(bf)  # (W3, F1, 80)
    w2 = params["fc2_w"].astype(bf)                                # (F2, F1)
    w3 = params["fc3_w"].astype(bf)                                # (F3, F2)
    return (
        a1, _bias_col(params["conv1_b"], OH1),
        pr1, pc1,
        a2, _bias_col(params["conv2_b"], OH2),
        pr2, pc2,
        w1, _bias_col(params["fc1_b"], 1),
        w2, _bias_col(params["fc2_b"], 1),
        w3, _bias_col(params["fc3_b"], 1),
    )


# ----------------------------------------------------------------------------
# Forward
# ----------------------------------------------------------------------------
def _const_spec(a):
    """Full-array block whose index_map is constant -> DMA'd once, VMEM-resident."""
    zeros = (0,) * a.ndim
    return pl.BlockSpec(a.shape, lambda b: zeros)


def net_forward(x, prep):
    batch = x.shape[0]
    x3d = x.reshape(batch, C1 * H1, W1).astype(jnp.float32)     # free reshape (NCHW)

    in_specs = [pl.BlockSpec((1, C1 * H1, W1), lambda b: (b, 0, 0))]
    in_specs += [_const_spec(a) for a in prep]

    out = pl.pallas_call(
        _net_kernel,
        out_shape=jax.ShapeDtypeStruct((batch, F3, 1), jnp.float32),
        grid=(batch,),
        in_specs=in_specs,
        out_specs=pl.BlockSpec((1, F3, 1), lambda b: (b, 0, 0)),
        compiler_params=pltpu.CompilerParams(
            dimension_semantics=("parallel",),     # megacore splits the batch on v7x
            vmem_limit_bytes=32 * 1024 * 1024),
    )(x3d, *prep)
    return out.reshape(batch, F3)                               # free reshape


# Pure-JAX reference (f32) for the correctness check.
def net_forward_ref(x, params):
    dn = ("NCHW", "OIHW", "NCHW")

    def conv(x, w, b):
        y = lax.conv_general_dilated(x, w, (1, 1), "VALID", dimension_numbers=dn)
        return jnp.maximum(y + b[None, :, None, None], 0.0)

    def pool(x):
        return lax.reduce_window(x, -jnp.inf, lax.max, (1, 1, 2, 2), (1, 1, 2, 2), "VALID")

    x = pool(conv(x, params["conv1_w"], params["conv1_b"]))
    x = pool(conv(x, params["conv2_w"], params["conv2_b"]))
    x = x.reshape(x.shape[0], 16 * 5 * 5)
    x = jnp.maximum(x @ params["fc1_w"].T + params["fc1_b"], 0.0)
    x = jnp.maximum(x @ params["fc2_w"].T + params["fc2_b"], 0.0)
    return x @ params["fc3_w"].T + params["fc3_b"]


def init_params(key):
    """Deterministic torch-style (uniform +/- 1/sqrt(fan_in)) init."""
    def uniform(k, shape, fan_in):
        bound = 1.0 / jnp.sqrt(jnp.float32(fan_in))
        return jax.random.uniform(k, shape, jnp.float32, -bound, bound)

    ks = jax.random.split(key, 10)
    return {
        "conv1_w": uniform(ks[0], (6, 3, 5, 5), 3 * 5 * 5),
        "conv1_b": uniform(ks[1], (6,), 3 * 5 * 5),
        "conv2_w": uniform(ks[2], (16, 6, 5, 5), 6 * 5 * 5),
        "conv2_b": uniform(ks[3], (16,), 6 * 5 * 5),
        "fc1_w": uniform(ks[4], (120, 400), 400),
        "fc1_b": uniform(ks[5], (120,), 400),
        "fc2_w": uniform(ks[6], (84, 120), 120),
        "fc2_b": uniform(ks[7], (84,), 120),
        "fc3_w": uniform(ks[8], (10, 84), 84),
        "fc3_b": uniform(ks[9], (10,), 84),
    }


if __name__ == "__main__":
    key = jax.random.PRNGKey(0)
    k_params, k_x = jax.random.split(key)
    params = init_params(k_params)

    # The fc sizes (16*5*5) imply a 3x32x32 input, as in the CIFAR tutorial.
    x = jax.random.normal(k_x, (2, 3, 32, 32), dtype=jnp.float32)

    prep = prepare_params(params)              # one-time, batch-independent weight prep
    fwd = jax.jit(net_forward)

    out = jax.block_until_ready(fwd(x, prep))
    ref = jax.block_until_ready(net_forward_ref(x, params))

    assert out.shape == (2, 10), out.shape
    assert bool(jnp.all(jnp.isfinite(out)))
    assert jnp.allclose(out, ref, atol=5e-2, rtol=5e-2), (out, ref)
    print("KERNEL_OK")
</pallas_src>

<mosaic_0001>
module attributes {stable_mosaic.version = 11 : i64} {
  func.func @_net_kernel(%arg0: i32, %arg1: memref<1x96x32xf32, #tpu.memory_space<vmem>>, %arg2: memref<5x168x96xbf16, #tpu.memory_space<vmem>>, %arg3: memref<168x1xf32, #tpu.memory_space<vmem>>, %arg4: memref<2x84x168xbf16, #tpu.memory_space<vmem>>, %arg5: memref<2x28x14xbf16, #tpu.memory_space<vmem>>, %arg6: memref<5x160x84xbf16, #tpu.memory_space<vmem>>, %arg7: memref<160x1xf32, #tpu.memory_space<vmem>>, %arg8: memref<2x80x160xbf16, #tpu.memory_space<vmem>>, %arg9: memref<2x10x5xbf16, #tpu.memory_space<vmem>>, %arg10: memref<5x120x80xbf16, #tpu.memory_space<vmem>>, %arg11: memref<120x1xf32, #tpu.memory_space<vmem>>, %arg12: memref<84x120xbf16, #tpu.memory_space<vmem>>, %arg13: memref<84x1xf32, #tpu.memory_space<vmem>>, %arg14: memref<10x84xbf16, #tpu.memory_space<vmem>>, %arg15: memref<10x1xf32, #tpu.memory_space<vmem>>, %arg16: memref<1x10x1xf32, #tpu.memory_space<vmem>>) attributes {dimension_semantics = [#tpu.dimension_semantics<parallel>], iteration_bounds = array<i64: 2>, scalar_prefetch = 0 : i64, scratch_operands = 0 : i64, tpu.core_type = #tpu.core_type<tc>, window_params = [{transform_indices = @transform_0, window_bounds = array<i64: 1, 96, 32>}, {pipeline_mode = #tpu.pipeline_mode<synchronous>, transform_indices = @transform_1, window_bounds = array<i64: 5, 168, 96>}, {pipeline_mode = #tpu.pipeline_mode<synchronous>, transform_indices = @transform_2, window_bounds = array<i64: 168, 1>}, {pipeline_mode = #tpu.pipeline_mode<synchronous>, transform_indices = @transform_3, window_bounds = array<i64: 2, 84, 168>}, {pipeline_mode = #tpu.pipeline_mode<synchronous>, transform_indices = @transform_4, window_bounds = array<i64: 2, 28, 14>}, {pipeline_mode = #tpu.pipeline_mode<synchronous>, transform_indices = @transform_5, window_bounds = array<i64: 5, 160, 84>}, {pipeline_mode = #tpu.pipeline_mode<synchronous>, transform_indices = @transform_6, window_bounds = array<i64: 160, 1>}, {pipeline_mode = #tpu.pipeline_mode<synchronous>, transform_indices = @transform_7, window_bounds = array<i64: 2, 80, 160>}, {pipeline_mode = #tpu.pipeline_mode<synchronous>, transform_indices = @transform_8, window_bounds = array<i64: 2, 10, 5>}, {pipeline_mode = #tpu.pipeline_mode<synchronous>, transform_indices = @transform_9, window_bounds = array<i64: 5, 120, 80>}, {pipeline_mode = #tpu.pipeline_mode<synchronous>, transform_indices = @transform_10, window_bounds = array<i64: 120, 1>}, {pipeline_mode = #tpu.pipeline_mode<synchronous>, transform_indices = @transform_11, window_bounds = array<i64: 84, 120>}, {pipeline_mode = #tpu.pipeline_mode<synchronous>, transform_indices = @transform_12, window_bounds = array<i64: 84, 1>}, {pipeline_mode = #tpu.pipeline_mode<synchronous>, transform_indices = @transform_13, window_bounds = array<i64: 10, 84>}, {pipeline_mode = #tpu.pipeline_mode<synchronous>, transform_indices = @transform_14, window_bounds = array<i64: 10, 1>}, {transform_indices = @transform_15, window_bounds = array<i64: 1, 10, 1>}]} {
    %c0 = arith.constant 0 : index
    %c0_0 = arith.constant 0 : index
    %c0_1 = arith.constant 0 : index
    %0 = vector.load %arg1[%c0, %c0_0, %c0_1] : memref<1x96x32xf32, #tpu.memory_space<vmem>>, vector<1x96x32xf32>
    %1 = vector.shape_cast %0 : vector<1x96x32xf32> to vector<96x32xf32>
    %2 = arith.truncf %1 : vector<96x32xf32> to vector<96x32xbf16>
    %c0_2 = arith.constant 0 : index
    %c0_3 = arith.constant 0 : index
    %c0_4 = arith.constant 0 : index
    %3 = vector.load %arg2[%c0_2, %c0_3, %c0_4] : memref<5x168x96xbf16, #tpu.memory_space<vmem>>, vector<1x168x96xbf16>
    %4 = vector.shape_cast %3 : vector<1x168x96xbf16> to vector<168x96xbf16>
    %5 = vector.extract_strided_slice %2 {offsets = [0, 0], sizes = [96, 28], strides = [1, 1]} : vector<96x32xbf16> to vector<96x28xbf16>
    %cst = arith.constant dense<0.000000e+00> : vector<168x28xf32>
    %6 = tpu.matmul %4, %5, %cst {dimension_numbers = #tpu.dot_dimension_numbers<[1], [0], [0], [1], [0, 0, 1, 1], [], []>} : vector<168x96xbf16>, vector<96x28xbf16>, vector<168x28xf32> -> vector<168x28xf32>
    %c1 = arith.constant 1 : index
    %c0_5 = arith.constant 0 : index
    %c0_6 = arith.constant 0 : index
    %7 = vector.load %arg2[%c1, %c0_5, %c0_6] : memref<5x168x96xbf16, #tpu.memory_space<vmem>>, vector<1x168x96xbf16>
    %8 = vector.shape_cast %7 : vector<1x168x96xbf16> to vector<168x96xbf16>
    %9 = vector.extract_strided_slice %2 {offsets = [0, 1], sizes = [96, 28], strides = [1, 1]} : vector<96x32xbf16> to vector<96x28xbf16>
    %cst_7 = arith.constant dense<0.000000e+00> : vector<168x28xf32>
    %10 = tpu.matmul %8, %9, %cst_7 {dimension_numbers = #tpu.dot_dimension_numbers<[1], [0], [0], [1], [0, 0, 1, 1], [], []>} : vector<168x96xbf16>, vector<96x28xbf16>, vector<168x28xf32> -> vector<168x28xf32>
    %11 = arith.addf %6, %10 : vector<168x28xf32>
    %c2 = arith.constant 2 : index
    %c0_8 = arith.constant 0 : index
    %c0_9 = arith.constant 0 : index
    %12 = vector.load %arg2[%c2, %c0_8, %c0_9] : memref<5x168x96xbf16, #tpu.memory_space<vmem>>, vector<1x168x96xbf16>
    %13 = vector.shape_cast %12 : vector<1x168x96xbf16> to vector<168x96xbf16>
    %14 = vector.extract_strided_slice %2 {offsets = [0, 2], sizes = [96, 28], strides = [1, 1]} : vector<96x32xbf16> to vector<96x28xbf16>
    %cst_10 = arith.constant dense<0.000000e+00> : vector<168x28xf32>
    %15 = tpu.matmul %13, %14, %cst_10 {dimension_numbers = #tpu.dot_dimension_numbers<[1], [0], [0], [1], [0, 0, 1, 1], [], []>} : vector<168x96xbf16>, vector<96x28xbf16>, vector<168x28xf32> -> vector<168x28xf32>
    %16 = arith.addf %11, %15 : vector<168x28xf32>
    %c3 = arith.constant 3 : index
    %c0_11 = arith.constant 0 : index
    %c0_12 = arith.constant 0 : index
    %17 = vector.load %arg2[%c3, %c0_11, %c0_12] : memref<5x168x96xbf16, #tpu.memory_space<vmem>>, vector<1x168x96xbf16>
    %18 = vector.shape_cast %17 : vector<1x168x96xbf16> to vector<168x96xbf16>
    %19 = vector.extract_strided_slice %2 {offsets = [0, 3], sizes = [96, 28], strides = [1, 1]} : vector<96x32xbf16> to vector<96x28xbf16>
    %cst_13 = arith.constant dense<0.000000e+00> : vector<168x28xf32>
    %20 = tpu.matmul %18, %19, %cst_13 {dimension_numbers = #tpu.dot_dimension_numbers<[1], [0], [0], [1], [0, 0, 1, 1], [], []>} : vector<168x96xbf16>, vector<96x28xbf16>, vector<168x28xf32> -> vector<168x28xf32>
    %21 = arith.addf %16, %20 : vector<168x28xf32>
    %c4 = arith.constant 4 : index
    %c0_14 = arith.constant 0 : index
    %c0_15 = arith.constant 0 : index
    %22 = vector.load %arg2[%c4, %c0_14, %c0_15] : memref<5x168x96xbf16, #tpu.memory_space<vmem>>, vector<1x168x96xbf16>
    %23 = vector.shape_cast %22 : vector<1x168x96xbf16> to vector<168x96xbf16>
    %24 = vector.extract_strided_slice %2 {offsets = [0, 4], sizes = [96, 28], strides = [1, 1]} : vector<96x32xbf16> to vector<96x28xbf16>
    %cst_16 = arith.constant dense<0.000000e+00> : vector<168x28xf32>
    %25 = tpu.matmul %23, %24, %cst_16 {dimension_numbers = #tpu.dot_dimension_numbers<[1], [0], [0], [1], [0, 0, 1, 1], [], []>} : vector<168x96xbf16>, vector<96x28xbf16>, vector<168x28xf32> -> vector<168x28xf32>
    %26 = arith.addf %21, %25 : vector<168x28xf32>
    %c0_17 = arith.constant 0 : index
    %c0_18 = arith.constant 0 : index
    %27 = vector.load %arg3[%c0_17, %c0_18] : memref<168x1xf32, #tpu.memory_space<vmem>>, vector<168x1xf32>
    %28 = vector.broadcast %27 : vector<168x1xf32> to vector<168x28xf32>
    %29 = arith.addf %26, %28 : vector<168x28xf32>
    %cst_19 = arith.constant 0.000000e+00 : f32
    %30 = vector.broadcast %cst_19 : f32 to vector<168x28xf32>
    %31 = arith.maximumf %29, %30 : vector<168x28xf32>
    %32 = arith.truncf %31 : vector<168x28xf32> to vector<168x28xbf16>
    %c0_20 = arith.constant 0 : index
    %c0_21 = arith.constant 0 : index
    %c0_22 = arith.constant 0 : index
    %33 = vector.load %arg4[%c0_20, %c0_21, %c0_22] : memref<2x84x168xbf16, #tpu.memory_space<vmem>>, vector<1x84x168xbf16>
    %34 = vector.shape_cast %33 : vector<1x84x168xbf16> to vector<84x168xbf16>
    %cst_23 = arith.constant dense<0.000000e+00> : vector<84x28xf32>
    %35 = tpu.matmul %34, %32, %cst_23 {dimension_numbers = #tpu.dot_dimension_numbers<[1], [0], [0], [1], [0, 0, 1, 1], [], []>} : vector<84x168xbf16>, vector<168x28xbf16>, vector<84x28xf32> -> vector<84x28xf32>
    %c1_24 = arith.constant 1 : index
    %c0_25 = arith.constant 0 : index
    %c0_26 = arith.constant 0 : index
    %36 = vector.load %arg4[%c1_24, %c0_25, %c0_26] : memref<2x84x168xbf16, #tpu.memory_space<vmem>>, vector<1x84x168xbf16>
    %37 = vector.shape_cast %36 : vector<1x84x168xbf16> to vector<84x168xbf16>
    %cst_27 = arith.constant dense<0.000000e+00> : vector<84x28xf32>
    %38 = tpu.matmul %37, %32, %cst_27 {dimension_numbers = #tpu.dot_dimension_numbers<[1], [0], [0], [1], [0, 0, 1, 1], [], []>} : vector<84x168xbf16>, vector<168x28xbf16>, vector<84x28xf32> -> vector<84x28xf32>
    %39 = arith.maximumf %35, %38 : vector<84x28xf32>
    %40 = arith.truncf %39 : vector<84x28xf32> to vector<84x28xbf16>
    %c0_28 = arith.constant 0 : index
    %c0_29 = arith.constant 0 : index
    %c0_30 = arith.constant 0 : index
    %41 = vector.load %arg5[%c0_28, %c0_29, %c0_30] : memref<2x28x14xbf16, #tpu.memory_space<vmem>>, vector<1x28x14xbf16>
    %42 = vector.shape_cast %41 : vector<1x28x14xbf16> to vector<28x14xbf16>
    %cst_31 = arith.constant dense<0.000000e+00> : vector<84x14xf32>
    %43 = tpu.matmul %40, %42, %cst_31 {dimension_numbers = #tpu.dot_dimension_numbers<[1], [0], [0], [1], [0, 0, 1, 1], [], []>} : vector<84x28xbf16>, vector<28x14xbf16>, vector<84x14xf32> -> vector<84x14xf32>
    %c1_32 = arith.constant 1 : index
    %c0_33 = arith.constant 0 : index
    %c0_34 = arith.constant 0 : index
    %44 = vector.load %arg5[%c1_32, %c0_33, %c0_34] : memref<2x28x14xbf16, #tpu.memory_space<vmem>>, vector<1x28x14xbf16>
    %45 = vector.shape_cast %44 : vector<1x28x14xbf16> to vector<28x14xbf16>
    %cst_35 = arith.constant dense<0.000000e+00> : vector<84x14xf32>
    %46 = tpu.matmul %40, %45, %cst_35 {dimension_numbers = #tpu.dot_dimension_numbers<[1], [0], [0], [1], [0, 0, 1, 1], [], []>} : vector<84x28xbf16>, vector<28x14xbf16>, vector<84x14xf32> -> vector<84x14xf32>
    %47 = arith.maximumf %43, %46 : vector<84x14xf32>
    %48 = arith.truncf %47 : vector<84x14xf32> to vector<84x14xbf16>
    %c0_36 = arith.constant 0 : index
    %c0_37 = arith.constant 0 : index
    %c0_38 = arith.constant 0 : index
    %49 = vector.load %arg6[%c0_36, %c0_37, %c0_38] : memref<5x160x84xbf16, #tpu.memory_space<vmem>>, vector<1x160x84xbf16>
    %50 = vector.shape_cast %49 : vector<1x160x84xbf16> to vector<160x84xbf16>
    %51 = vector.extract_strided_slice %48 {offsets = [0, 0], sizes = [84, 10], strides = [1, 1]} : vector<84x14xbf16> to vector<84x10xbf16>
    %cst_39 = arith.constant dense<0.000000e+00> : vector<160x10xf32>
    %52 = tpu.matmul %50, %51, %cst_39 {dimension_numbers = #tpu.dot_dimension_numbers<[1], [0], [0], [1], [0, 0, 1, 1], [], []>} : vector<160x84xbf16>, vector<84x10xbf16>, vector<160x10xf32> -> vector<160x10xf32>
    %c1_40 = arith.constant 1 : index
    %c0_41 = arith.constant 0 : index
    %c0_42 = arith.constant 0 : index
    %53 = vector.load %arg6[%c1_40, %c0_41, %c0_42] : memref<5x160x84xbf16, #tpu.memory_space<vmem>>, vector<1x160x84xbf16>
    %54 = vector.shape_cast %53 : vector<1x160x84xbf16> to vector<160x84xbf16>
    %55 = vector.extract_strided_slice %48 {offsets = [0, 1], sizes = [84, 10], strides = [1, 1]} : vector<84x14xbf16> to vector<84x10xbf16>
    %cst_43 = arith.constant dense<0.000000e+00> : vector<160x10xf32>
    %56 = tpu.matmul %54, %55, %cst_43 {dimension_numbers = #tpu.dot_dimension_numbers<[1], [0], [0], [1], [0, 0, 1, 1], [], []>} : vector<160x84xbf16>, vector<84x10xbf16>, vector<160x10xf32> -> vector<160x10xf32>
    %57 = arith.addf %52, %56 : vector<160x10xf32>
    %c2_44 = arith.constant 2 : index
    %c0_45 = arith.constant 0 : index
    %c0_46 = arith.constant 0 : index
    %58 = vector.load %arg6[%c2_44, %c0_45, %c0_46] : memref<5x160x84xbf16, #tpu.memory_space<vmem>>, vector<1x160x84xbf16>
    %59 = vector.shape_cast %58 : vector<1x160x84xbf16> to vector<160x84xbf16>
    %60 = vector.extract_strided_slice %48 {offsets = [0, 2], sizes = [84, 10], strides = [1, 1]} : vector<84x14xbf16> to vector<84x10xbf16>
    %cst_47 = arith.constant dense<0.000000e+00> : vector<160x10xf32>
    %61 = tpu.matmul %59, %60, %cst_47 {dimension_numbers = #tpu.dot_dimension_numbers<[1], [0], [0], [1], [0, 0, 1, 1], [], []>} : vector<160x84xbf16>, vector<84x10xbf16>, vector<160x10xf32> -> vector<160x10xf32>
    %62 = arith.addf %57, %61 : vector<160x10xf32>
    %c3_48 = arith.constant 3 : index
    %c0_49 = arith.constant 0 : index
    %c0_50 = arith.constant 0 : index
    %63 = vector.load %arg6[%c3_48, %c0_49, %c0_50] : memref<5x160x84xbf16, #tpu.memory_space<vmem>>, vector<1x160x84xbf16>
    %64 = vector.shape_cast %63 : vector<1x160x84xbf16> to vector<160x84xbf16>
    %65 = vector.extract_strided_slice %48 {offsets = [0, 3], sizes = [84, 10], strides = [1, 1]} : vector<84x14xbf16> to vector<84x10xbf16>
    %cst_51 = arith.constant dense<0.000000e+00> : vector<160x10xf32>
    %66 = tpu.matmul %64, %65, %cst_51 {dimension_numbers = #tpu.dot_dimension_numbers<[1], [0], [0], [1], [0, 0, 1, 1], [], []>} : vector<160x84xbf16>, vector<84x10xbf16>, vector<160x10xf32> -> vector<160x10xf32>
    %67 = arith.addf %62, %66 : vector<160x10xf32>
    %c4_52 = arith.constant 4 : index
    %c0_53 = arith.constant 0 : index
    %c0_54 = arith.constant 0 : index
    %68 = vector.load %arg6[%c4_52, %c0_53, %c0_54] : memref<5x160x84xbf16, #tpu.memory_space<vmem>>, vector<1x160x84xbf16>
    %69 = vector.shape_cast %68 : vector<1x160x84xbf16> to vector<160x84xbf16>
    %70 = vector.extract_strided_slice %48 {offsets = [0, 4], sizes = [84, 10], strides = [1, 1]} : vector<84x14xbf16> to vector<84x10xbf16>
    %cst_55 = arith.constant dense<0.000000e+00> : vector<160x10xf32>
    %71 = tpu.matmul %69, %70, %cst_55 {dimension_numbers = #tpu.dot_dimension_numbers<[1], [0], [0], [1], [0, 0, 1, 1], [], []>} : vector<160x84xbf16>, vector<84x10xbf16>, vector<160x10xf32> -> vector<160x10xf32>
    %72 = arith.addf %67, %71 : vector<160x10xf32>
    %c0_56 = arith.constant 0 : index
    %c0_57 = arith.constant 0 : index
    %73 = vector.load %arg7[%c0_56, %c0_57] : memref<160x1xf32, #tpu.memory_space<vmem>>, vector<160x1xf32>
    %74 = vector.broadcast %73 : vector<160x1xf32> to vector<160x10xf32>
    %75 = arith.addf %72, %74 : vector<160x10xf32>
    %cst_58 = arith.constant 0.000000e+00 : f32
    %76 = vector.broadcast %cst_58 : f32 to vector<160x10xf32>
    %77 = arith.maximumf %75, %76 : vector<160x10xf32>
    %78 = arith.truncf %77 : vector<160x10xf32> to vector<160x10xbf16>
    %c0_59 = arith.constant 0 : index
    %c0_60 = arith.constant 0 : index
    %c0_61 = arith.constant 0 : index
    %79 = vector.load %arg8[%c0_59, %c0_60, %c0_61] : memref<2x80x160xbf16, #tpu.memory_space<vmem>>, vector<1x80x160xbf16>
    %80 = vector.shape_cast %79 : vector<1x80x160xbf16> to vector<80x160xbf16>
    %cst_62 = arith.constant dense<0.000000e+00> : vector<80x10xf32>
    %81 = tpu.matmul %80, %78, %cst_62 {dimension_numbers = #tpu.dot_dimension_numbers<[1], [0], [0], [1], [0, 0, 1, 1], [], []>} : vector<80x160xbf16>, vector<160x10xbf16>, vector<80x10xf32> -> vector<80x10xf32>
    %c1_63 = arith.constant 1 : index
    %c0_64 = arith.constant 0 : index
    %c0_65 = arith.constant 0 : index
    %82 = vector.load %arg8[%c1_63, %c0_64, %c0_65] : memref<2x80x160xbf16, #tpu.memory_space<vmem>>, vector<1x80x160xbf16>
    %83 = vector.shape_cast %82 : vector<1x80x160xbf16> to vector<80x160xbf16>
    %cst_66 = arith.constant dense<0.000000e+00> : vector<80x10xf32>
    %84 = tpu.matmul %83, %78, %cst_66 {dimension_numbers = #tpu.dot_dimension_numbers<[1], [0], [0], [1], [0, 0, 1, 1], [], []>} : vector<80x160xbf16>, vector<160x10xbf16>, vector<80x10xf32> -> vector<80x10xf32>
    %85 = arith.maximumf %81, %84 : vector<80x10xf32>
    %86 = arith.truncf %85 : vector<80x10xf32> to vector<80x10xbf16>
    %c0_67 = arith.constant 0 : index
    %c0_68 = arith.constant 0 : index
    %c0_69 = arith.constant 0 : index
    %87 = vector.load %arg9[%c0_67, %c0_68, %c0_69] : memref<2x10x5xbf16, #tpu.memory_space<vmem>>, vector<1x10x5xbf16>
    %88 = vector.shape_cast %87 : vector<1x10x5xbf16> to vector<10x5xbf16>
    %cst_70 = arith.constant dense<0.000000e+00> : vector<80x5xf32>
    %89 = tpu.matmul %86, %88, %cst_70 {dimension_numbers = #tpu.dot_dimension_numbers<[1], [0], [0], [1], [0, 0, 1, 1], [], []>} : vector<80x10xbf16>, vector<10x5xbf16>, vector<80x5xf32> -> vector<80x5xf32>
    %c1_71 = arith.constant 1 : index
    %c0_72 = arith.constant 0 : index
    %c0_73 = arith.constant 0 : index
    %90 = vector.load %arg9[%c1_71, %c0_72, %c0_73] : memref<2x10x5xbf16, #tpu.memory_space<vmem>>, vector<1x10x5xbf16>
    %91 = vector.shape_cast %90 : vector<1x10x5xbf16> to vector<10x5xbf16>
    %cst_74 = arith.constant dense<0.000000e+00> : vector<80x5xf32>
    %92 = tpu.matmul %86, %91, %cst_74 {dimension_numbers = #tpu.dot_dimension_numbers<[1], [0], [0], [1], [0, 0, 1, 1], [], []>} : vector<80x10xbf16>, vector<10x5xbf16>, vector<80x5xf32> -> vector<80x5xf32>
    %93 = arith.maximumf %89, %92 : vector<80x5xf32>
    %94 = arith.truncf %93 : vector<80x5xf32> to vector<80x5xbf16>
    %c0_75 = arith.constant 0 : index
    %c0_76 = arith.constant 0 : index
    %c0_77 = arith.constant 0 : index
    %95 = vector.load %arg10[%c0_75, %c0_76, %c0_77] : memref<5x120x80xbf16, #tpu.memory_space<vmem>>, vector<1x120x80xbf16>
    %96 = vector.shape_cast %95 : vector<1x120x80xbf16> to vector<120x80xbf16>
    %97 = vector.extract_strided_slice %94 {offsets = [0, 0], sizes = [80, 1], strides = [1, 1]} : vector<80x5xbf16> to vector<80x1xbf16>
    %cst_78 = arith.constant dense<0.000000e+00> : vector<120x1xf32>
    %98 = tpu.matmul %96, %97, %cst_78 {dimension_numbers = #tpu.dot_dimension_numbers<[1], [0], [0], [1], [0, 0, 1, 1], [], []>} : vector<120x80xbf16>, vector<80x1xbf16>, vector<120x1xf32> -> vector<120x1xf32>
    %c1_79 = arith.constant 1 : index
    %c0_80 = arith.constant 0 : index
    %c0_81 = arith.constant 0 : index
    %99 = vector.load %arg10[%c1_79, %c0_80, %c0_81] : memref<5x120x80xbf16, #tpu.memory_space<vmem>>, vector<1x120x80xbf16>
    %100 = vector.shape_cast %99 : vector<1x120x80xbf16> to vector<120x80xbf16>
    %101 = vector.extract_strided_slice %94 {offsets = [0, 1], sizes = [80, 1], strides = [1, 1]} : vector<80x5xbf16> to vector<80x1xbf16>
    %cst_82 = arith.constant dense<0.000000e+00> : vector<120x1xf32>
    %102 = tpu.matmul %100, %101, %cst_82 {dimension_numbers = #tpu.dot_dimension_numbers<[1], [0], [0], [1], [0, 0, 1, 1], [], []>} : vector<120x80xbf16>, vector<80x1xbf16>, vector<120x1xf32> -> vector<120x1xf32>
    %103 = arith.addf %98, %102 : vector<120x1xf32>
    %c2_83 = arith.constant 2 : index
    %c0_84 = arith.constant 0 : index
    %c0_85 = arith.constant 0 : index
    %104 = vector.load %arg10[%c2_83, %c0_84, %c0_85] : memref<5x120x80xbf16, #tpu.memory_space<vmem>>, vector<1x120x80xbf16>
    %105 = vector.shape_cast %104 : vector<1x120x80xbf16> to vector<120x80xbf16>
    %106 = vector.extract_strided_slice %94 {offsets = [0, 2], sizes = [80, 1], strides = [1, 1]} : vector<80x5xbf16> to vector<80x1xbf16>
    %cst_86 = arith.constant dense<0.000000e+00> : vector<120x1xf32>
    %107 = tpu.matmul %105, %106, %cst_86 {dimension_numbers = #tpu.dot_dimension_numbers<[1], [0], [0], [1], [0, 0, 1, 1], [], []>} : vector<120x80xbf16>, vector<80x1xbf16>, vector<120x1xf32> -> vector<120x1xf32>
    %108 = arith.addf %103, %107 : vector<120x1xf32>
    %c3_87 = arith.constant 3 : index
    %c0_88 = arith.constant 0 : index
    %c0_89 = arith.constant 0 : index
    %109 = vector.load %arg10[%c3_87, %c0_88, %c0_89] : memref<5x120x80xbf16, #tpu.memory_space<vmem>>, vector<1x120x80xbf16>
    %110 = vector.shape_cast %109 : vector<1x120x80xbf16> to vector<120x80xbf16>
    %111 = vector.extract_strided_slice %94 {offsets = [0, 3], sizes = [80, 1], strides = [1, 1]} : vector<80x5xbf16> to vector<80x1xbf16>
    %cst_90 = arith.constant dense<0.000000e+00> : vector<120x1xf32>
    %112 = tpu.matmul %110, %111, %cst_90 {dimension_numbers = #tpu.dot_dimension_numbers<[1], [0], [0], [1], [0, 0, 1, 1], [], []>} : vector<120x80xbf16>, vector<80x1xbf16>, vector<120x1xf32> -> vector<120x1xf32>
    %113 = arith.addf %108, %112 : vector<120x1xf32>
    %c4_91 = arith.constant 4 : index
    %c0_92 = arith.constant 0 : index
    %c0_93 = arith.constant 0 : index
    %114 = vector.load %arg10[%c4_91, %c0_92, %c0_93] : memref<5x120x80xbf16, #tpu.memory_space<vmem>>, vector<1x120x80xbf16>
    %115 = vector.shape_cast %114 : vector<1x120x80xbf16> to vector<120x80xbf16>
    %116 = vector.extract_strided_slice %94 {offsets = [0, 4], sizes = [80, 1], strides = [1, 1]} : vector<80x5xbf16> to vector<80x1xbf16>
    %cst_94 = arith.constant dense<0.000000e+00> : vector<120x1xf32>
    %117 = tpu.matmul %115, %116, %cst_94 {dimension_numbers = #tpu.dot_dimension_numbers<[1], [0], [0], [1], [0, 0, 1, 1], [], []>} : vector<120x80xbf16>, vector<80x1xbf16>, vector<120x1xf32> -> vector<120x1xf32>
    %118 = arith.addf %113, %117 : vector<120x1xf32>
    %c0_95 = arith.constant 0 : index
    %c0_96 = arith.constant 0 : index
    %119 = vector.load %arg11[%c0_95, %c0_96] : memref<120x1xf32, #tpu.memory_space<vmem>>, vector<120x1xf32>
    %120 = arith.addf %118, %119 : vector<120x1xf32>
    %cst_97 = arith.constant 0.000000e+00 : f32
    %121 = vector.broadcast %cst_97 : f32 to vector<120x1xf32>
    %122 = arith.maximumf %120, %121 : vector<120x1xf32>
    %123 = arith.truncf %122 : vector<120x1xf32> to vector<120x1xbf16>
    %c0_98 = arith.constant 0 : index
    %c0_99 = arith.constant 0 : index
    %124 = vector.load %arg12[%c0_98, %c0_99] : memref<84x120xbf16, #tpu.memory_space<vmem>>, vector<84x120xbf16>
    %cst_100 = arith.constant dense<0.000000e+00> : vector<84x1xf32>
    %125 = tpu.matmul %124, %123, %cst_100 {dimension_numbers = #tpu.dot_dimension_numbers<[1], [0], [0], [1], [0, 0, 1, 1], [], []>} : vector<84x120xbf16>, vector<120x1xbf16>, vector<84x1xf32> -> vector<84x1xf32>
    %c0_101 = arith.constant 0 : index
    %c0_102 = arith.constant 0 : index
    %126 = vector.load %arg13[%c0_101, %c0_102] : memref<84x1xf32, #tpu.memory_space<vmem>>, vector<84x1xf32>
    %127 = arith.addf %125, %126 : vector<84x1xf32>
    %cst_103 = arith.constant 0.000000e+00 : f32
    %128 = vector.broadcast %cst_103 : f32 to vector<84x1xf32>
    %129 = arith.maximumf %127, %128 : vector<84x1xf32>
    %c0_104 = arith.constant 0 : index
    %c0_105 = arith.constant 0 : index
    %130 = vector.load %arg14[%c0_104, %c0_105] : memref<10x84xbf16, #tpu.memory_space<vmem>>, vector<10x84xbf16>
    %131 = arith.truncf %129 : vector<84x1xf32> to vector<84x1xbf16>
    %cst_106 = arith.constant dense<0.000000e+00> : vector<10x1xf32>
    %132 = tpu.matmul %130, %131, %cst_106 {dimension_numbers = #tpu.dot_dimension_numbers<[1], [0], [0], [1], [0, 0, 1, 1], [], []>} : vector<10x84xbf16>, vector<84x1xbf16>, vector<10x1xf32> -> vector<10x1xf32>
    %c0_107 = arith.constant 0 : index
    %c0_108 = arith.constant 0 : index
    %133 = vector.load %arg15[%c0_107, %c0_108] : memref<10x1xf32, #tpu.memory_space<vmem>>, vector<10x1xf32>
    %134 = arith.addf %132, %133 : vector<10x1xf32>
    %c0_109 = arith.constant 0 : index
    %c0_110 = arith.constant 0 : index
    %c0_111 = arith.constant 0 : index
    %135 = vector.load %arg16[%c0_109, %c0_110, %c0_111] : memref<1x10x1xf32, #tpu.memory_space<vmem>>, vector<1x10x1xf32>
    %136 = vector.shape_cast %135 : vector<1x10x1xf32> to vector<10x1xf32>
    %137 = vector.shape_cast %134 : vector<10x1xf32> to vector<1x10x1xf32>
    tpu.vector_store %arg16[%c0_109, %c0_110, %c0_111], %137 {strides = array<i32>} : memref<1x10x1xf32, #tpu.memory_space<vmem>>, vector<1x10x1xf32>,
    return
  }
  func.func @transform_0(%arg0: i32) -> (i32, i32, i32) {
    %c0_i32 = arith.constant 0 : i32
    %c0_i32_0 = arith.constant 0 : i32
    %c0_i32_1 = arith.constant 0 : i32
    return %arg0, %c0_i32, %c0_i32_0 : i32, i32, i32
  }
  func.func @transform_1(%arg0: i32) -> (i32, i32, i32) {
    %c0_i32 = arith.constant 0 : i32
    %c0_i32_0 = arith.constant 0 : i32
    %c0_i32_1 = arith.constant 0 : i32
    %c0_i32_2 = arith.constant 0 : i32
    return %c0_i32, %c0_i32_0, %c0_i32_1 : i32, i32, i32
  }
  func.func @transform_2(%arg0: i32) -> (i32, i32) {
    %c0_i32 = arith.constant 0 : i32
    %c0_i32_0 = arith.constant 0 : i32
    %c0_i32_1 = arith.constant 0 : i32
    return %c0_i32, %c0_i32_0 : i32, i32
  }
  func.func @transform_3(%arg0: i32) -> (i32, i32, i32) {
    %c0_i32 = arith.constant 0 : i32
    %c0_i32_0 = arith.constant 0 : i32
    %c0_i32_1 = arith.constant 0 : i32
    %c0_i32_2 = arith.constant 0 : i32
    return %c0_i32, %c0_i32_0, %c0_i32_1 : i32, i32, i32
  }
  func.func @transform_4(%arg0: i32) -> (i32, i32, i32) {
    %c0_i32 = arith.constant 0 : i32
    %c0_i32_0 = arith.constant 0 : i32
    %c0_i32_1 = arith.constant 0 : i32
    %c0_i32_2 = arith.constant 0 : i32
    return %c0_i32, %c0_i32_0, %c0_i32_1 : i32, i32, i32
  }
  func.func @transform_5(%arg0: i32) -> (i32, i32, i32) {
    %c0_i32 = arith.constant 0 : i32
    %c0_i32_0 = arith.constant 0 : i32
    %c0_i32_1 = arith.constant 0 : i32
    %c0_i32_2 = arith.constant 0 : i32
    return %c0_i32, %c0_i32_0, %c0_i32_1 : i32, i32, i32
  }
  func.func @transform_6(%arg0: i32) -> (i32, i32) {
    %c0_i32 = arith.constant 0 : i32
    %c0_i32_0 = arith.constant 0 : i32
    %c0_i32_1 = arith.constant 0 : i32
    return %c0_i32, %c0_i32_0 : i32, i32
  }
  func.func @transform_7(%arg0: i32) -> (i32, i32, i32) {
    %c0_i32 = arith.constant 0 : i32
    %c0_i32_0 = arith.constant 0 : i32
    %c0_i32_1 = arith.constant 0 : i32
    %c0_i32_2 = arith.constant 0 : i32
    return %c0_i32, %c0_i32_0, %c0_i32_1 : i32, i32, i32
  }
  func.func @transform_8(%arg0: i32) -> (i32, i32, i32) {
    %c0_i32 = arith.constant 0 : i32
    %c0_i32_0 = arith.constant 0 : i32
    %c0_i32_1 = arith.constant 0 : i32
    %c0_i32_2 = arith.constant 0 : i32
    return %c0_i32, %c0_i32_0, %c0_i32_1 : i32, i32, i32
  }
  func.func @transform_9(%arg0: i32) -> (i32, i32, i32) {
    %c0_i32 = arith.constant 0 : i32
    %c0_i32_0 = arith.constant 0 : i32
    %c0_i32_1 = arith.constant 0 : i32
    %c0_i32_2 = arith.constant 0 : i32
    return %c0_i32, %c0_i32_0, %c0_i32_1 : i32, i32, i32
  }
  func.func @transform_10(%arg0: i32) -> (i32, i32) {
    %c0_i32 = arith.constant 0 : i32
    %c0_i32_0 = arith.constant 0 : i32
    %c0_i32_1 = arith.constant 0 : i32
    return %c0_i32, %c0_i32_0 : i32, i32
  }
  func.func @transform_11(%arg0: i32) -> (i32, i32) {
    %c0_i32 = arith.constant 0 : i32
    %c0_i32_0 = arith.constant 0 : i32
    %c0_i32_1 = arith.constant 0 : i32
    return %c0_i32, %c0_i32_0 : i32, i32
  }
  func.func @transform_12(%arg0: i32) -> (i32, i32) {
    %c0_i32 = arith.constant 0 : i32
    %c0_i32_0 = arith.constant 0 : i32
    %c0_i32_1 = arith.constant 0 : i32
    return %c0_i32, %c0_i32_0 : i32, i32
  }
  func.func @transform_13(%arg0: i32) -> (i32, i32) {
    %c0_i32 = arith.constant 0 : i32
    %c0_i32_0 = arith.constant 0 : i32
    %c0_i32_1 = arith.constant 0 : i32
    return %c0_i32, %c0_i32_0 : i32, i32
  }
  func.func @transform_14(%arg0: i32) -> (i32, i32) {
    %c0_i32 = arith.constant 0 : i32
    %c0_i32_0 = arith.constant 0 : i32
    %c0_i32_1 = arith.constant 0 : i32
    return %c0_i32, %c0_i32_0 : i32, i32
  }
  func.func @transform_15(%arg0: i32) -> (i32, i32, i32) {
    %c0_i32 = arith.constant 0 : i32
    %c0_i32_0 = arith.constant 0 : i32
    %c0_i32_1 = arith.constant 0 : i32
    return %arg0, %c0_i32, %c0_i32_0 : i32, i32, i32
  }
}

</mosaic_0001>

<bundles_post_ra>
// kernel: net_forward.1
= control target key start
LH: loop header
LB: loop body
LE: loop exit
PB: predicated region body
PF: predicated region fallthrough
CT: control target
= control target key end

     0   :  { %20 = vsyncpa [#allocation3], 0  ;;  %s7939_s18 = smov 0   ;;  %s9654_s0 = inlined_call_operand.vmem [shape: f32[2,96,32], index: 0, kind: input, shape index: {}]   ;;  %s9655_s1 = inlined_call_operand.vmem [shape: bf16[5,168,96], index: 1, kind: input, shape index: {}]   ;;  %s9656_s2 = inlined_call_operand.vmem [shape: f32[168,1], index: 2, kind: input, shape index: {}]   ;;  %s9657_s3 = inlined_call_operand.vmem [shape: bf16[2,84,168], index: 3, kind: input, shape index: {}]   ;;  %s9658_s4 = inlined_call_operand.vmem [shape: bf16[2,28,14], index: 4, kind: input, shape index: {}]   ;;  %s9659_s5 = inlined_call_operand.vmem [shape: bf16[5,160,84], index: 5, kind: input, shape index: {}]   ;;  %s9660_s6 = inlined_call_operand.vmem [shape: f32[160,1], index: 6, kind: input, shape index: {}]   ;;  %s9661_s7 = inlined_call_operand.hbm [shape: bf16[2,80,160], index: 7, kind: input, shape index: {}]   ;;  %s9662_s8 = inlined_call_operand.vmem [shape: bf16[2,10,5], index: 8, kind: input, shape index: {}]   ;;  %s9663_s9 = inlined_call_operand.vmem [shape: bf16[5,120,80], index: 9, kind: input, shape index: {}]   ;;  %s9664_s10 = inlined_call_operand.vmem [shape: f32[120,1], index: 10, kind: input, shape index: {}]   ;;  %s9665_s11 = inlined_call_operand.vmem [shape: bf16[84,120], index: 11, kind: input, shape index: {}]   ;;  %s9666_s12 = inlined_call_operand.vmem [shape: f32[84,1], index: 12, kind: input, shape index: {}]   ;;  %s9667_s13 = inlined_call_operand.vmem [shape: bf16[10,84], index: 13, kind: input, shape index: {}]   ;;  %s9668_s14 = inlined_call_operand.vmem [shape: f32[10,1], index: 14, kind: input, shape index: {}]   ;;  %s9669_s15 = inlined_call_operand.vmem [shape: f32[2,10,1], index: 15, kind: output, shape index: {}]  }
   0x1 LB: > { %s7945_s19 = sadd.s32 4294967295, %s7847_s18   ;;  %p5789_p0 = scmp.ge.s32.totalorder %s7847_s18, 1  ;;  %s7847_s18 = sphi %s7939_s18, %s26_s18  }
   0x2   : > { %p377_p1 = scmp.lt.s32.totalorder %s7847_s18, 3  ;;  %s7849_s20 = smov [#allocation2]  }
   0x3   : > { %s407_s21 = sshll.u32 %s7849_s20, 4  ;;  %p9670_p3 = scmp.eq.s32.totalorder %s7945_s19, 0  ;;  %s408_s21 = int_to_ptr.vmem [resolvable:$true] %s407_s21 }
   0x4   : > { %p7949_p2 = pnand %p5789_p0, %p377_p1  ;;  %s7809_s26 = scalar_lea.hbm %s9661_s7, 2560 }
   0x5   : > { %p7810_p6 = scmp.ne.s32.totalorder %s9661_s7, %s7809_s26  ;;  %p7816_p10 = scmp.lt.u32.totalorder %s7809_s26, %s9661_s7 }
   0x6   : > { %s9676_s22 = scalar_select %p7949_p2, 1, 0 }
   0x7   : > { %p7561_p4 = pneg %p7949_p2 }
   0x9   : > { %p7958_p5 = pnand %p9670_p3, %p7561_p4 }
   0xb   : > { %p7811_p7 = pneg %p7958_p5 }
   0xd   : > { %p7812_p8 = pnand %p7811_p7, %p7810_p6 }
   0xf   : > { %p7813_p9 = pneg %p7812_p8 }
  0x11   : > { %p7818_p11 = pnand %p7816_p10, %p7813_p9 }
  0x13   : > { %7821 = shalt.err (!%p7818_p11)
}
  0x14   : > { %s7822_s16 = scalar_lea.vmem %s408_s21, 2560  ;;  %p7830_p1 = scmp.lt.s32.totalorder %s408_s21, %s408_s21 }
  0x15   : > { %p7823_p12 = scmp.ne.s32.totalorder %s408_s21, %s7822_s16  ;;  %p7831_p4 = scmp.lt.s32.totalorder %s7822_s16, %s7822_s16 }
  0x17   : > { %p7825_p13 = pnand %p7823_p12, %p7811_p7  ;;  %p7832_p3 = por %p7831_p4, %p7830_p1 }
  0x19   : > { %p7826_p0 = pneg %p7825_p13 }
  0x1b   : > { %p7833_p2 = pnand %p7832_p3, %p7826_p0 }
  0x1d   : > { %7836 = shalt.err (!%p7833_p2)
}
  0x1e   : > { %s7850_s17 = smov 128   ;;  %s7851_s20 = smov 8  }
  0x1f   : > { %7564 = dma.hbm_to_vmem [thread:$0]  (!%p7958_p5), %s9661_s7, 2560, %s408_s21, [#allocation3], %s7850_s17, %s7850_s17, %s7851_s20  }
  0x20   : > { %p9678_p6 = scmp.ne.s32.totalorder %s9676_s22, 0 }
  0x21   : > { %p9679_p8 = scmp.eq.s32.totalorder (!%p9678_p6), %s7945_s19, 0 }
  0x22   : > { %452 = sbr.rel (%p9678_p6) target bundleno = 3302 (0xce6), region = 80 }
  0x29   : > { %7842 = dma.done.wait (%p9679_p8), [#allocation3], 2560   ;;  %p9680_p7 = pmov %p9679_p8 }
  0x2a   : > { %p500_p2 = scmp.lt.s32.totalorder %s7945_s19, 1  ;;  %v7852_v0 = vmov 0.0   ;;  %s7853_s27 = smov 127   ;;  %vm7854_vm0 = vmmov 0   ;;  %vm649_vm1 = vcmask 785408   ;;  %v7595_v19 = vld [vmem:[%s9655_s1 + $0x38] sm:$0xff]  }
  0x2b   : > { %7844 = vsyncadd (%p9680_p7), [#allocation3], 4294964736  ;;  %6718 = vmatprep.subr.bf16.mxu0 %v7852_v0  ;;  %7408 = vmatprep.subr.bf16.mxu1 %v7852_v0  ;;  %s7855_s28 = smov 126   ;;  %s9674_s29 = smov 125   ;;  %v7597_v20 = vld [vmem:[%s9655_s1 + $0x40] sm:$0xff]   ;;  %v7599_v21 = vld [vmem:[%s9655_s1 + $0x48] sm:$0xff]  }
  0x2c   : > { %s9684_s19 = smov (!%p500_p2, %s7945_s19), 1  ;;  %6730 = vmatprep.mubr.msk.bf16.mxu0 %vm7854_vm0, %v7852_v0  ;;  %6814 = vmatprep.mubr.msk.bf16.mxu1 %vm7854_vm0, %v7852_v0  ;;  %s9672_s30 = smov 124   ;;  %v7601_v22 = vld [vmem:[%s9655_s1 + $0x50] ss:$0 sps:$4 sm:$0xff]   ;;  %v7587_v31 = vld [vmem:[%s9655_s1 + $0x54] sm:$0xff]   ;;  %v7588_v34 = vld [vmem:[%s9655_s1 + $0x5c] sm:$0xff]  }
  0x2d   : > { %s7556_s21 = smul.u32 96, %s9684_s19  ;;  %v7589_v37 = vld [vmem:[%s9655_s1 + $0x64] sm:$0xff]   ;;  %v7590_v40 = vld [vmem:[%s9655_s1 + $0x6c] sm:$0xff]   ;;  %v7610_v42 = vld [vmem:[%s9655_s1 + $0xfc] sm:$0xff]   ;;  %vm2051_vm2 = vcmask 326656   ;;  %vm2070_vm3 = vcmask 1043456  }
  0x2e   : > { %v7591_v43 = vld [vmem:[%s9655_s1 + $0x74] sm:$0xff]   ;;  %v7612_v44 = vld [vmem:[%s9655_s1 + $0x104] sm:$0xff]   ;;  %v7592_v45 = vld [vmem:[%s9655_s1 + $0x7c] sm:$0xff]   ;;  %vm2366_vm4 = vcmask 1045504   ;;  %vm2347_vm5 = vcmask 228352   ;;  %vm2680_vm6 = vcmask 687104  }
  0x2f   : > { %s504_s26 = scalar_lea.vmem %s9654_s0, %s7556_s21  ;;  %v7614_v46 = vld [vmem:[%s9655_s1 + $0x10c] sm:$0xff]   ;;  %v7593_v47 = vld [vmem:[%s9655_s1 + $0x84] sm:$0xff]   ;;  %v7616_v48 = vld [vmem:[%s9655_s1 + $0x114] sm:$0xff]   ;;  %s9681_s22 = smov 124   ;;  %vm2711_vm7 = vcmask 1041408   ;;  %vm4011_vm8 = vcmask 261120  }
  0x30   : > { %v511_v1 = vld [vmem:[%s504_s26] sm:$0xff]  ;;  %v512_v2 = vld [vmem:[%s504_s26 + $0x8] sm:$0xff]  ;;  %v513_v3 = vld [vmem:[%s504_s26 + $0x10] sm:$0xff]  ;;  %vm4282_vm9 = vcmask 1044480   ;;  %vm4266_vm10 = vcmask 80896   ;;  %vm4547_vm11 = vcmask 654336  }
  0x31   : > { %v7994_v4 = vpack.c.bf16 %v512_v2, %v511_v1  ;;  %v514_v5 = vld [vmem:[%s504_s26 + $0x18] sm:$0xff]  ;;  %v515_v6 = vld [vmem:[%s504_s26 + $0x20] sm:$0xff]  ;;  %v516_v7 = vld [vmem:[%s504_s26 + $0x28] sm:$0xff]  ;;  %s9682_s17 = smov 125   ;;  %vm5541_vm12 = vcmask 982016   ;;  %vm5716_vm13 = vcmask 7168  }
  0x32   : > { %v7996_v8 = vpack.c.bf16 %v516_v7, %v515_v6  ;;  %v517_v9 = vld [vmem:[%s504_s26 + $0x30] sm:$0xff]  ;;  %v518_v10 = vld [vmem:[%s504_s26 + $0x38] sm:$0xff]  ;;  %v519_v11 = vld [vmem:[%s504_s26 + $0x40] sm:$0xff]  ;;  %v8000_v12 = vpack.c.bf16 %v514_v5, %v513_v3  ;;  %vm5718_vm14 = vcmask 1024  }
  0x33   : > { %631 = vrot.lane.b32.xlu0 %v7994_v4, %s7853_s27  ;;  %v520_v13 = vld [vmem:[%s504_s26 + $0x48] sm:$0xff]  ;;  %v521_v14 = vld [vmem:[%s504_s26 + $0x50] sm:$0xff]  ;;  %v522_v15 = vld [vmem:[%s504_s26 + $0x58] sm:$0xff]  ;;  %7414 = vmatpush3.bf16.msra.mxu1 %v7994_v4  ;;  %v8005_v16 = vpack.c.bf16 %v518_v10, %v517_v9 }
  0x34   : > { %635 = vrot.lane.b32.xlu1 %v7996_v8, %s7853_s27  ;;  %7409 = vmatprep.subr.bf16.mxu1 %v7852_v0  ;;  %v8010_v17 = vpack.c.bf16 %v520_v13, %v519_v11  ;;  %v8015_v18 = vpack.c.bf16 %v522_v15, %v521_v14  ;;  %v7594_v49 = vld [vmem:[%s9655_s1 + $0x8c] sm:$0xff]   ;;  %v7618_v50 = vld [vmem:[%s9655_s1 + $0x11c] sm:$0xff]   ;;  %v7596_v51 = vld [vmem:[%s9655_s1 + $0x94] sm:$0xff]  }
  0x35   : > { %v7620_v52 = vld [vmem:[%s9655_s1 + $0x124] sm:$0xff]   ;;  %v7598_v53 = vld [vmem:[%s9655_s1 + $0x9c] sm:$0xff]   ;;  %v7622_v54 = vld [vmem:[%s9655_s1 + $0x12c] sm:$0xff]  }
  0x36   : > { %v7600_v55 = vld [vmem:[%s9655_s1 + $0xa4] ss:$0 sps:$4 sm:$0xff]   ;;  %v7624_v56 = vld [vmem:[%s9655_s1 + $0x134] sm:$0xff]   ;;  %v7626_v58 = vld [vmem:[%s9655_s1 + $0x13c] sm:$0xff]  }
  0x37   : > { %633 = vrot.lane.b32.xlu0 %v8000_v12, %s7853_s27  ;;  %7415 = vmatpush3.bf16.msra.mxu1 %v8000_v12  ;;  %v7602_v57 = vld [vmem:[%s9655_s1] sm:$0xff]   ;;  %v7603_v60 = vld [vmem:[%s9655_s1 + $0x8] sm:$0xff]   ;;  %v7604_v63 = vld [vmem:[%s9655_s1 + $0x10] sm:$0xff]  }
  0x38   : > { %637 = vrot.lane.b32.xlu1 %v8005_v16, %s7853_s27  ;;  %7410 = vmatprep.subr.bf16.mxu1 %v7852_v0  ;;  %v7628_v61 = vld [vmem:[%s9655_s1 + $0x144] sm:$0xff]   ;;  %v7630_v1 = vld [vmem:[%s9655_s1 + $0x14c] ss:$0 sps:$4 sm:$0xff]   ;;  %v7605_v3 = vld [vmem:[%s9655_s1 + $0x18] sm:$0xff]  }
  0x39   : > { %v7607_v5 = vld [vmem:[%s9655_s1 + $0x28] sm:$0xff]   ;;  %v7608_v6 = vld [vmem:[%s9655_s1 + $0x30] sm:$0xff]  }
  0x3a   : > { %v7609_v10 = vld [vmem:[%s9655_s1 + $0xa8] sm:$0xff]  }
  0x3b   : > { %639 = vrot.lane.b32.xlu0 %v8010_v17, %s7853_s27  ;;  %7416 = vmatpush3.bf16.msra.mxu1 %v7996_v8 }
  0x3c   : > { %641 = vrot.lane.b32.xlu1 %v8015_v18, %s7853_s27  ;;  %7411 = vmatprep.subr.bf16.mxu1 %v7852_v0 }
  0x3f   : > { %1084 = vrot.lane.b32.xlu0 %v7994_v4, %s7855_s28  ;;  %7417 = vmatpush3.bf16.msra.mxu1 %v8005_v16 }
  0x40   : > { %1086 = vrot.lane.b32.xlu1 %v8000_v12, %s7855_s28  ;;  %7412 = vmatprep.subr.bf16.mxu1 %v7852_v0 }
  0x43   : > { %1088 = vrot.lane.b32.xlu0 %v7996_v8, %s7855_s28  ;;  %7418 = vmatpush3.bf16.msra.mxu1 %v8010_v17 }
  0x44   : > { %1090 = vrot.lane.b32.xlu1 %v8005_v16, %s7855_s28  ;;  %7413 = vmatprep.subr.bf16.mxu1 %v7852_v0 }
  0x47   : > { %1092 = vrot.lane.b32.xlu0 %v8010_v17, %s7855_s28  ;;  %7419 = vmatpush3.bf16.msra.mxu1 %v8015_v18 }
  0x48   : > { %1094 = vrot.lane.b32.xlu1 %v8015_v18, %s7855_s28  ;;  %6886 = vmatprep.subr.bf16.mxu1 %v7852_v0 }
  0x4a   : > { %6815 = vmatmul.mubr.msk.bf16.vlgmr.msra.gmra.mrb[0].mxu1 %vm649_vm1, %v7595_v19 }
  0x4b   : > { %1351 = vrot.lane.b32.xlu0 %v7994_v4, %s9674_s29  ;;  %6818 = vmatprep.mubr.msk.bf16.mxu1 %vm7854_vm0, %v7852_v0 }
  0x4c   : > { %1618 = vrot.lane.b32.xlu1 %v7994_v4, %s9672_s30 }
  0x4f   : > { %1353 = vrot.lane.b32.xlu0 %v8000_v12, %s9674_s29 }
  0x50   : > { %1620 = vrot.lane.b32.xlu1 %v8000_v12, %s9672_s30 }
  0x52   : > { %6819 = vmatmul.mubr.msk.bf16.gmra.mrb[4].mxu1 %vm649_vm1, %v7597_v20 }
  0x53   : > { %1355 = vrot.lane.b32.xlu0 %v7996_v8, %s9674_s29  ;;  %6822 = vmatprep.mubr.msk.bf16.mxu1 %vm7854_vm0, %v7852_v0 }
  0x54   : > { %1622 = vrot.lane.b32.xlu1 %v7996_v8, %s9672_s30 }
  0x57   : > { %1357 = vrot.lane.b32.xlu0 %v8005_v16, %s9674_s29 }
  0x58   : > { %1624 = vrot.lane.b32.xlu1 %v8005_v16, %s9672_s30 }
  0x5a   : > { %6823 = vmatmul.mubr.msk.bf16.gmra.mrb[8].mxu1 %vm649_vm1, %v7599_v21  ;;  %v7858_v21 = vmov 0  }
  0x5b   : > { %1359 = vrot.lane.b32.xlu0 %v8010_v17, %s9674_s29  ;;  %6826 = vmatprep.mubr.msk.bf16.mxu1 %vm7854_vm0, %v7852_v0 }
  0x5c   : > { %1626 = vrot.lane.b32.xlu1 %v8010_v17, %s9672_s30  ;;  %7585 = vset.pattern.permute.xlu0 %v7858_v21 }
  0x5d   : > { %7586 = vset.pattern.permute.xlu1 %v7858_v21 }
  0x5f   : > { %1361 = vrot.lane.b32.xlu0 %v8015_v18, %s9674_s29 }
  0x60   : > { %1628 = vrot.lane.b32.xlu1 %v8015_v18, %s9672_s30 }
  0x62   : > { %6827 = vmatmul.mubr.msk.bf16.gmra.mrb[12].mxu1 %vm649_vm1, %v7601_v22  ;;  %v1811_v22 = vld [vmem:[%s9656_s2 + $0x8] sm:$0xff] }
  0x63   : > { %6898 = vmatprep.mubr.msk.bf16.mxu1 %vm7854_vm0, %v7852_v0 }
  0x64   : > { %1838 = vperm.xlu1 %7586, %v1811_v22  }
  0xa5   : > { %v632_v23 = vpop.permute.xlu0 %631 }
  0xa6   : > { %6719 = vmatpush3.bf16.msra.mxu0 %v632_v23  ;;  %v636_v25 = vpop.permute.xlu1 %635 }
  0xa7   : > { %6720 = vmatprep.subr.bf16.mxu0 %v7852_v0 }
  0xa9   : > { %v634_v24 = vpop.permute.xlu0 %633 }
  0xaa   : > { %6721 = vmatpush3.bf16.msra.mxu0 %v634_v24  ;;  %v638_v27 = vpop.permute.xlu1 %637  ;;  %v7613_v24 = vld [vmem:[%s9655_s1 + $0xb8] sm:$0xff]  }
  0xab   : > { %6722 = vmatprep.subr.bf16.mxu0 %v7852_v0 }
  0xad   : > { %v640_v26 = vpop.permute.xlu0 %639 }
  0xae   : > { %6723 = vmatpush3.bf16.msra.mxu0 %v636_v25  ;;  %v642_v30 = vpop.permute.xlu1 %641 }
  0xaf   : > { %6724 = vmatprep.subr.bf16.mxu0 %v7852_v0 }
  0xb1   : > { %v8097_v28 = vpop.permute.xlu0 %1084 }
  0xb2   : > { %6725 = vmatpush3.bf16.msra.mxu0 %v638_v27  ;;  %v1087_v59 = vpop.permute.xlu1 %1086  ;;  %v1812_v27 = vld [vmem:[%s9656_s2 + $0x10] sm:$0xff] }
  0xb3   : > { %6726 = vmatprep.subr.bf16.mxu0 %v7852_v0  ;;  %1843 = vperm.xlu1 %7586, %v1812_v27  }
  0xb5   : > { %v8100_v29 = vpop.permute.xlu0 %1088 }
  0xb6   : > { %6727 = vmatpush3.bf16.msra.mxu0 %v640_v26  ;;  %v1091_v62 = vpop.permute.xlu1 %1090 }
  0xb7   : > { %6728 = vmatprep.subr.bf16.mxu0 %v7852_v0 }
  0xb9   : > { %v8106_v32 = vpop.permute.xlu0 %1092 }
  0xba   : > { %6729 = vmatpush3.bf16.msra.mxu0 %v642_v30  ;;  %v1095_v2 = vpop.permute.xlu1 %1094 }
  0xbb   : > { %6774 = vmatprep.subr.bf16.mxu0 %v7852_v0 }
  0xbd   : > { %6731 = vmatmul.mubr.msk.bf16.vlgmr.msra.gmra.mrb[0].mxu0 %vm649_vm1, %v7587_v31  ;;  %v1352_v33 = vpop.permute.xlu0 %1351  ;;  %v1814_v31 = vld [vmem:[%s9656_s2 + $0x20] sm:$0xff] }
  0xbe   : > { %6734 = vmatprep.mubr.msk.bf16.mxu0 %vm7854_vm0, %v7852_v0  ;;  %6775 = vmatpush3.bf16.msra.mxu0 %v7994_v4  ;;  %v7606_v4 = vld [vmem:[%s9655_s1 + $0x20] sm:$0xff]   ;;  %v1619_v7 = vpop.permute.xlu1 %1618 }
  0xbf   : > { %6776 = vmatprep.subr.bf16.mxu0 %v7852_v0  ;;  %6887 = vmatpush3.bf16.msra.mxu1 %v1352_v33 }
  0xc0   : > { %6888 = vmatprep.subr.bf16.mxu1 %v7852_v0  ;;  %1853 = vperm.xlu1 %7586, %v1814_v31  }
  0xc1   : > { %v1354_v35 = vpop.permute.xlu0 %1353 }
  0xc2   : > { %6777 = vmatpush3.bf16.msra.mxu0 %v8000_v12 }
  0xc3   : > { %6778 = vmatprep.subr.bf16.mxu0 %v7852_v0  ;;  %6889 = vmatpush3.bf16.msra.mxu1 %v1354_v35  ;;  %v7615_v35 = vld [vmem:[%s9655_s1 + $0xc0] sm:$0xff]  }
  0xc4   : > { %6890 = vmatprep.subr.bf16.mxu1 %v7852_v0 }
  0xc5   : > { %6735 = vmatmul.mubr.msk.bf16.gmra.mrb[4].mxu0 %vm649_vm1, %v7588_v34  ;;  %v1356_v36 = vpop.permute.xlu0 %1355 }
  0xc6   : > { %6738 = vmatprep.mubr.msk.bf16.mxu0 %vm7854_vm0, %v7852_v0  ;;  %6779 = vmatpush3.bf16.msra.mxu0 %v7996_v8  ;;  %v1621_v8 = vpop.permute.xlu1 %1620 }
  0xc7   : > { %6780 = vmatprep.subr.bf16.mxu0 %v7852_v0  ;;  %6891 = vmatpush3.bf16.msra.mxu1 %v1356_v36  ;;  %v1816_v36 = vld [vmem:[%s9656_s2 + $0x30] sm:$0xff] }
  0xc8   : > { %6892 = vmatprep.subr.bf16.mxu1 %v7852_v0  ;;  %1863 = vperm.xlu1 %7586, %v1816_v36  }
  0xc9   : > { %v1358_v38 = vpop.permute.xlu0 %1357 }
  0xca   : > { %6781 = vmatpush3.bf16.msra.mxu0 %v8005_v16  ;;  %v1623_v14 = vpop.permute.xlu1 %1622  ;;  %v7611_v16 = vld [vmem:[%s9655_s1 + $0xb0] sm:$0xff]  }
  0xcb   : > { %6782 = vmatprep.subr.bf16.mxu0 %v7852_v0  ;;  %6893 = vmatpush3.bf16.msra.mxu1 %v1358_v38 }
  0xcc   : > { %6894 = vmatprep.subr.bf16.mxu1 %v7852_v0 }
  0xcd   : > { %6739 = vmatmul.mubr.msk.bf16.gmra.mrb[8].mxu0 %vm649_vm1, %v7589_v37  ;;  %v1360_v39 = vpop.permute.xlu0 %1359  ;;  %v1815_v37 = vld [vmem:[%s9656_s2 + $0x28] sm:$0xff] }
  0xce   : > { %6742 = vmatprep.mubr.msk.bf16.mxu0 %vm7854_vm0, %v7852_v0  ;;  %6783 = vmatpush3.bf16.msra.mxu0 %v8010_v17  ;;  %v1625_v19 = vpop.permute.xlu1 %1624 }
  0xcf   : > { %6784 = vmatprep.subr.bf16.mxu0 %v7852_v0  ;;  %6895 = vmatpush3.bf16.msra.mxu1 %v1360_v39 }
  0xd0   : > { %6896 = vmatprep.subr.bf16.mxu1 %v7852_v0 }
  0xd1   : > { %v1362_v41 = vpop.permute.xlu0 %1361 }
  0xd2   : > { %6785 = vmatpush3.bf16.msra.mxu0 %v8015_v18  ;;  %v1627_v25 = vpop.permute.xlu1 %1626 }
  0xd3   : > { %6830 = vmatprep.subr.bf16.mxu0 %v7852_v0  ;;  %6897 = vmatpush3.bf16.msra.mxu1 %v1362_v41  ;;  %v1818_v41 = vld [vmem:[%s9656_s2 + $0x40] sm:$0xff] }
  0xd4   : > { %2074 = vmatprep.subr.bf16.mxu1 %v7858_v21  ;;  %1873 = vperm.xlu1 %7586, %v1818_v41  }
  0xd5   : > { %6743 = vmatmul.mubr.msk.bf16.gmra.mrb[12].mxu0 %vm649_vm1, %v7590_v40 }
  0xd6   : > { %6746 = vmatprep.mubr.msk.bf16.mxu0 %vm7854_vm0, %v7852_v0  ;;  %6899 = vmatmul.mubr.msk.bf16.vlgmr.msra.gmra.mrb[16].mxu1 %vm649_vm1, %v7610_v42  ;;  %v1629_v33 = vpop.permute.xlu1 %1628  ;;  %v1817_v42 = vld [vmem:[%s9656_s2 + $0x38] sm:$0xff] }
  0xd7   : > { %6902 = vmatprep.mubr.msk.bf16.mxu1 %vm7854_vm0, %v7852_v0 }
  0xdd   : > { %6747 = vmatmul.mubr.msk.bf16.gmra.mrb[16].mxu0 %vm649_vm1, %v7591_v43  ;;  %v7617_v43 = vld [vmem:[%s9655_s1 + $0xc8] sm:$0xff]  }
  0xde   : > { %6750 = vmatprep.mubr.msk.bf16.mxu0 %vm7854_vm0, %v7852_v0  ;;  %6903 = vmatmul.mubr.msk.bf16.gmra.mrb[20].mxu1 %vm649_vm1, %v7612_v44  ;;  %v1820_v44 = vld [vmem:[%s9656_s2 + $0x50] sm:$0xff] }
  0xdf   : > { %6906 = vmatprep.mubr.msk.bf16.mxu1 %vm7854_vm0, %v7852_v0  ;;  %1883 = vperm.xlu1 %7586, %v1820_v44  }
  0xe5   : > { %6751 = vmatmul.mubr.msk.bf16.gmra.mrb[20].mxu0 %vm649_vm1, %v7592_v45  ;;  %v1819_v45 = vld [vmem:[%s9656_s2 + $0x48] sm:$0xff] }
  0xe6   : > { %6754 = vmatprep.mubr.msk.bf16.mxu0 %vm7854_vm0, %v7852_v0  ;;  %6907 = vmatmul.mubr.msk.bf16.gmra.mrb[24].mxu1 %vm649_vm1, %v7614_v46  ;;  %v1822_v46 = vld [vmem:[%s9656_s2 + $0x60] sm:$0xff] }
  0xe7   : > { %6910 = vmatprep.mubr.msk.bf16.mxu1 %vm7854_vm0, %v7852_v0  ;;  %1893 = vperm.xlu1 %7586, %v1822_v46  }
  0xed   : > { %6755 = vmatmul.mubr.msk.bf16.gmra.mrb[24].mxu0 %vm649_vm1, %v7593_v47  ;;  %v1821_v47 = vld [vmem:[%s9656_s2 + $0x58] sm:$0xff] }
  0xee   : > { %6758 = vmatprep.mubr.msk.bf16.mxu0 %vm7854_vm0, %v7852_v0  ;;  %6911 = vmatmul.mubr.msk.bf16.gmra.mrb[28].mxu1 %vm649_vm1, %v7616_v48  ;;  %v7619_v48 = vld [vmem:[%s9655_s1 + $0xd0] sm:$0xff]  }
  0xef   : > { %6914 = vmatprep.mubr.msk.bf16.mxu1 %vm7854_vm0, %v7852_v0 }
  0xf5   : > { %6759 = vmatmul.mubr.msk.bf16.gmra.mrb[28].mxu0 %vm649_vm1, %v7594_v49  ;;  %v1824_v49 = vld [vmem:[%s9656_s2 + $0x70] sm:$0xff] }
  0xf6   : > { %6762 = vmatprep.mubr.msk.bf16.mxu0 %vm7854_vm0, %v7852_v0  ;;  %6915 = vmatmul.mubr.msk.bf16.gmra.mrb[32].mxu1 %vm649_vm1, %v7618_v50  ;;  %v1823_v50 = vld [vmem:[%s9656_s2 + $0x68] sm:$0xff] }
  0xf7   : > { %6918 = vmatprep.mubr.msk.bf16.mxu1 %vm7854_vm0, %v7852_v0  ;;  %1903 = vperm.xlu1 %7586, %v1824_v49   ;;  %v7635_v49 = vld [vmem:[%s9655_s1 + $0x170] sm:$0xff]  }
  0xfd   : > { %6763 = vmatmul.mubr.msk.bf16.gmra.mrb[32].mxu0 %vm649_vm1, %v7596_v51  ;;  %v1826_v51 = vld [vmem:[%s9656_s2 + $0x80] sm:$0xff] }
  0xfe   : > { %6766 = vmatprep.mubr.msk.bf16.mxu0 %vm7854_vm0, %v7852_v0  ;;  %6919 = vmatmul.mubr.msk.bf16.gmra.mrb[36].mxu1 %vm649_vm1, %v7620_v52  ;;  %v1825_v52 = vld [vmem:[%s9656_s2 + $0x78] sm:$0xff] }
  0xff   : > { %6922 = vmatprep.mubr.msk.bf16.mxu1 %vm7854_vm0, %v7852_v0  ;;  %1913 = vperm.xlu1 %7586, %v1826_v51  }
 0x105   : > { %6767 = vmatmul.mubr.msk.bf16.gmra.mrb[36].mxu0 %vm649_vm1, %v7598_v53  ;;  %v7621_v53 = vld [vmem:[%s9655_s1 + $0xd8] sm:$0xff]  }
 0x106   : > { %6770 = vmatprep.mubr.msk.bf16.mxu0 %vm7854_vm0, %v7852_v0  ;;  %6923 = vmatmul.mubr.msk.bf16.gmra.mrb[40].mxu1 %vm649_vm1, %v7622_v54  ;;  %v1828_v54 = vld [vmem:[%s9656_s2 + $0x90] sm:$0xff] }
 0x107   : > { %6926 = vmatprep.mubr.msk.bf16.mxu1 %vm7854_vm0, %v7852_v0  ;;  %1923 = vperm.xlu1 %7586, %v1828_v54  }
 0x10d   : > { %6771 = vmatmul.mubr.msk.bf16.gmra.mrb[40].mxu0 %vm649_vm1, %v7600_v55  ;;  %v1827_v55 = vld [vmem:[%s9656_s2 + $0x88] sm:$0xff] }
 0x10e   : > { %6786 = vmatprep.mubr.msk.bf16.mxu0 %vm7854_vm0, %v7852_v0  ;;  %6927 = vmatmul.mubr.msk.bf16.gmra.mrb[44].mxu1 %vm649_vm1, %v7624_v56  ;;  %v1830_v56 = vld [vmem:[%s9656_s2 + $0xa0] sm:$0xff] }
 0x10f   : > { %6930 = vmatprep.mubr.msk.bf16.mxu1 %vm7854_vm0, %v7852_v0  ;;  %1933 = vperm.xlu1 %7586, %v1830_v56  }
 0x115   : > { %6787 = vmatmul.mubr.msk.bf16.vlgmr.msra.gmra.mrb[44].mxu0 %vm649_vm1, %v7602_v57  ;;  %v1829_v57 = vld [vmem:[%s9656_s2 + $0x98] sm:$0xff] }
 0x116   : > { %6790 = vmatprep.mubr.msk.bf16.mxu0 %vm7854_vm0, %v7852_v0  ;;  %6831 = vmatpush3.bf16.msra.mxu0 %v8097_v28  ;;  %v1810_v28 = vld [vmem:[%s9656_s2] sm:$0xff] }
 0x117   : > { %6832 = vmatprep.subr.bf16.mxu0 %v7852_v0  ;;  %6931 = vmatmul.mubr.msk.bf16.gmra.mrb[48].mxu1 %vm649_vm1, %v7626_v58  ;;  %v7623_v58 = vld [vmem:[%s9655_s1 + $0xe0] sm:$0xff]  }
 0x118   : > { %6934 = vmatprep.mubr.msk.bf16.mxu1 %vm7854_vm0, %v7852_v0  ;;  %1833 = vperm.xlu0 %7585, %v1810_v28  }
 0x11a   : > { %6833 = vmatpush3.bf16.msra.mxu0 %v1087_v59  ;;  %v7625_v59 = vld [vmem:[%s9655_s1 + $0xe8] sm:$0xff]  }
 0x11b   : > { %6834 = vmatprep.subr.bf16.mxu0 %v7852_v0 }
 0x11d   : > { %6791 = vmatmul.mubr.msk.bf16.gmra.mrb[48].mxu0 %vm649_vm1, %v7603_v60  ;;  %v8304_v9 = vpop.f32.mrb[0].mxu1 }
 0x11e   : > { %6794 = vmatprep.mubr.msk.bf16.mxu0 %vm7854_vm0, %v7852_v0  ;;  %6835 = vmatpush3.bf16.msra.mxu0 %v8100_v29  ;;  %v6816_v11 = vpop.f32.mrb[1].mxu1 }
 0x11f   : > { %6836 = vmatprep.subr.bf16.mxu0 %v7852_v0  ;;  %6935 = vmatmul.mubr.msk.bf16.gmra.mrb[52].mxu1 %vm649_vm1, %v7628_v61  ;;  %v8309_v12 = vpop.f32.mrb[2].mxu1 }
 0x120   : > { %6938 = vmatprep.mubr.msk.bf16.mxu1 %vm7854_vm0, %v7852_v0  ;;  %v6817_v13 = vpop.f32.mrb[3].mxu1 }
 0x122   : > { %6837 = vmatpush3.bf16.msra.mxu0 %v1091_v62  ;;  %v7627_v62 = vld [vmem:[%s9655_s1 + $0xf0] sm:$0xff]  }
 0x123   : > { %6838 = vmatprep.subr.bf16.mxu0 %v7852_v0 }
 0x125   : > { %6795 = vmatmul.mubr.msk.bf16.gmra.mrb[52].mxu0 %vm649_vm1, %v7604_v63  ;;  %v8315_v15 = vpop.f32.mrb[4].mxu1 }
 0x126   : > { %6798 = vmatprep.mubr.msk.bf16.mxu0 %vm7854_vm0, %v7852_v0  ;;  %6839 = vmatpush3.bf16.msra.mxu0 %v8106_v32  ;;  %v6820_v17 = vpop.f32.mrb[5].mxu1  ;;  %v1813_v32 = vld [vmem:[%s9656_s2 + $0x18] sm:$0xff] }
 0x127   : > { %6840 = vmatprep.subr.bf16.mxu0 %v7852_v0  ;;  %6939 = vmatmul.mubr.msk.bf16.gmra.mrb[56].mxu1 %vm649_vm1, %v7630_v1  ;;  %v8320_v18 = vpop.f32.mrb[6].mxu1  ;;  %v7632_v17 = vld [vmem:[%s9655_s1 + $0x158] sm:$0xff]  }
 0x128   : > { %v6821_v20 = vpop.f32.mrb[7].mxu1  ;;  %1848 = vperm.xlu0 %7585, %v1813_v32  }
 0x12a   : > { %6841 = vmatpush3.bf16.msra.mxu0 %v1095_v2 }
 0x12b   : > { %6942 = vmatprep.subr.bf16.mxu0 %v7852_v0 }
 0x12c   : > { %1858 = vperm.xlu0 %7585, %v1815_v37  }
 0x12d   : > { %6799 = vmatmul.mubr.msk.bf16.gmra.mrb[56].mxu0 %vm649_vm1, %v7605_v3  ;;  %v8333_v23 = vpop.f32.mrb[8].mxu1 }
 0x12e   : > { %6802 = vmatprep.mubr.msk.bf16.mxu0 %vm7854_vm0, %v7852_v0  ;;  %v6824_v26 = vpop.f32.mrb[9].mxu1 }
 0x12f   : > { %v8344_v29 = vpop.f32.mrb[10].mxu1 }
 0x130   : > { %v6825_v30 = vpop.f32.mrb[11].mxu1  ;;  %1868 = vperm.xlu0 %7585, %v1817_v42  }
 0x131   : > { %v7633_v30 = vld [vmem:[%s9655_s1 + $0x160] sm:$0xff]  }
 0x134   : > { %1878 = vperm.xlu0 %7585, %v1819_v45  }
 0x135   : > { %6803 = vmatmul.mubr.msk.bf16.gmra.mrb[60].mxu0 %vm649_vm1, %v7606_v4  ;;  %v8357_v34 = vpop.f32.mrb[12].mxu1  ;;  %v7629_v4 = vld [vmem:[%s9655_s1 + $0xf8] ss:$0 sps:$4 sm:$0xff]  }
 0x136   : > { %6806 = vmatprep.mubr.msk.bf16.mxu0 %vm7854_vm0, %v7852_v0  ;;  %v6828_v38 = vpop.f32.mrb[13].mxu1 }
 0x137   : > { %v1006_v39 = vpop.f32.mrb[14].mxu1 }
 0x138   : > { %v6829_v40 = vpop.f32.mrb[15].mxu1  ;;  %1888 = vperm.xlu0 %7585, %v1821_v47  }
 0x139   : > { %v7634_v40 = vld [vmem:[%s9655_s1 + $0x168] sm:$0xff]  }
 0x13c   : > { %1898 = vperm.xlu0 %7585, %v1823_v50  }
 0x13d   : > { %6807 = vmatmul.mubr.msk.bf16.gmra.mrb[64].mxu0 %vm649_vm1, %v7607_v5 }
 0x13e   : > { %6810 = vmatprep.mubr.msk.bf16.mxu0 %vm7854_vm0, %v7852_v0 }
 0x140   : > { %1908 = vperm.xlu0 %7585, %v1825_v52  }
 0x144   : > { %1918 = vperm.xlu0 %7585, %v1827_v55  }
 0x145   : > { %6811 = vmatmul.mubr.msk.bf16.gmra.mrb[68].mxu0 %vm649_vm1, %v7608_v6 }
 0x146   : > { %6842 = vmatprep.mubr.msk.bf16.mxu0 %vm7854_vm0, %v7852_v0 }
 0x148   : > { %1928 = vperm.xlu0 %7585, %v1829_v57  }
 0x14d   : > { %6843 = vmatmul.mubr.msk.bf16.vlgmr.msra.gmra.mrb[72].mxu0 %vm649_vm1, %v7609_v10  ;;  %v7631_v10 = vld [vmem:[%s9655_s1 + $0x150] sm:$0xff]  }
 0x14e   : > { %6846 = vmatprep.mubr.msk.bf16.mxu0 %vm7854_vm0, %v7852_v0  ;;  %6943 = vmatpush3.bf16.msra.mxu0 %v1619_v7 }
 0x14f   : > { %6944 = vmatprep.subr.bf16.mxu0 %v7852_v0 }
 0x152   : > { %6945 = vmatpush3.bf16.msra.mxu0 %v1621_v8 }
 0x153   : > { %6946 = vmatprep.subr.bf16.mxu0 %v7852_v0 }
 0x155   : > { %6847 = vmatmul.mubr.msk.bf16.gmra.mrb[76].mxu0 %vm649_vm1, %v7611_v16 }
 0x156   : > { %6850 = vmatprep.mubr.msk.bf16.mxu0 %vm7854_vm0, %v7852_v0  ;;  %6947 = vmatpush3.bf16.msra.mxu0 %v1623_v14 }
 0x157   : > { %6948 = vmatprep.subr.bf16.mxu0 %v7852_v0 }
 0x15a   : > { %6949 = vmatpush3.bf16.msra.mxu0 %v1625_v19 }
 0x15b   : > { %6950 = vmatprep.subr.bf16.mxu0 %v7852_v0 }
 0x15d   : > { %6851 = vmatmul.mubr.msk.bf16.gmra.mrb[80].mxu0 %vm649_vm1, %v7613_v24 }
 0x15e   : > { %6854 = vmatprep.mubr.msk.bf16.mxu0 %vm7854_vm0, %v7852_v0  ;;  %6951 = vmatpush3.bf16.msra.mxu0 %v1627_v25 }
 0x15f   : > { %6952 = vmatprep.subr.bf16.mxu0 %v7852_v0 }
 0x162   : > { %6953 = vmatpush3.bf16.msra.mxu0 %v1629_v33 }
 0x165   : > { %6855 = vmatmul.mubr.msk.bf16.gmra.mrb[84].mxu0 %vm649_vm1, %v7615_v35 }
 0x166   : > { %6858 = vmatprep.mubr.msk.bf16.mxu0 %vm7854_vm0, %v7852_v0 }
 0x16d   : > { %6859 = vmatmul.mubr.msk.bf16.gmra.mrb[88].mxu0 %vm649_vm1, %v7617_v43 }
 0x16e   : > { %6862 = vmatprep.mubr.msk.bf16.mxu0 %vm7854_vm0, %v7852_v0 }
 0x175   : > { %6863 = vmatmul.mubr.msk.bf16.gmra.mrb[92].mxu0 %vm649_vm1, %v7619_v48 }
 0x176   : > { %6866 = vmatprep.mubr.msk.bf16.mxu0 %vm7854_vm0, %v7852_v0 }
 0x17d   : > { %6867 = vmatmul.mubr.msk.bf16.gmra.mrb[96].mxu0 %vm649_vm1, %v7621_v53 }
 0x17e   : > { %6870 = vmatprep.mubr.msk.bf16.mxu0 %vm7854_vm0, %v7852_v0 }
 0x185   : > { %6871 = vmatmul.mubr.msk.bf16.gmra.mrb[100].mxu0 %vm649_vm1, %v7623_v58 }
 0x186   : > { %6874 = vmatprep.mubr.msk.bf16.mxu0 %vm7854_vm0, %v7852_v0 }
 0x18d   : > { %6875 = vmatmul.mubr.msk.bf16.gmra.mrb[104].mxu0 %vm649_vm1, %v7625_v59  ;;  %v7636_v59 = vld [vmem:[%s9655_s1 + $0x178] sm:$0xff]  }
 0x18e   : > { %6878 = vmatprep.mubr.msk.bf16.mxu0 %vm7854_vm0, %v7852_v0 }
 0x190   : > { %v8443_v60 = vpop.f32.mrb[0].mxu0 }
 0x191   : > { %v6732_v61 = vpop.f32.mrb[1].mxu0 }
 0x192   : > { %v8448_v63 = vpop.f32.mrb[2].mxu0 }
 0x193   : > { %v6733_v1 = vpop.f32.mrb[3].mxu0 }
 0x195   : > { %6879 = vmatmul.mubr.msk.bf16.gmra.mrb[108].mxu0 %vm649_vm1, %v7627_v62 }
 0x196   : > { %6882 = vmatprep.mubr.msk.bf16.mxu0 %vm7854_vm0, %v7852_v0 }
 0x198   : > { %v8453_v2 = vpop.f32.mrb[4].mxu0 }
 0x199   : > { %v6736_v3 = vpop.f32.mrb[5].mxu0 }
 0x19a   : > { %v8458_v5 = vpop.f32.mrb[6].mxu0 }
 0x19b   : > { %v6737_v6 = vpop.f32.mrb[7].mxu0 }
 0x19d   : > { %6883 = vmatmul.mubr.msk.bf16.gmra.mrb[112].mxu0 %vm649_vm1, %v7629_v4 }
 0x19e   : > { %6954 = vmatprep.mubr.msk.bf16.mxu0 %vm7854_vm0, %v7852_v0 }
 0x1a0   : > { %v8463_v7 = vpop.f32.mrb[8].mxu0 }
 0x1a1   : > { %v6740_v8 = vpop.f32.mrb[9].mxu0 }
 0x1a2   : > { %v8468_v11 = vpop.f32.mrb[10].mxu0 }
 0x1a3   : > { %v6741_v13 = vpop.f32.mrb[11].mxu0 }
 0x1a5   : > { %6955 = vmatmul.mubr.msk.bf16.vlgmr.msra.gmra.mrb[116].mxu0 %vm649_vm1, %v7631_v10 }
 0x1a6   : > { %6958 = vmatprep.mubr.msk.bf16.mxu0 %vm7854_vm0, %v7852_v0 }
 0x1a8   : > { %v8473_v14 = vpop.f32.mrb[12].mxu0 }
 0x1a9   : > { %v6744_v16 = vpop.f32.mrb[13].mxu0  ;;  %v8478_v19 = vpop.f32.mrb[16].mxu1 }
 0x1aa   : > { %v8480_v20 = vpop.f32.mrb[14].mxu0  ;;  %v6900_v22 = vpop.f32.mrb[17].mxu1  ;;  %v7637_v16 = vld [vmem:[%s9655_s1 + $0x180] sm:$0xff]  }
 0x1ab   : > { %v6745_v24 = vpop.f32.mrb[15].mxu0  ;;  %v8482_v25 = vpop.f32.mrb[18].mxu1 }
 0x1ac   : > { %v6901_v26 = vpop.f32.mrb[19].mxu1 }
 0x1ad   : > { %6959 = vmatmul.mubr.msk.bf16.gmra.mrb[120].mxu0 %vm649_vm1, %v7632_v17 }
 0x1ae   : > { %6962 = vmatprep.mubr.msk.bf16.mxu0 %vm7854_vm0, %v7852_v0 }
 0x1b0   : > { %v8487_v27 = vpop.f32.mrb[16].mxu0 }
 0x1b1   : > { %v6748_v28 = vpop.f32.mrb[17].mxu0  ;;  %v8492_v31 = vpop.f32.mrb[20].mxu1 }
 0x1b2   : > { %v8494_v32 = vpop.f32.mrb[18].mxu0  ;;  %v6904_v33 = vpop.f32.mrb[21].mxu1 }
 0x1b3   : > { %v6749_v35 = vpop.f32.mrb[19].mxu0  ;;  %v8496_v36 = vpop.f32.mrb[22].mxu1 }
 0x1b4   : > { %v6905_v37 = vpop.f32.mrb[23].mxu1 }
 0x1b5   : > { %6963 = vmatmul.mubr.msk.bf16.gmra.mrb[124].mxu0 %vm649_vm1, %v7633_v30  ;;  %v7638_v37 = vld [vmem:[%s9655_s1 + $0x188] sm:$0xff]  }
 0x1b6   : > { %6966 = vmatprep.mubr.msk.bf16.mxu0 %vm7854_vm0, %v7852_v0 }
 0x1b8   : > { %v8501_v38 = vpop.f32.mrb[20].mxu0 }
 0x1b9   : > { %v6752_v39 = vpop.f32.mrb[21].mxu0  ;;  %v8506_v41 = vpop.f32.mrb[24].mxu1 }
 0x1ba   : > { %v8508_v42 = vpop.f32.mrb[22].mxu0  ;;  %v6908_v43 = vpop.f32.mrb[25].mxu1 }
 0x1bb   : > { %v6753_v44 = vpop.f32.mrb[23].mxu0  ;;  %v8510_v45 = vpop.f32.mrb[26].mxu1 }
 0x1bc   : > { %v6909_v46 = vpop.f32.mrb[27].mxu1 }
 0x1bd   : > { %6967 = vmatmul.mubr.msk.bf16.gmra.mrb[128].mxu0 %vm649_vm1, %v7634_v40 }
 0x1be   : > { %6970 = vmatprep.mubr.msk.bf16.mxu0 %vm7854_vm0, %v7852_v0 }
 0x1c0   : > { %v8515_v47 = vpop.f32.mrb[24].mxu0 }
 0x1c1   : > { %v6756_v48 = vpop.f32.mrb[25].mxu0  ;;  %v8520_v50 = vpop.f32.mrb[28].mxu1 }
 0x1c2   : > { %v8522_v51 = vpop.f32.mrb[26].mxu0  ;;  %v6912_v52 = vpop.f32.mrb[29].mxu1 }
 0x1c3   : > { %v6757_v53 = vpop.f32.mrb[27].mxu0  ;;  %v8524_v54 = vpop.f32.mrb[30].mxu1 }
 0x1c4   : > { %v6913_v55 = vpop.f32.mrb[31].mxu1  ;;  %v7639_v53 = vld [vmem:[%s9655_s1 + $0x190] sm:$0xff]  }
 0x1c5   : > { %6971 = vmatmul.mubr.msk.bf16.gmra.mrb[132].mxu0 %vm649_vm1, %v7635_v49 }
 0x1c6   : > { %6974 = vmatprep.mubr.msk.bf16.mxu0 %vm7854_vm0, %v7852_v0 }
 0x1c8   : > { %v773_v56 = vpop.f32.mrb[28].mxu0 }
 0x1c9   : > { %v8530_v57 = vadd.f32 %v8304_v9, %v773_v56  ;;  %v6760_v58 = vpop.f32.mrb[29].mxu0  ;;  %v8535_v61 = vpop.f32.mrb[32].mxu1 }
 0x1ca   : > { %v776_v62 = vpop.f32.mrb[30].mxu0  ;;  %v6916_v1 = vpop.f32.mrb[33].mxu1 }
 0x1cb   : > { %v8538_v3 = vadd.f32 %v8309_v12, %v776_v62  ;;  %v6761_v4 = vpop.f32.mrb[31].mxu0  ;;  %v8540_v6 = vpop.f32.mrb[34].mxu1 }
 0x1cc   : > { %v6917_v8 = vpop.f32.mrb[35].mxu1 }
 0x1cd   : > { %6975 = vmatmul.mubr.msk.bf16.gmra.mrb[136].mxu0 %vm649_vm1, %v7636_v59  ;;  %v7640_v8 = vld [vmem:[%s9655_s1 + $0x198] sm:$0xff]  }
 0x1ce   : > { %6978 = vmatprep.mubr.msk.bf16.mxu0 %vm7854_vm0, %v7852_v0 }
 0x1d0   : > { %v781_v9 = vpop.f32.mrb[32].mxu0 }
 0x1d1   : > { %v8546_v10 = vadd.f32 %v8315_v15, %v781_v9  ;;  %v6764_v13 = vpop.f32.mrb[33].mxu0  ;;  %v8551_v12 = vpop.f32.mrb[36].mxu1 }
 0x1d2   : > { %v784_v17 = vpop.f32.mrb[34].mxu0  ;;  %v6920_v22 = vpop.f32.mrb[37].mxu1 }
 0x1d3   : > { %v8554_v24 = vadd.f32 %v8320_v18, %v784_v17  ;;  %v6765_v26 = vpop.f32.mrb[35].mxu0  ;;  %v8556_v28 = vpop.f32.mrb[38].mxu1 }
 0x1d4   : > { %v6921_v30 = vpop.f32.mrb[39].mxu1 }
 0x1d5   : > { %6979 = vmatmul.mubr.msk.bf16.gmra.mrb[140].mxu0 %vm649_vm1, %v7637_v16 }
 0x1d6   : > { %6982 = vmatprep.mubr.msk.bf16.mxu0 %vm7854_vm0, %v7852_v0 }
 0x1d8   : > { %v789_v15 = vpop.f32.mrb[36].mxu0 }
 0x1d9   : > { %v8562_v33 = vadd.f32 %v8333_v23, %v789_v15  ;;  %v6768_v35 = vpop.f32.mrb[37].mxu0  ;;  %v8567_v18 = vpop.f32.mrb[40].mxu1 }
 0x1da   : > { %v792_v39 = vpop.f32.mrb[38].mxu0  ;;  %v6924_v40 = vpop.f32.mrb[41].mxu1 }
 0x1db   : > { %v8570_v43 = vadd.f32 %v8344_v29, %v792_v39  ;;  %v6769_v44 = vpop.f32.mrb[39].mxu0  ;;  %v8572_v46 = vpop.f32.mrb[42].mxu1 }
 0x1dc   : > { %v6925_v48 = vpop.f32.mrb[43].mxu1 }
 0x1dd   : > { %6983 = vmatmul.mubr.msk.bf16.gmra.mrb[144].mxu0 %vm649_vm1, %v7638_v37  ;;  %v7641_v37 = vld [vmem:[%s9655_s1 + $0x1a0] ss:$0 sps:$4 sm:$0xff]  }
 0x1de   : > { %6986 = vmatprep.mubr.msk.bf16.mxu0 %vm7854_vm0, %v7852_v0 }
 0x1e0   : > { %v797_v23 = vpop.f32.mrb[40].mxu0 }
 0x1e1   : > { %v8578_v49 = vadd.f32 %v8357_v34, %v797_v23  ;;  %v6772_v52 = vpop.f32.mrb[41].mxu0  ;;  %v8583_v29 = vpop.f32.mrb[44].mxu1 }
 0x1e2   : > { %v800_v55 = vpop.f32.mrb[42].mxu0  ;;  %v6928_v56 = vpop.f32.mrb[45].mxu1 }
 0x1e3   : > { %v6773_v58 = vpop.f32.mrb[43].mxu0  ;;  %v8585_v59 = vpop.f32.mrb[46].mxu1 }
 0x1e4   : > { %v6929_v62 = vpop.f32.mrb[47].mxu1 }
 0x1e5   : > { %6987 = vmatmul.mubr.msk.bf16.gmra.mrb[148].mxu0 %vm649_vm1, %v7639_v53 }
 0x1e6   : > { %6990 = vmatprep.mubr.msk.bf16.mxu0 %vm7854_vm0, %v7852_v0 }
 0x1e8   : > { %v923_v34 = vpop.f32.mrb[44].mxu0 }
 0x1e9   : > { %v924_v1 = vadd.f32 %v923_v34, %v8443_v60  ;;  %v6788_v4 = vpop.f32.mrb[45].mxu0 }
 0x1ea   : > { %v926_v9 = vpop.f32.mrb[46].mxu0  ;;  %v8594_v13 = vpop.f32.mrb[48].mxu1 }
 0x1eb   : > { %v927_v16 = vadd.f32 %v926_v9, %v8448_v63  ;;  %v6789_v17 = vpop.f32.mrb[47].mxu0  ;;  %v6932_v22 = vpop.f32.mrb[49].mxu1 }
 0x1ec   : > { %v8597_v26 = vpop.f32.mrb[50].mxu1 }
 0x1ed   : > { %6991 = vmatmul.mubr.msk.bf16.gmra.mrb[152].mxu0 %vm649_vm1, %v7640_v8  ;;  %v6933_v30 = vpop.f32.mrb[51].mxu1 }
 0x1ee   : > { %6994 = vmatprep.mubr.msk.bf16.mxu0 %vm7854_vm0, %v7852_v0 }
 0x1f0   : > { %v931_v60 = vpop.f32.mrb[48].mxu0 }
 0x1f1   : > { %v932_v15 = vadd.f32 %v931_v60, %v8453_v2  ;;  %v6792_v35 = vpop.f32.mrb[49].mxu0 }
 0x1f2   : > { %v934_v39 = vpop.f32.mrb[50].mxu0  ;;  %v8606_v63 = vpop.f32.mrb[52].mxu1 }
 0x1f3   : > { %v935_v40 = vadd.f32 %v934_v39, %v8458_v5  ;;  %v6793_v44 = vpop.f32.mrb[51].mxu0  ;;  %v6936_v48 = vpop.f32.mrb[53].mxu1 }
 0x1f4   : > { %v8609_v23 = vpop.f32.mrb[54].mxu1 }
 0x1f5   : > { %6995 = vmatmul.mubr.msk.bf16.gmra.mrb[156].mxu0 %vm649_vm1, %v7641_v37  ;;  %v6937_v52 = vpop.f32.mrb[55].mxu1 }
 0x1f8   : > { %v939_v53 = vpop.f32.mrb[52].mxu0 }
 0x1f9   : > { %v940_v2 = vadd.f32 %v939_v53, %v8463_v7  ;;  %v6796_v55 = vpop.f32.mrb[53].mxu0 }
 0x1fa   : > { %v942_v56 = vpop.f32.mrb[54].mxu0  ;;  %v8613_v58 = vpop.f32.mrb[56].mxu1 }
 0x1fb   : > { %v943_v62 = vadd.f32 %v942_v56, %v8468_v11  ;;  %v6797_v34 = vpop.f32.mrb[55].mxu0  ;;  %v6940_v4 = vpop.f32.mrb[57].mxu1 }
 0x1fc   : > { %v1519_v8 = vpop.f32.mrb[58].mxu1 }
 0x1fd   : > { %v6941_v5 = vpop.f32.mrb[59].mxu1 }
 0x200   : > { %v947_v9 = vpop.f32.mrb[56].mxu0 }
 0x201   : > { %v948_v17 = vadd.f32 %v947_v9, %v8473_v14  ;;  %v6800_v22 = vpop.f32.mrb[57].mxu0 }
 0x202   : > { %v950_v30 = vpop.f32.mrb[58].mxu0 }
 0x203   : > { %v951_v60 = vadd.f32 %v950_v30, %v8480_v20  ;;  %v6801_v35 = vpop.f32.mrb[59].mxu0 }
 0x208   : > { %v955_v37 = vpop.f32.mrb[60].mxu0 }
 0x209   : > { %v956_v7 = vadd.f32 %v955_v37, %v8487_v27  ;;  %v6804_v39 = vpop.f32.mrb[61].mxu0 }
 0x20a   : > { %v958_v44 = vpop.f32.mrb[62].mxu0 }
 0x20b   : > { %v959_v48 = vadd.f32 %v958_v44, %v8494_v32  ;;  %v6805_v11 = vpop.f32.mrb[63].mxu0 }
 0x210   : > { %v963_v52 = vpop.f32.mrb[64].mxu0 }
 0x211   : > { %v964_v53 = vadd.f32 %v963_v52, %v8501_v38  ;;  %v6808_v55 = vpop.f32.mrb[65].mxu0 }
 0x212   : > { %v966_v56 = vpop.f32.mrb[66].mxu0 }
 0x213   : > { %v967_v14 = vadd.f32 %v966_v56, %v8508_v42  ;;  %v6809_v34 = vpop.f32.mrb[67].mxu0 }
 0x218   : > { %v971_v4 = vpop.f32.mrb[68].mxu0 }
 0x219   : > { %v972_v20 = vadd.f32 %v971_v4, %v8515_v47  ;;  %v6812_v8 = vpop.f32.mrb[69].mxu0 }
 0x21a   : > { %v974_v5 = vpop.f32.mrb[70].mxu0 }
 0x21b   : > { %v975_v27 = vadd.f32 %v974_v5, %v8522_v51  ;;  %v6813_v9 = vpop.f32.mrb[71].mxu0 }
 0x220   : > { %v1169_v22 = vpop.f32.mrb[72].mxu0 }
 0x221   : > { %v1255_v30 = vadd.f32 %v1169_v22, %v924_v1  ;;  %v6844_v32 = vpop.f32.mrb[73].mxu0 }
 0x222   : > { %v1172_v35 = vpop.f32.mrb[74].mxu0 }
 0x223   : > { %v1256_v37 = vadd.f32 %v1172_v35, %v927_v16  ;;  %v8625_v38 = vadd.f32 %v8478_v19, %v1255_v30  ;;  %v6845_v39 = vpop.f32.mrb[75].mxu0 }
 0x225   : > { %v8628_v42 = vadd.f32 %v8482_v25, %v1256_v37 }
 0x228   : > { %v1177_v44 = vpop.f32.mrb[76].mxu0 }
 0x229   : > { %v1257_v11 = vadd.f32 %v1177_v44, %v932_v15  ;;  %v6848_v47 = vpop.f32.mrb[77].mxu0 }
 0x22a   : > { %v1180_v52 = vpop.f32.mrb[78].mxu0 }
 0x22b   : > { %v1258_v55 = vadd.f32 %v1180_v52, %v935_v40  ;;  %v8631_v51 = vadd.f32 %v8492_v31, %v1257_v11  ;;  %v6849_v56 = vpop.f32.mrb[79].mxu0 }
 0x22d   : > { %v8634_v1 = vadd.f32 %v8496_v36, %v1258_v55 }
 0x230   : > { %v1185_v16 = vpop.f32.mrb[80].mxu0 }
 0x231   : > { %v1259_v34 = vadd.f32 %v1185_v16, %v940_v2  ;;  %v6852_v19 = vpop.f32.mrb[81].mxu0 }
 0x232   : > { %v1188_v4 = vpop.f32.mrb[82].mxu0 }
 0x233   : > { %v1260_v8 = vadd.f32 %v1188_v4, %v943_v62  ;;  %v8637_v25 = vadd.f32 %v8506_v41, %v1259_v34  ;;  %v6853_v5 = vpop.f32.mrb[83].mxu0 }
 0x235   : > { %v8640_v15 = vadd.f32 %v8510_v45, %v1260_v8 }
 0x238   : > { %v1193_v40 = vpop.f32.mrb[84].mxu0 }
 0x239   : > { %v1261_v9 = vadd.f32 %v1193_v40, %v948_v17  ;;  %v6856_v31 = vpop.f32.mrb[85].mxu0 }
 0x23a   : > { %v1196_v22 = vpop.f32.mrb[86].mxu0 }
 0x23b   : > { %v1262_v30 = vadd.f32 %v1196_v22, %v951_v60  ;;  %v8643_v36 = vadd.f32 %v8520_v50, %v1261_v9  ;;  %v6857_v32 = vpop.f32.mrb[87].mxu0 }
 0x23d   : > { %v8646_v2 = vadd.f32 %v8524_v54, %v1262_v30 }
 0x240   : > { %v1201_v62 = vpop.f32.mrb[88].mxu0 }
 0x241   : > { %v1263_v35 = vadd.f32 %v1201_v62, %v956_v7  ;;  %v6860_v41 = vpop.f32.mrb[89].mxu0 }
 0x242   : > { %v1204_v37 = vpop.f32.mrb[90].mxu0 }
 0x243   : > { %v1264_v39 = vadd.f32 %v1204_v37, %v959_v48  ;;  %v8649_v45 = vadd.f32 %v8535_v61, %v1263_v35  ;;  %v6861_v44 = vpop.f32.mrb[91].mxu0 }
 0x245   : > { %v8652_v17 = vadd.f32 %v8540_v6, %v1264_v39  ;;  %v7644_v6 = vld [vmem:[%s9657_s3 + $0x4] ss:$8 sps:$4 sm:$0xff]  }
 0x246   : > { %6003 = vmatprep.mubr.msk.bf16.mxu1 %vm2051_vm2, %v7644_v6 }
 0x248   : > { %v1209_v60 = vpop.f32.mrb[92].mxu0 }
 0x249   : > { %v1265_v11 = vadd.f32 %v1209_v60, %v964_v53  ;;  %v6864_v50 = vpop.f32.mrb[93].mxu0  ;;  %v1834_v60 = vpop.permute.xlu0 %1833 }
 0x24a   : > { %v1212_v47 = vpop.f32.mrb[94].mxu0 }
 0x24b   : > { %v1266_v52 = vadd.f32 %v1212_v47, %v967_v14  ;;  %v8655_v54 = vadd.f32 %v8551_v12, %v1265_v11  ;;  %v6865_v55 = vpop.f32.mrb[95].mxu0  ;;  %v1839_v47 = vpop.permute.xlu1 %1838 }
 0x24d   : > { %v8658_v7 = vadd.f32 %v8556_v28, %v1266_v52 }
 0x250   : > { %v1217_v48 = vpop.f32.mrb[96].mxu0 }
 0x251   : > { %v1267_v56 = vadd.f32 %v1217_v48, %v972_v20  ;;  %v6868_v61 = vpop.f32.mrb[97].mxu0 }
 0x252   : > { %v1220_v16 = vpop.f32.mrb[98].mxu0 }
 0x253   : > { %v1268_v53 = vadd.f32 %v1220_v16, %v975_v27  ;;  %v8664_v34 = vadd.f32 %v8567_v18, %v1267_v56  ;;  %v6869_v14 = vpop.f32.mrb[99].mxu0  ;;  %v1844_v16 = vpop.permute.xlu1 %1843 }
 0x254   : > { %v1849_v14 = vpop.permute.xlu0 %1848 }
 0x255   : > { %v8668_v12 = vadd.f32 %v8572_v46, %v1268_v53 }
 0x258   : > { %v1225_v28 = vpop.f32.mrb[100].mxu0 }
 0x259   : > { %v1269_v20 = vadd.f32 %v1225_v28, %v8530_v57  ;;  %v6872_v19 = vpop.f32.mrb[101].mxu0 }
 0x25a   : > { %v1228_v4 = vpop.f32.mrb[102].mxu0 }
 0x25b   : > { %v1270_v8 = vadd.f32 %v1228_v4, %v8538_v3  ;;  %v8673_v5 = vadd.f32 %v8583_v29, %v1269_v20  ;;  %v6873_v27 = vpop.f32.mrb[103].mxu0 }
 0x25d   : > { %v8676_v18 = vadd.f32 %v8585_v59, %v1270_v8 }
 0x260   : > { %v1233_v40 = vpop.f32.mrb[104].mxu0 }
 0x261   : > { %v1271_v9 = vadd.f32 %v1233_v40, %v8546_v10  ;;  %v6876_v31 = vpop.f32.mrb[105].mxu0 }
 0x262   : > { %v1236_v46 = vpop.f32.mrb[106].mxu0  ;;  %v1854_v31 = vpop.permute.xlu1 %1853 }
 0x263   : > { %v1272_v22 = vadd.f32 %v1236_v46, %v8554_v24  ;;  %v8681_v57 = vadd.f32 %v8594_v13, %v1271_v9  ;;  %v6877_v30 = vpop.f32.mrb[107].mxu0 }
 0x265   : > { %v8684_v3 = vadd.f32 %v8597_v26, %v1272_v22 }
 0x268   : > { %v1241_v29 = vpop.f32.mrb[108].mxu0 }
 0x269   : > { %v1273_v32 = vadd.f32 %v1241_v29, %v8562_v33  ;;  %v6880_v62 = vpop.f32.mrb[109].mxu0  ;;  %v1859_v29 = vpop.permute.xlu0 %1858 }
 0x26a   : > { %v1244_v59 = vpop.f32.mrb[110].mxu0 }
 0x26b   : > { %v1274_v35 = vadd.f32 %v1244_v59, %v8570_v43  ;;  %v8689_v10 = vadd.f32 %v8606_v63, %v1273_v32  ;;  %v6881_v41 = vpop.f32.mrb[111].mxu0 }
 0x26d   : > { %v8692_v24 = vadd.f32 %v8609_v23, %v1274_v35 }
 0x270   : > { %v1249_v13 = vpop.f32.mrb[112].mxu0 }
 0x271   : > { %v1275_v37 = vadd.f32 %v1249_v13, %v8578_v49  ;;  %v6884_v39 = vpop.f32.mrb[113].mxu0 }
 0x272   : > { %v1252_v26 = vpop.f32.mrb[114].mxu0 }
 0x273   : > { %v8696_v44 = vadd.f32 %v8613_v58, %v1275_v37  ;;  %v6885_v33 = vpop.f32.mrb[115].mxu0  ;;  %v1864_v37 = vpop.permute.xlu1 %1863 }
 0x278   : > { %v1703_v11 = vpop.f32.mrb[116].mxu0 }
 0x279   : > { %v1789_v43 = vadd.f32 %v1703_v11, %v8625_v38  ;;  %v6956_v50 = vpop.f32.mrb[117].mxu0 }
 0x27a   : > { %v1706_v63 = vpop.f32.mrb[118].mxu0 }
 0x27b   : > { %v1936_v52 = vadd.f32 %v1834_v60, %v1789_v43  ;;  %v1790_v23 = vadd.f32 %v1706_v63, %v8628_v42  ;;  %v6957_v55 = vpop.f32.mrb[119].mxu0  ;;  %v1869_v60 = vpop.permute.xlu0 %1868 }
 0x27d   : > { %v1937_v48 = vadd.f32 %v1839_v47, %v1790_v23  ;;  %v1957_v56 = vmax.f32 %v1936_v52, 0.0  ;;  %v1874_v23 = vpop.permute.xlu1 %1873 }
 0x27f   : > { %v1958_v49 = vmax.f32 %v1937_v48, 0.0 }
 0x280   : > { %v1711_v61 = vpop.f32.mrb[120].mxu0 }
 0x281   : > { %v8700_v6 = vpack.c.bf16 %v1958_v49, %v1957_v56  ;;  %v1791_v58 = vadd.f32 %v1711_v61, %v8631_v51  ;;  %v6960_v53 = vpop.f32.mrb[121].mxu0  ;;  %v1879_v49 = vpop.permute.xlu0 %1878 }
 0x282   : > { %v1714_v28 = vpop.f32.mrb[122].mxu0 }
 0x283   : > { %v1938_v38 = vadd.f32 %v1844_v16, %v1791_v58  ;;  %v1792_v20 = vadd.f32 %v1714_v28, %v8634_v1  ;;  %v6961_v19 = vpop.f32.mrb[123].mxu0  ;;  %2075 = vmatpush1.bf16.msra.mxu1 %v8700_v6 }
 0x284   : > { %2076 = vmatprep.subr.bf16.mxu1 %v7858_v21 }
 0x285   : > { %v1939_v42 = vadd.f32 %v1849_v14, %v1792_v20  ;;  %v1959_v4 = vmax.f32 %v1938_v38, 0.0  ;;  %v1884_v38 = vpop.permute.xlu1 %1883 }
 0x287   : > { %v1960_v8 = vmax.f32 %v1939_v42, 0.0 }
 0x288   : > { %v1719_v27 = vpop.f32.mrb[124].mxu0 }
 0x289   : > { %v8706_v40 = vpack.c.bf16 %v1960_v8, %v1959_v4  ;;  %v1793_v9 = vadd.f32 %v1719_v27, %v8637_v25  ;;  %v6964_v51 = vpop.f32.mrb[125].mxu0  ;;  %v1889_v4 = vpop.permute.xlu0 %1888 }
 0x28a   : > { %v1722_v46 = vpop.f32.mrb[126].mxu0 }
 0x28b   : > { %v1940_v22 = vadd.f32 %v1854_v31, %v1793_v9  ;;  %v1794_v30 = vadd.f32 %v1722_v46, %v8640_v15  ;;  %v6965_v1 = vpop.f32.mrb[127].mxu0  ;;  %2077 = vmatpush1.bf16.msra.mxu1 %v8706_v40 }
 0x28c   : > { %2078 = vmatprep.subr.bf16.mxu1 %v7858_v21 }
 0x28d   : > { %v1941_v32 = vadd.f32 %v1859_v29, %v1794_v30  ;;  %v1961_v62 = vmax.f32 %v1940_v22, 0.0  ;;  %v1894_v22 = vpop.permute.xlu1 %1893 }
 0x28f   : > { %v1962_v59 = vmax.f32 %v1941_v32, 0.0  ;;  %v1899_v32 = vpop.permute.xlu0 %1898 }
 0x290   : > { %v1727_v35 = vpop.f32.mrb[128].mxu0 }
 0x291   : > { %v8712_v41 = vpack.c.bf16 %v1962_v59, %v1961_v62  ;;  %v1795_v25 = vadd.f32 %v1727_v35, %v8643_v36  ;;  %v6968_v13 = vpop.f32.mrb[129].mxu0  ;;  %v7676_v59 = vld [vmem:[%s9658_s4] sm:$0xff]  }
 0x292   : > { %v1730_v39 = vpop.f32.mrb[130].mxu0  ;;  %6998 = vmatprep.subr.bf16.mxu0 %v7676_v59 }
 0x293   : > { %v1942_v26 = vadd.f32 %v1864_v37, %v1795_v25  ;;  %v1796_v15 = vadd.f32 %v1730_v39, %v8646_v2  ;;  %v6969_v33 = vpop.f32.mrb[131].mxu0  ;;  %2079 = vmatpush1.bf16.msra.mxu1 %v8712_v41  ;;  %6999 = vmatpush3.bf16.msra.mxu0 %v7676_v59  ;;  %v1904_v39 = vpop.permute.xlu1 %1903  ;;  %v7648_v59 = vld [vmem:[%s9657_s3 + $0x24] ss:$8 sps:$4 sm:$0xff]  }
 0x294   : > { %2080 = vmatprep.subr.bf16.mxu1 %v7858_v21 }
 0x295   : > { %v1943_v11 = vadd.f32 %v1869_v60, %v1796_v15  ;;  %v1963_v43 = vmax.f32 %v1942_v26, 0.0 }
 0x297   : > { %v1964_v50 = vmax.f32 %v1943_v11, 0.0  ;;  %v1909_v11 = vpop.permute.xlu0 %1908 }
 0x298   : > { %v1735_v63 = vpop.f32.mrb[132].mxu0 }
 0x299   : > { %v8718_v47 = vpack.c.bf16 %v1964_v50, %v1963_v43  ;;  %v1797_v36 = vadd.f32 %v1735_v63, %v8649_v45  ;;  %v6972_v52 = vpop.f32.mrb[133].mxu0 }
 0x29a   : > { %v1738_v55 = vpop.f32.mrb[134].mxu0 }
 0x29b   : > { %v1944_v48 = vadd.f32 %v1874_v23, %v1797_v36  ;;  %v1798_v2 = vadd.f32 %v1738_v55, %v8652_v17  ;;  %v6973_v56 = vpop.f32.mrb[135].mxu0  ;;  %2081 = vmatpush1.bf16.msra.mxu1 %v8718_v47  ;;  %v1914_v55 = vpop.permute.xlu1 %1913 }
 0x29c   : > { %2082 = vmatprep.subr.bf16.mxu1 %v7858_v21 }
 0x29d   : > { %v1945_v61 = vadd.f32 %v1879_v49, %v1798_v2  ;;  %v1965_v16 = vmax.f32 %v1944_v48, 0.0  ;;  %v1919_v49 = vpop.permute.xlu0 %1918 }
 0x29f   : > { %v1966_v58 = vmax.f32 %v1945_v61, 0.0 }
 0x2a0   : > { %v1743_v53 = vpop.f32.mrb[136].mxu0 }
 0x2a1   : > { %v8724_v14 = vpack.c.bf16 %v1966_v58, %v1965_v16  ;;  %v1799_v45 = vadd.f32 %v1743_v53, %v8655_v54  ;;  %v6976_v28 = vpop.f32.mrb[137].mxu0 }
 0x2a2   : > { %v1746_v20 = vpop.f32.mrb[138].mxu0 }
 0x2a3   : > { %v1946_v19 = vadd.f32 %v1884_v38, %v1799_v45  ;;  %v1800_v17 = vadd.f32 %v1746_v20, %v8658_v7  ;;  %v6977_v42 = vpop.f32.mrb[139].mxu0  ;;  %2083 = vmatpush1.bf16.msra.mxu1 %v8724_v14  ;;  %v1924_v38 = vpop.permute.xlu1 %1923 }
 0x2a4   : > { %2084 = vmatprep.subr.bf16.mxu1 %v7858_v21  ;;  %v1929_v42 = vpop.permute.xlu0 %1928 }
 0x2a5   : > { %v1947_v8 = vadd.f32 %v1889_v4, %v1800_v17  ;;  %v1967_v27 = vmax.f32 %v1946_v19, 0.0 }
 0x2a7   : > { %v1968_v9 = vmax.f32 %v1947_v8, 0.0 }
 0x2a8   : > { %v1751_v51 = vpop.f32.mrb[140].mxu0 }
 0x2a9   : > { %v8730_v31 = vpack.c.bf16 %v1968_v9, %v1967_v27  ;;  %v1801_v54 = vadd.f32 %v1751_v51, %v8664_v34  ;;  %v6980_v46 = vpop.f32.mrb[141].mxu0 }
 0x2aa   : > { %v1754_v30 = vpop.f32.mrb[142].mxu0  ;;  %v1934_v46 = vpop.permute.xlu1 %1933 }
 0x2ab   : > { %v1948_v1 = vadd.f32 %v1894_v22, %v1801_v54  ;;  %v1802_v7 = vadd.f32 %v1754_v30, %v8668_v12  ;;  %v6981_v29 = vpop.f32.mrb[143].mxu0  ;;  %2085 = vmatpush1.bf16.msra.mxu1 %v8730_v31 }
 0x2ac   : > { %2086 = vmatprep.subr.bf16.mxu1 %v7858_v21 }
 0x2ad   : > { %v1949_v62 = vadd.f32 %v1899_v32, %v1802_v7  ;;  %v1969_v35 = vmax.f32 %v1948_v1, 0.0  ;;  %v7642_v32 = vld [vmem:[%s9657_s3] ss:$8 sps:$4 sm:$0xff]  }
 0x2af   : > { %v1970_v25 = vmax.f32 %v1949_v62, 0.0  ;;  %v7647_v62 = vld [vmem:[%s9657_s3 + $0x10] ss:$8 sps:$4 sm:$0xff]  }
 0x2b0   : > { %v1759_v34 = vpop.f32.mrb[144].mxu0 }
 0x2b1   : > { %v8739_v13 = vpack.c.bf16 %v1970_v25, %v1969_v35  ;;  %v1803_v12 = vadd.f32 %v1759_v34, %v8673_v5  ;;  %v6984_v37 = vpop.f32.mrb[145].mxu0  ;;  %v7661_v34 = vld [vmem:[%s9657_s3 + $0x5c] ss:$8 sps:$4 sm:$0xff]  }
 0x2b2   : > { %v1762_v26 = vpop.f32.mrb[146].mxu0  ;;  %v7664_v37 = vld [vmem:[%s9657_s3 + $0x68] ss:$8 sps:$4 sm:$0xff]  }
 0x2b3   : > { %v1950_v15 = vadd.f32 %v1904_v39, %v1803_v12  ;;  %v1804_v33 = vadd.f32 %v1762_v26, %v8676_v18  ;;  %v6985_v60 = vpop.f32.mrb[147].mxu0  ;;  %2087 = vmatpush1.bf16.msra.mxu1 %v8739_v13  ;;  %v7662_v12 = vld [vmem:[%s9657_s3 + $0x6c] ss:$8 sps:$4 sm:$0xff]   ;;  %v7665_v39 = vld [vmem:[%s9657_s3 + $0x7c] ss:$8 sps:$4 sm:$0xff]  }
 0x2b4   : > { %2088 = vmatprep.subr.bf16.mxu1 %v7858_v21  ;;  %v7667_v26 = vld [vmem:[%s9657_s3 + $0x78] ss:$8 sps:$4 sm:$0xff]   ;;  %v7671_v60 = vld [vmem:[%s9657_s3 + $0x9c] ss:$8 sps:$4 sm:$0xff]  }
 0x2b5   : > { %v1951_v43 = vadd.f32 %v1909_v11, %v1804_v33  ;;  %v1971_v50 = vmax.f32 %v1950_v15, 0.0  ;;  %v7668_v15 = vld [vmem:[%s9657_s3 + $0x8c] ss:$8 sps:$4 sm:$0xff]   ;;  %v7670_v33 = vld [vmem:[%s9657_s3 + $0x88] ss:$8 sps:$4 sm:$0xff]  }
 0x2b6   : > { %v6019_v11 = vld [vmem:[%s9657_s3 + $0xa8] sm:$0x33] }
 0x2b7   : > { %v1972_v63 = vmax.f32 %v1951_v43, 0.0  ;;  %v7673_v43 = vld [vmem:[%s9657_s3 + $0x98] ss:$8 sps:$4 sm:$0xff]  }
 0x2b8   : > { %v1767_v36 = vpop.f32.mrb[148].mxu0 }
 0x2b9   : > { %v8745_v52 = vpack.c.bf16 %v1972_v63, %v1971_v50  ;;  %v1805_v5 = vadd.f32 %v1767_v36, %v8681_v57  ;;  %v6988_v23 = vpop.f32.mrb[149].mxu0  ;;  %v6031_v50 = vcombine.high %v6019_v11, %v6019_v11  ;;  %v6030_v63 = vcombine.low %v6019_v11, %v6019_v11  ;;  %v7677_v36 = vld [vmem:[%s9658_s4 + $0x10] sm:$0xff]  }
 0x2ba   : > { %v1770_v48 = vpop.f32.mrb[150].mxu0  ;;  %v7679_v23 = vld [vmem:[%s9658_s4 + $0x18] sm:$0x3f]  }
 0x2bb   : > { %v1952_v2 = vadd.f32 %v1914_v55, %v1805_v5  ;;  %v1806_v18 = vadd.f32 %v1770_v48, %v8684_v3  ;;  %v6989_v56 = vpop.f32.mrb[151].mxu0  ;;  %2089 = vmatpush1.bf16.msra.mxu1 %v8745_v52  ;;  %v2467_v55 = vsel %vm2366_vm4, %v7679_v23, 0 }
 0x2bc   : > { %2090 = vmatprep.subr.bf16.mxu1 %v7858_v21 }
 0x2bd   : > { %v1953_v61 = vadd.f32 %v1919_v49, %v1806_v18  ;;  %v1973_v16 = vmax.f32 %v1952_v2, 0.0 }
 0x2bf   : > { %v1974_v58 = vmax.f32 %v1953_v61, 0.0 }
 0x2c0   : > { %v1775_v53 = vpop.f32.mrb[152].mxu0 }
 0x2c1   : > { %v8751_v45 = vpack.c.bf16 %v1974_v58, %v1973_v16  ;;  %v1807_v57 = vadd.f32 %v1775_v53, %v8689_v10  ;;  %v6992_v28 = vpop.f32.mrb[153].mxu0 }
 0x2c2   : > { %v1778_v20 = vpop.f32.mrb[154].mxu0 }
 0x2c3   : > { %v1954_v19 = vadd.f32 %v1924_v38, %v1807_v57  ;;  %v1808_v3 = vadd.f32 %v1778_v20, %v8692_v24  ;;  %v6993_v17 = vpop.f32.mrb[155].mxu0  ;;  %2091 = vmatpush1.bf16.msra.mxu1 %v8751_v45 }
 0x2c4   : > { %2092 = vmatprep.subr.bf16.mxu1 %v7858_v21 }
 0x2c5   : > { %v1955_v4 = vadd.f32 %v1929_v42, %v1808_v3  ;;  %v1975_v8 = vmax.f32 %v1954_v19, 0.0 }
 0x2c7   : > { %v1976_v27 = vmax.f32 %v1955_v4, 0.0 }
 0x2c8   : > { %v1783_v9 = vpop.f32.mrb[156].mxu0 }
 0x2c9   : > { %v1987_v51 = vpack.c.bf16 %v1976_v27, %v1975_v8  ;;  %v1809_v54 = vadd.f32 %v1783_v9, %v8696_v44  ;;  %v6996_v10 = vpop.f32.mrb[157].mxu0  ;;  %v7645_v44 = vld [vmem:[%s9657_s3 + $0x14] ss:$8 sps:$4 sm:$0xff]  }
 0x2ca   : > { %v1786_v22 = vpop.f32.mrb[158].mxu0 }
 0x2cb   : > { %v1956_v30 = vadd.f32 %v1934_v46, %v1809_v54  ;;  %v6997_v1 = vpop.f32.mrb[159].mxu0  ;;  %2093 = vmatpush1.bf16.msra.mxu1 %v1987_v51 }
 0x2cc   : > { %2094 = vmatprep.subr.bf16.mxu1 %v7858_v21 }
 0x2cd   : > { %v1977_v24 = vmax.f32 %v1956_v30, 0.0 }
 0x2cf   : > { %v1988_v7 = vpack.c.bf16 %v1977_v24, %v1977_v24 }
 0x2d1   : > { %v2072_v29 = vsel %vm2070_vm3, %v1988_v7, 0 }
 0x2d2   : > { %2095 = vmatpush1.bf16.msra.mxu1 %v2072_v29 }
 0x2d3   : > { %2235 = vmatprep.subr.bf16.mxu1 %v7858_v21 }
 0x2d5   : > { %2107 = vmatmul.mubr.bf16.vlgmr.msra.gmra.mrb[60].mxu1 %v7642_v32 }
 0x2d6   : > { %2236 = vmatpush1.bf16.msra.mxu1 %v8700_v6  ;;  %6004 = vmatprep.mubr.msk.bf16.mxu1 %vm2051_vm2, %v7645_v44  ;;  %v7650_v6 = vld [vmem:[%s9657_s3 + $0x20] ss:$8 sps:$4 sm:$0xff]  }
 0x2d7   : > { %2237 = vmatprep.subr.bf16.mxu1 %v7858_v21 }
 0x2da   : > { %2238 = vmatpush1.bf16.msra.mxu1 %v8706_v40  ;;  %v7651_v40 = vld [vmem:[%s9657_s3 + $0x34] ss:$8 sps:$4 sm:$0xff]  }
 0x2db   : > { %2239 = vmatprep.subr.bf16.mxu1 %v7858_v21 }
 0x2dd   : > { %2115 = vmatmul.mubr.bf16.gmra.mrb[64].mxu1 %v7647_v62 }
 0x2de   : > { %2240 = vmatpush1.bf16.msra.mxu1 %v8712_v41  ;;  %6005 = vmatprep.mubr.msk.bf16.mxu1 %vm2051_vm2, %v7648_v59  ;;  %v7653_v41 = vld [vmem:[%s9657_s3 + $0x30] ss:$8 sps:$4 sm:$0xff]  }
 0x2df   : > { %2241 = vmatprep.subr.bf16.mxu1 %v7858_v21 }
 0x2e2   : > { %2242 = vmatpush1.bf16.msra.mxu1 %v8718_v47  ;;  %v7654_v47 = vld [vmem:[%s9657_s3 + $0x44] ss:$8 sps:$4 sm:$0xff]  }
 0x2e3   : > { %2243 = vmatprep.subr.bf16.mxu1 %v7858_v21 }
 0x2e5   : > { %2123 = vmatmul.mubr.bf16.gmra.mrb[68].mxu1 %v7650_v6 }
 0x2e6   : > { %2244 = vmatpush1.bf16.msra.mxu1 %v8724_v14  ;;  %6006 = vmatprep.mubr.msk.bf16.mxu1 %vm2051_vm2, %v7651_v40  ;;  %v1999_v14 = vld [vmem:[%s9657_s3 + $0x50] sm:$0x33] }
 0x2e7   : > { %2245 = vmatprep.subr.bf16.mxu1 %v7858_v21  ;;  %v6002_v35 = vcombine.high %v1999_v14, %v1999_v14  ;;  %v6001_v25 = vcombine.low %v1999_v14, %v1999_v14 }
 0x2ea   : > { %2246 = vmatpush1.bf16.msra.mxu1 %v8730_v31  ;;  %v7656_v31 = vld [vmem:[%s9657_s3 + $0x40] ss:$8 sps:$4 sm:$0xff]  }
 0x2eb   : > { %2247 = vmatprep.subr.bf16.mxu1 %v7858_v21 }
 0x2ed   : > { %2131 = vmatmul.mubr.bf16.gmra.mrb[72].mxu1 %v7653_v41 }
 0x2ee   : > { %2248 = vmatpush1.bf16.msra.mxu1 %v8739_v13  ;;  %6007 = vmatprep.mubr.msk.bf16.mxu1 %vm2051_vm2, %v7654_v47  ;;  %v7659_v13 = vld [vmem:[%s9657_s3 + $0x58] ss:$8 sps:$4 sm:$0xff]  }
 0x2ef   : > { %2249 = vmatprep.subr.bf16.mxu1 %v7858_v21 }
 0x2f2   : > { %2250 = vmatpush1.bf16.msra.mxu1 %v8745_v52  ;;  %v7678_v52 = vld [vmem:[%s9658_s4 + $0x8] sm:$0x3f]  }
 0x2f3   : > { %2251 = vmatprep.subr.bf16.mxu1 %v7858_v21  ;;  %7548 = vmatprep.subr.msk.bf16.mxu0 %vm2366_vm4, %v7678_v52  ;;  %v2368_v5 = vsel %vm2366_vm4, %v7678_v52, 0 }
 0x2f4   : > { %7001 = vmatpush3.bf16.msra.mxu0 %v2368_v5 }
 0x2f5   : > { %2139 = vmatmul.mubr.bf16.gmra.mrb[76].mxu1 %v7656_v31 }
 0x2f6   : > { %2252 = vmatpush1.bf16.msra.mxu1 %v8751_v45  ;;  %6008 = vmatprep.mubr.msk.bf16.mxu1 %vm2051_vm2, %v6002_v35 }
 0x2f7   : > { %2253 = vmatprep.subr.bf16.mxu1 %v7858_v21 }
 0x2fa   : > { %2254 = vmatpush1.bf16.msra.mxu1 %v1987_v51 }
 0x2fb   : > { %2255 = vmatprep.subr.bf16.mxu1 %v7858_v21 }
 0x2fd   : > { %2147 = vmatmul.mubr.bf16.gmra.mrb[80].mxu1 %v6001_v25 }
 0x2fe   : > { %2256 = vmatpush1.bf16.msra.mxu1 %v2072_v29  ;;  %6032 = vmatprep.mubr.msk.bf16.mxu1 %vm2051_vm2, %v7661_v34 }
 0x2ff   : > { %7014 = vmatprep.subr.bf16.mxu1 %v7677_v36 }
 0x305   : > { %2268 = vmatmul.mubr.bf16.vlgmr.msra.gmra.mrb[84].mxu1 %v7659_v13 }
 0x306   : > { %6033 = vmatprep.mubr.msk.bf16.mxu1 %vm2051_vm2, %v7662_v12  ;;  %7015 = vmatpush3.bf16.msra.mxu1 %v7677_v36 }
 0x307   : > { %7549 = vmatprep.subr.msk.bf16.mxu1 %vm2366_vm4, %v7679_v23 }
 0x30a   : > { %7017 = vmatpush3.bf16.msra.mxu1 %v2467_v55 }
 0x30b   : > { %4027 = vmatprep.subr.bf16.mxu1 %v7858_v21 }
 0x30d   : > { %2276 = vmatmul.mubr.bf16.gmra.mrb[88].mxu1 %v7664_v37 }
 0x30e   : > { %6034 = vmatprep.mubr.msk.bf16.mxu1 %vm2051_vm2, %v7665_v39 }
 0x315   : > { %2284 = vmatmul.mubr.bf16.gmra.mrb[92].mxu1 %v7667_v26 }
 0x316   : > { %6035 = vmatprep.mubr.msk.bf16.mxu1 %vm2051_vm2, %v7668_v15 }
 0x31d   : > { %2292 = vmatmul.mubr.bf16.gmra.mrb[96].mxu1 %v7670_v33 }
 0x31e   : > { %6036 = vmatprep.mubr.msk.bf16.mxu1 %vm2051_vm2, %v7671_v60 }
 0x325   : > { %2300 = vmatmul.mubr.bf16.gmra.mrb[100].mxu1 %v7673_v43 }
 0x326   : > { %6037 = vmatprep.mubr.msk.bf16.mxu1 %vm2051_vm2, %v6031_v50 }
 0x32d   : > { %2308 = vmatmul.mubr.bf16.gmra.mrb[104].mxu1 %v6030_v63 }
 0x3a8   : > { %v2108_v48 = vpop.f32.mrb[60].mxu1 }
 0x3a9   : > { %v2110_v2 = vpop.f32.mrb[61].mxu1 }
 0x3aa   : > { %v2111_v18 = vpop.f32.mrb[62].mxu1 }
 0x3ab   : > { %v2113_v56 = vpop.f32.mrb[63].mxu1 }
 0x3b0   : > { %v2116_v49 = vpop.f32.mrb[64].mxu1 }
 0x3b1   : > { %v2118_v61 = vpop.f32.mrb[65].mxu1 }
 0x3b2   : > { %v2119_v16 = vpop.f32.mrb[66].mxu1 }
 0x3b3   : > { %v2121_v58 = vpop.f32.mrb[67].mxu1 }
 0x3b8   : > { %v2124_v53 = vpop.f32.mrb[68].mxu1 }
 0x3b9   : > { %v2126_v45 = vpop.f32.mrb[69].mxu1 }
 0x3ba   : > { %v2127_v57 = vpop.f32.mrb[70].mxu1 }
 0x3bb   : > { %v2129_v28 = vpop.f32.mrb[71].mxu1 }
 0x3c0   : > { %v2132_v38 = vpop.f32.mrb[72].mxu1 }
 0x3c1   : > { %v2134_v20 = vpop.f32.mrb[73].mxu1 }
 0x3c2   : > { %v2135_v19 = vpop.f32.mrb[74].mxu1 }
 0x3c3   : > { %v2137_v3 = vpop.f32.mrb[75].mxu1 }
 0x3c8   : > { %v2140_v17 = vpop.f32.mrb[76].mxu1 }
 0x3c9   : > { %v2142_v42 = vpop.f32.mrb[77].mxu1 }
 0x3ca   : > { %v2143_v4 = vpop.f32.mrb[78].mxu1 }
 0x3cb   : > { %v2145_v8 = vpop.f32.mrb[79].mxu1 }
 0x3d0   : > { %v2148_v27 = vpop.f32.mrb[80].mxu1 }
 0x3d1   : > { %v2150_v9 = vpop.f32.mrb[81].mxu1 }
 0x3d2   : > { %v2151_v51 = vpop.f32.mrb[82].mxu1 }
 0x3d3   : > { %v2152_v54 = vpop.f32.mrb[83].mxu1 }
 0x3d8   : > { %v2269_v10 = vpop.f32.mrb[84].mxu1 }
 0x3d9   : > { %v2315_v46 = vmax.f32 %v2108_v48, %v2269_v10  ;;  %v2271_v22 = vpop.f32.mrb[85].mxu1 }
 0x3da   : > { %v2272_v30 = vpop.f32.mrb[86].mxu1 }
 0x3db   : > { %v2316_v1 = vmax.f32 %v2111_v18, %v2272_v30  ;;  %v2274_v24 = vpop.f32.mrb[87].mxu1 }
 0x3dd   : > { %v2326_v7 = vpack.c.bf16 %v2316_v1, %v2315_v46 }
 0x3df   : > { %7002 = vmatprep.mubr.msk.bf16.mxu0 %vm2347_vm5, %v2326_v7  ;;  %7018 = vmatprep.mubr.msk.bf16.mxu1 %vm2347_vm5, %v2326_v7 }
 0x3e0   : > { %v2277_v29 = vpop.f32.mrb[88].mxu1 }
 0x3e1   : > { %v2317_v32 = vmax.f32 %v2116_v49, %v2277_v29  ;;  %v2279_v44 = vpop.f32.mrb[89].mxu1 }
 0x3e2   : > { %v2280_v62 = vpop.f32.mrb[90].mxu1  ;;  %v7680_v44 = vld [vmem:[%s9659_s5 + $0x50] sm:$0xff]  }
 0x3e3   : > { %v2318_v59 = vmax.f32 %v2119_v16, %v2280_v62  ;;  %v2282_v6 = vpop.f32.mrb[91].mxu1 }
 0x3e5   : > { %v2327_v40 = vpack.c.bf16 %v2318_v59, %v2317_v32 }
 0x3e7   : > { %7003 = vmatmul.mubr.msk.bf16.vlgmr.msra.gmra.mrb[160].mxu0 %vm2347_vm5, %v2327_v40  ;;  %7019 = vmatmul.mubr.msk.bf16.vlgmr.msra.gmra.mrb[108].mxu1 %vm2347_vm5, %v2327_v40 }
 0x3e8   : > { %v2285_v41 = vpop.f32.mrb[92].mxu1 }
 0x3e9   : > { %v2319_v47 = vmax.f32 %v2124_v53, %v2285_v41  ;;  %v2287_v14 = vpop.f32.mrb[93].mxu1 }
 0x3ea   : > { %v2288_v31 = vpop.f32.mrb[94].mxu1 }
 0x3eb   : > { %v2320_v35 = vmax.f32 %v2127_v57, %v2288_v31  ;;  %v2290_v25 = vpop.f32.mrb[95].mxu1 }
 0x3ed   : > { %v2328_v34 = vpack.c.bf16 %v2320_v35, %v2319_v47 }
 0x3ef   : > { %7006 = vmatprep.mubr.msk.bf16.mxu0 %vm2347_vm5, %v2328_v34  ;;  %7022 = vmatprep.mubr.msk.bf16.mxu1 %vm2347_vm5, %v2328_v34 }
 0x3f0   : > { %v2293_v13 = vpop.f32.mrb[96].mxu1 }
 0x3f1   : > { %v2321_v12 = vmax.f32 %v2132_v38, %v2293_v13  ;;  %v2295_v37 = vpop.f32.mrb[97].mxu1  ;;  %v3787_v13 = vld [vmem:[%s9660_s6 + $0x8] sm:$0xff] }
 0x3f2   : > { %v2296_v39 = vpop.f32.mrb[98].mxu1  ;;  %v3789_v37 = vld [vmem:[%s9660_s6 + $0x18] sm:$0xff] }
 0x3f3   : > { %v2322_v26 = vmax.f32 %v2135_v19, %v2296_v39  ;;  %v2298_v15 = vpop.f32.mrb[99].mxu1  ;;  %v3788_v39 = vld [vmem:[%s9660_s6 + $0x10] sm:$0xff] }
 0x3f4   : > { %v3790_v15 = vld [vmem:[%s9660_s6 + $0x20] sm:$0xff] }
 0x3f5   : > { %v2329_v33 = vpack.c.bf16 %v2322_v26, %v2321_v12  ;;  %v3786_v12 = vld [vmem:[%s9660_s6] sm:$0xff]  ;;  %v3791_v26 = vld [vmem:[%s9660_s6 + $0x28] sm:$0xff] }
 0x3f7   : > { %7007 = vmatmul.mubr.msk.bf16.gmra.mrb[164].mxu0 %vm2347_vm5, %v2329_v33  ;;  %7023 = vmatmul.mubr.msk.bf16.gmra.mrb[112].mxu1 %vm2347_vm5, %v2329_v33  ;;  %v3793_v33 = vld [vmem:[%s9660_s6 + $0x38] sm:$0xff] }
 0x3f8   : > { %v2301_v60 = vpop.f32.mrb[100].mxu1 }
 0x3f9   : > { %v2323_v11 = vmax.f32 %v2140_v17, %v2301_v60  ;;  %v2303_v43 = vpop.f32.mrb[101].mxu1  ;;  %v3792_v60 = vld [vmem:[%s9660_s6 + $0x30] sm:$0xff] }
 0x3fa   : > { %v2304_v50 = vpop.f32.mrb[102].mxu1  ;;  %v3794_v43 = vld [vmem:[%s9660_s6 + $0x40] sm:$0xff] }
 0x3fb   : > { %v2324_v63 = vmax.f32 %v2143_v4, %v2304_v50  ;;  %v2306_v36 = vpop.f32.mrb[103].mxu1  ;;  %v3797_v50 = vld [vmem:[%s9660_s6 + $0x58] sm:$0xff] }
 0x3fc   : > { %v3799_v36 = vld [vmem:[%s9660_s6 + $0x68] sm:$0xff] }
 0x3fd   : > { %v2330_v52 = vpack.c.bf16 %v2324_v63, %v2323_v11  ;;  %v3795_v11 = vld [vmem:[%s9660_s6 + $0x48] sm:$0xff]  ;;  %v3796_v63 = vld [vmem:[%s9660_s6 + $0x50] sm:$0xff] }
 0x3ff   : > { %7010 = vmatprep.mubr.msk.bf16.mxu0 %vm2347_vm5, %v2330_v52  ;;  %7026 = vmatprep.mubr.msk.bf16.mxu1 %vm2347_vm5, %v2330_v52  ;;  %v3798_v52 = vld [vmem:[%s9660_s6 + $0x60] sm:$0xff] }
 0x400   : > { %v2309_v5 = vpop.f32.mrb[104].mxu1 }
 0x401   : > { %v2325_v23 = vmax.f32 %v2148_v27, %v2309_v5  ;;  %v2311_v55 = vpop.f32.mrb[105].mxu1  ;;  %v3801_v5 = vld [vmem:[%s9660_s6 + $0x78] sm:$0xff] }
 0x402   : > { %v2312_v48 = vpop.f32.mrb[106].mxu1  ;;  %v3803_v55 = vld [vmem:[%s9660_s6 + $0x88] sm:$0xff] }
 0x403   : > { %v2331_v2 = vpack.c.bf16 %v2325_v23, %v2325_v23  ;;  %v2313_v18 = vpop.f32.mrb[107].mxu1  ;;  %v3800_v23 = vld [vmem:[%s9660_s6 + $0x70] sm:$0xff]  ;;  %v3802_v48 = vld [vmem:[%s9660_s6 + $0x80] sm:$0xff] }
 0x404   : > { %v3804_v18 = vld [vmem:[%s9660_s6 + $0x90] sm:$0xff] }
 0x405   : > { %7011 = vmatmul.mubr.msk.bf16.gmra.mrb[168].mxu0 %vm2347_vm5, %v2331_v2  ;;  %7027 = vmatmul.mubr.msk.bf16.gmra.mrb[116].mxu1 %vm2347_vm5, %v2331_v2  ;;  %v3805_v2 = vld [vmem:[%s9660_s6 + $0x98] sm:$0xff] }
 0x406   : > { %7042 = vmatprep.mubr.msk.bf16.mxu0 %vm2680_vm6, %v7680_v44 }
 0x4ba   : > { %v7004_v56 = vpop.f32.mrb[160].mxu0  ;;  %v7020_v49 = vpop.f32.mrb[108].mxu1 }
 0x4bb   : > { %v2551_v61 = vmax.f32 %v7004_v56, %v7020_v49  ;;  %v2404_v16 = vpop.f32.mrb[161].mxu0  ;;  %v2503_v58 = vpop.f32.mrb[109].mxu1 }
 0x4bc   : > { %v2549_v53 = vmax.f32 %v2404_v16, %v2503_v58  ;;  %v7005_v45 = vpop.f32.mrb[162].mxu0  ;;  %v7021_v57 = vpop.f32.mrb[110].mxu1 }
 0x4bd   : > { %v2552_v28 = vmax.f32 %v7005_v45, %v7021_v57  ;;  %v2407_v38 = vpop.f32.mrb[163].mxu0  ;;  %v2506_v20 = vpop.f32.mrb[111].mxu1  ;;  %v7681_v57 = vld [vmem:[%s9659_s5 + $0x58] sm:$0xff]  }
 0x4be   : > { %v2550_v19 = vmax.f32 %v2407_v38, %v2506_v20  ;;  %v7683_v38 = vld [vmem:[%s9659_s5 + $0x68] sm:$0xff]   ;;  %v7684_v20 = vld [vmem:[%s9659_s5 + $0x70] sm:$0xff]  }
 0x4bf   : > { %v8876_v3 = vpack.c.bf16 %v2552_v28, %v2551_v61  ;;  %v7682_v28 = vld [vmem:[%s9659_s5 + $0x60] sm:$0xff]  }
 0x4c0   : > { %v8878_v17 = vpack.c.bf16 %v2550_v19, %v2549_v53  ;;  %v7685_v19 = vld [vmem:[%s9659_s5 + $0x78] sm:$0xff]  }
 0x4c1   : > { %2665 = vrot.lane.b32.xlu1 %v8876_v3, %s7853_s27 }
 0x4c2   : > { %2663 = vrot.lane.b32.xlu0 %v8878_v17, %s7853_s27 }
 0x4ca   : > { %v7008_v42 = vpop.f32.mrb[164].mxu0  ;;  %v7024_v4 = vpop.f32.mrb[112].mxu1 }
 0x4cb   : > { %v2555_v8 = vmax.f32 %v7008_v42, %v7024_v4  ;;  %v2420_v27 = vpop.f32.mrb[165].mxu0  ;;  %v2519_v9 = vpop.f32.mrb[113].mxu1  ;;  %v7687_v42 = vld [vmem:[%s9659_s5 + $0x88] sm:$0xff]  }
 0x4cc   : > { %v2553_v51 = vmax.f32 %v2420_v27, %v2519_v9  ;;  %v7009_v54 = vpop.f32.mrb[166].mxu0  ;;  %v7025_v10 = vpop.f32.mrb[114].mxu1  ;;  %v7689_v27 = vld [vmem:[%s9659_s5 + $0x98] sm:$0xff]   ;;  %v7690_v9 = vld [vmem:[%s9659_s5] sm:$0xff]  }
 0x4cd   : > { %v2556_v46 = vmax.f32 %v7009_v54, %v7025_v10  ;;  %v2423_v22 = vpop.f32.mrb[167].mxu0  ;;  %v2522_v30 = vpop.f32.mrb[115].mxu1  ;;  %v7692_v54 = vld [vmem:[%s9659_s5 + $0x10] sm:$0xff]  }
 0x4ce   : > { %v2554_v1 = vmax.f32 %v2423_v22, %v2522_v30  ;;  %v7694_v30 = vld [vmem:[%s9659_s5 + $0x20] sm:$0xff]  }
 0x4cf   : > { %v8884_v24 = vpack.c.bf16 %v2556_v46, %v2555_v8  ;;  %v7688_v8 = vld [vmem:[%s9659_s5 + $0x90] sm:$0xff]   ;;  %v7693_v46 = vld [vmem:[%s9659_s5 + $0x18] sm:$0xff]  }
 0x4d0   : > { %v8886_v7 = vpack.c.bf16 %v2554_v1, %v2553_v51  ;;  %v7691_v51 = vld [vmem:[%s9659_s5 + $0x8] sm:$0xff]  }
 0x4d1   : > { %2669 = vrot.lane.b32.xlu1 %v8884_v24, %s7853_s27 }
 0x4d2   : > { %2667 = vrot.lane.b32.xlu0 %v8886_v7, %s7853_s27 }
 0x4d8   : > { %v7012_v29 = vpop.f32.mrb[168].mxu0  ;;  %v7028_v32 = vpop.f32.mrb[116].mxu1 }
 0x4d9   : > { %v2559_v62 = vmax.f32 %v7012_v29, %v7028_v32  ;;  %v2436_v59 = vpop.f32.mrb[169].mxu0  ;;  %v2535_v6 = vpop.f32.mrb[117].mxu1  ;;  %v7696_v29 = vld [vmem:[%s9659_s5 + $0x30] sm:$0xff]  }
 0x4da   : > { %v2557_v40 = vmax.f32 %v2436_v59, %v2535_v6  ;;  %v7013_v41 = vpop.f32.mrb[170].mxu0  ;;  %v7029_v47 = vpop.f32.mrb[118].mxu1  ;;  %v7698_v6 = vld [vmem:[%s9659_s5 + $0x40] sm:$0xff]  }
 0x4db   : > { %v8896_v14 = vpack.c.bf16 %v2559_v62, %v2559_v62  ;;  %v2439_v31 = vpop.f32.mrb[171].mxu0  ;;  %v2538_v35 = vpop.f32.mrb[119].mxu1  ;;  %v7697_v62 = vld [vmem:[%s9659_s5 + $0x38] sm:$0xff]   ;;  %v7700_v41 = vld [vmem:[%s9659_s5 + $0xa0] sm:$0xff]   ;;  %v7701_v47 = vld [vmem:[%s9659_s5 + $0xa8] sm:$0xff]  }
 0x4dc   : > { %v2558_v25 = vmax.f32 %v2439_v31, %v2538_v35  ;;  %v7703_v35 = vld [vmem:[%s9659_s5 + $0xb8] sm:$0xff]  }
 0x4dd   : > { %2673 = vrot.lane.b32.xlu1 %v8896_v14, %s7853_s27 }
 0x4de   : > { %v8900_v34 = vpack.c.bf16 %v2558_v25, %v2557_v40  ;;  %v7699_v40 = vld [vmem:[%s9659_s5 + $0x48] sm:$0xff]  }
 0x4e0   : > { %2671 = vrot.lane.b32.xlu0 %v8900_v34, %s7853_s27 }
 0x4e1   : > { %3097 = vrot.lane.b32.xlu1 %v8876_v3, %s7855_s28 }
 0x4e4   : > { %3095 = vrot.lane.b32.xlu0 %v8878_v17, %s7855_s28 }
 0x4e5   : > { %3101 = vrot.lane.b32.xlu1 %v8884_v24, %s7855_s28 }
 0x4e8   : > { %3099 = vrot.lane.b32.xlu0 %v8886_v7, %s7855_s28 }
 0x4e9   : > { %3105 = vrot.lane.b32.xlu1 %v8896_v14, %s7855_s28 }
 0x4ec   : > { %3103 = vrot.lane.b32.xlu0 %v8900_v34, %s7855_s28 }
 0x4ed   : > { %3351 = vrot.lane.b32.xlu1 %v8876_v3, %s9674_s29 }
 0x4f0   : > { %3349 = vrot.lane.b32.xlu0 %v8878_v17, %s9674_s29 }
 0x4f1   : > { %3355 = vrot.lane.b32.xlu1 %v8884_v24, %s9674_s29 }
 0x4f4   : > { %3353 = vrot.lane.b32.xlu0 %v8886_v7, %s9674_s29 }
 0x4f5   : > { %3359 = vrot.lane.b32.xlu1 %v8896_v14, %s9674_s29 }
 0x4f8   : > { %3357 = vrot.lane.b32.xlu0 %v8900_v34, %s9674_s29 }
 0x4f9   : > { %3605 = vrot.lane.b32.xlu1 %v8876_v3, %s9681_s22 }
 0x4fc   : > { %3603 = vrot.lane.b32.xlu0 %v8878_v17, %s9681_s22 }
 0x4fd   : > { %3609 = vrot.lane.b32.xlu1 %v8884_v24, %s9681_s22 }
 0x500   : > { %3607 = vrot.lane.b32.xlu0 %v8886_v7, %s9681_s22 }
 0x501   : > { %3613 = vrot.lane.b32.xlu1 %v8896_v14, %s9681_s22 }
 0x504   : > { %3611 = vrot.lane.b32.xlu0 %v8900_v34, %s9681_s22 }
 0x505   : > { %3813 = vperm.xlu1 %7586, %v3787_v13  }
 0x508   : > { %3808 = vperm.xlu0 %7585, %v3786_v12   ;;  %v7705_v12 = vld [vmem:[%s9659_s5 + $0xc8] sm:$0xff]  }
 0x509   : > { %3823 = vperm.xlu1 %7586, %v3789_v37  }
 0x50c   : > { %3818 = vperm.xlu0 %7585, %v3788_v39   ;;  %v7706_v39 = vld [vmem:[%s9659_s5 + $0xd0] sm:$0xff]  }
 0x50d   : > { %3833 = vperm.xlu1 %7586, %v3791_v26  }
 0x510   : > { %3828 = vperm.xlu0 %7585, %v3790_v15  }
 0x511   : > { %3843 = vperm.xlu1 %7586, %v3793_v33   ;;  %v7707_v33 = vld [vmem:[%s9659_s5 + $0xd8] sm:$0xff]  }
 0x514   : > { %3838 = vperm.xlu0 %7585, %v3792_v60  }
 0x515   : > { %3853 = vperm.xlu1 %7586, %v3795_v11   ;;  %v7708_v11 = vld [vmem:[%s9659_s5 + $0xe0] sm:$0xff]  }
 0x518   : > { %3848 = vperm.xlu0 %7585, %v3794_v43   ;;  %v7709_v43 = vld [vmem:[%s9659_s5 + $0xe8] sm:$0xff]  }
 0x519   : > { %3863 = vperm.xlu1 %7586, %v3797_v50   ;;  %v7710_v50 = vld [vmem:[%s9659_s5 + $0xf0] sm:$0xff]  }
 0x51c   : > { %3858 = vperm.xlu0 %7585, %v3796_v63   ;;  %v7711_v63 = vld [vmem:[%s9659_s5 + $0xf8] sm:$0xff]  }
 0x51d   : > { %3873 = vperm.xlu1 %7586, %v3799_v36   ;;  %v7712_v36 = vld [vmem:[%s9659_s5 + $0x100] sm:$0xff]  }
 0x520   : > { %3868 = vperm.xlu0 %7585, %v3798_v52  }
 0x521   : > { %3883 = vperm.xlu1 %7586, %v3801_v5   ;;  %v7713_v5 = vld [vmem:[%s9659_s5 + $0x108] sm:$0xff]  }
 0x524   : > { %3878 = vperm.xlu0 %7585, %v3800_v23  }
 0x525   : > { %3893 = vperm.xlu1 %7586, %v3803_v55   ;;  %v7714_v55 = vld [vmem:[%s9659_s5 + $0x110] sm:$0xff]  }
 0x528   : > { %3888 = vperm.xlu0 %7585, %v3802_v48  }
 0x529   : > { %3903 = vperm.xlu1 %7586, %v3805_v2   ;;  %v7715_v2 = vld [vmem:[%s9659_s5 + $0x118] sm:$0xff]  }
 0x52c   : > { %3898 = vperm.xlu0 %7585, %v3804_v18  }
 0x533   : > { %v2666_v49 = vpop.permute.xlu1 %2665 }
 0x534   : > { %v2664_v56 = vpop.permute.xlu0 %2663 }
 0x535   : > { %7030 = vmatprep.subr.bf16.mxu0 %v2664_v56 }
 0x536   : > { %7031 = vmatpush3.bf16.msra.mxu0 %v2664_v56  ;;  %v7716_v56 = vld [vmem:[%s9659_s5 + $0x120] sm:$0xff]  }
 0x537   : > { %7032 = vmatprep.subr.bf16.mxu0 %v2666_v49 }
 0x53a   : > { %7033 = vmatpush3.bf16.msra.mxu0 %v2666_v49 }
 0x543   : > { %v2670_v16 = vpop.permute.xlu1 %2669 }
 0x544   : > { %v2668_v61 = vpop.permute.xlu0 %2667 }
 0x545   : > { %7034 = vmatprep.subr.bf16.mxu0 %v2668_v61 }
 0x546   : > { %7035 = vmatpush3.bf16.msra.mxu0 %v2668_v61 }
 0x547   : > { %7036 = vmatprep.subr.bf16.mxu0 %v2670_v16 }
 0x54a   : > { %7037 = vmatpush3.bf16.msra.mxu0 %v2670_v16  ;;  %v7717_v16 = vld [vmem:[%s9659_s5 + $0x128] sm:$0xff]  }
 0x54f   : > { %v2674_v53 = vpop.permute.xlu1 %2673 }
 0x550   : > { %v2713_v45 = vsel %vm2711_vm7, %v2674_v53, 0 }
 0x552   : > { %v2672_v58 = vpop.permute.xlu0 %2671 }
 0x553   : > { %7038 = vmatprep.subr.bf16.mxu0 %v2672_v58  ;;  %v3098_v10 = vpop.permute.xlu1 %3097 }
 0x554   : > { %7039 = vmatpush3.bf16.msra.mxu0 %v2672_v58  ;;  %v7718_v58 = vld [vmem:[%s9659_s5 + $0x130] sm:$0xff]  }
 0x555   : > { %7550 = vmatprep.subr.msk.bf16.mxu0 %vm2711_vm7, %v2674_v53  ;;  %v7719_v53 = vld [vmem:[%s9659_s5 + $0x138] sm:$0xff]  }
 0x556   : > { %v3096_v4 = vpop.permute.xlu0 %3095 }
 0x557   : > { %v3102_v1 = vpop.permute.xlu1 %3101 }
 0x558   : > { %7041 = vmatpush3.bf16.msra.mxu0 %v2713_v45  ;;  %v7720_v45 = vld [vmem:[%s9659_s5 + $0x140] sm:$0xff]  }
 0x559   : > { %7062 = vmatprep.subr.bf16.mxu0 %v8878_v17 }
 0x55a   : > { %v3100_v22 = vpop.permute.xlu0 %3099 }
 0x55b   : > { %7043 = vmatmul.mubr.msk.bf16.vlgmr.msra.gmra.mrb[172].mxu0 %vm2680_vm6, %v7681_v57  ;;  %v3106_v32 = vpop.permute.xlu1 %3105  ;;  %v7721_v57 = vld [vmem:[%s9659_s5 + $0x148] sm:$0xff]  }
 0x55c   : > { %7063 = vmatpush3.bf16.msra.mxu0 %v8878_v17  ;;  %7046 = vmatprep.mubr.msk.bf16.mxu0 %vm2680_vm6, %v7682_v28  ;;  %v2909_v17 = vsel %vm2711_vm7, %v8896_v14, 0  ;;  %v3143_v44 = vsel %vm2711_vm7, %v3106_v32, 0  ;;  %v7722_v28 = vld [vmem:[%s9659_s5 + $0x150] sm:$0xff]  }
 0x55d   : > { %7064 = vmatprep.subr.bf16.mxu0 %v8876_v3 }
 0x55f   : > { %v3352_v31 = vpop.permute.xlu1 %3351 }
 0x560   : > { %7065 = vmatpush3.bf16.msra.mxu0 %v8876_v3  ;;  %v7686_v3 = vld [vmem:[%s9659_s5 + $0x80] sm:$0xff]  }
 0x561   : > { %7066 = vmatprep.subr.bf16.mxu0 %v8886_v7 }
 0x563   : > { %7047 = vmatmul.mubr.msk.bf16.gmra.mrb[176].mxu0 %vm2680_vm6, %v7683_v38  ;;  %v3356_v13 = vpop.permute.xlu1 %3355  ;;  %v7723_v38 = vld [vmem:[%s9659_s5 + $0x158] sm:$0xff]  }
 0x564   : > { %7067 = vmatpush3.bf16.msra.mxu0 %v8886_v7  ;;  %7050 = vmatprep.mubr.msk.bf16.mxu0 %vm2680_vm6, %v7684_v20  ;;  %v3104_v7 = vpop.permute.xlu0 %3103  ;;  %v7724_v20 = vld [vmem:[%s9659_s5 + $0x160] sm:$0xff]  }
 0x565   : > { %7068 = vmatprep.subr.bf16.mxu0 %v8884_v24 }
 0x567   : > { %v3360_v26 = vpop.permute.xlu1 %3359 }
 0x568   : > { %7069 = vmatpush3.bf16.msra.mxu0 %v8884_v24  ;;  %v7695_v24 = vld [vmem:[%s9659_s5 + $0x28] sm:$0xff]   ;;  %v3350_v59 = vpop.permute.xlu0 %3349  ;;  %v3397_v15 = vsel %vm2711_vm7, %v3360_v26, 0 }
 0x569   : > { %7070 = vmatprep.subr.bf16.mxu0 %v8900_v34 }
 0x56b   : > { %7051 = vmatmul.mubr.msk.bf16.gmra.mrb[180].mxu0 %vm2680_vm6, %v7685_v19  ;;  %v3606_v52 = vpop.permute.xlu1 %3605  ;;  %v7725_v19 = vld [vmem:[%s9659_s5 + $0x168] sm:$0xff]  }
 0x56c   : > { %7071 = vmatpush3.bf16.msra.mxu0 %v8900_v34  ;;  %7054 = vmatprep.mubr.msk.bf16.mxu0 %vm2680_vm6, %v7686_v3  ;;  %v3354_v25 = vpop.permute.xlu0 %3353  ;;  %v7704_v34 = vld [vmem:[%s9659_s5 + $0xc0] sm:$0xff]   ;;  %v7726_v3 = vld [vmem:[%s9659_s5 + $0x170] sm:$0xff]  }
 0x56d   : > { %7551 = vmatprep.subr.msk.bf16.mxu0 %vm2711_vm7, %v8896_v14  ;;  %v7702_v14 = vld [vmem:[%s9659_s5 + $0xb0] sm:$0xff]  }
 0x56f   : > { %v3610_v48 = vpop.permute.xlu1 %3609 }
 0x570   : > { %7073 = vmatpush3.bf16.msra.mxu0 %v2909_v17  ;;  %v3358_v37 = vpop.permute.xlu0 %3357  ;;  %v7727_v17 = vld [vmem:[%s9659_s5 + $0x178] sm:$0xff]  }
 0x571   : > { %7094 = vmatprep.subr.bf16.mxu0 %v3096_v4 }
 0x573   : > { %7055 = vmatmul.mubr.msk.bf16.gmra.mrb[184].mxu0 %vm2680_vm6, %v7687_v42  ;;  %v3614_v49 = vpop.permute.xlu1 %3613  ;;  %v7728_v42 = vld [vmem:[%s9659_s5 + $0x180] sm:$0xff]  }
 0x574   : > { %7058 = vmatprep.mubr.msk.bf16.mxu0 %vm2680_vm6, %v7688_v8  ;;  %v3604_v60 = vpop.permute.xlu0 %3603  ;;  %v3651_v61 = vsel %vm2711_vm7, %v3614_v49, 0  ;;  %v7732_v8 = vld [vmem:[#allocation2 + $0x4] ss:$8 sps:$4 sm:$0xff]  }
 0x575   : > { %6248 = vmatprep.mubr.msk.bf16.mxu1 %vm4011_vm8, %v7732_v8 }
 0x578   : > { %v3608_v23 = vpop.permute.xlu0 %3607 }
 0x57b   : > { %7059 = vmatmul.mubr.msk.bf16.gmra.mrb[188].mxu0 %vm2680_vm6, %v7689_v27 }
 0x57c   : > { %7074 = vmatprep.mubr.msk.bf16.mxu0 %vm2680_vm6, %v7690_v9  ;;  %v3612_v18 = vpop.permute.xlu0 %3611 }
 0x583   : > { %7075 = vmatmul.mubr.msk.bf16.vlgmr.msra.gmra.mrb[172].mxu0 %vm2680_vm6, %v7691_v51 }
 0x584   : > { %7095 = vmatpush3.bf16.msra.mxu0 %v3096_v4  ;;  %7078 = vmatprep.mubr.msk.bf16.mxu0 %vm2680_vm6, %v7692_v54  ;;  %v7729_v4 = vld [vmem:[%s9659_s5 + $0x188] sm:$0xff]   ;;  %v3814_v9 = vpop.permute.xlu1 %3813 }
 0x585   : > { %7096 = vmatprep.subr.bf16.mxu0 %v3098_v10 }
 0x587   : > { %v3809_v27 = vpop.permute.xlu0 %3808 }
 0x588   : > { %7097 = vmatpush3.bf16.msra.mxu0 %v3098_v10  ;;  %v3824_v54 = vpop.permute.xlu1 %3823 }
 0x589   : > { %7098 = vmatprep.subr.bf16.mxu0 %v3100_v22 }
 0x58b   : > { %7079 = vmatmul.mubr.msk.bf16.gmra.mrb[176].mxu0 %vm2680_vm6, %v7693_v46  ;;  %v3819_v51 = vpop.permute.xlu0 %3818 }
 0x58c   : > { %7099 = vmatpush3.bf16.msra.mxu0 %v3100_v22  ;;  %7082 = vmatprep.mubr.msk.bf16.mxu0 %vm2680_vm6, %v7694_v30  ;;  %v3834_v46 = vpop.permute.xlu1 %3833 }
 0x58d   : > { %7100 = vmatprep.subr.bf16.mxu0 %v3102_v1 }
 0x58f   : > { %v3829_v10 = vpop.permute.xlu0 %3828 }
 0x590   : > { %7101 = vmatpush3.bf16.msra.mxu0 %v3102_v1  ;;  %v3844_v30 = vpop.permute.xlu1 %3843 }
 0x591   : > { %7102 = vmatprep.subr.bf16.mxu0 %v3104_v7 }
 0x593   : > { %7083 = vmatmul.mubr.msk.bf16.gmra.mrb[180].mxu0 %vm2680_vm6, %v7695_v24  ;;  %v3839_v22 = vpop.permute.xlu0 %3838 }
 0x594   : > { %7103 = vmatpush3.bf16.msra.mxu0 %v3104_v7  ;;  %7086 = vmatprep.mubr.msk.bf16.mxu0 %vm2680_vm6, %v7696_v29 }
 0x595   : > { %7552 = vmatprep.subr.msk.bf16.mxu0 %vm2711_vm7, %v3106_v32 }
 0x597   : > { %v3849_v29 = vpop.permute.xlu0 %3848 }
 0x598   : > { %7105 = vmatpush3.bf16.msra.mxu0 %v3143_v44 }
 0x599   : > { %7126 = vmatprep.subr.bf16.mxu0 %v3350_v59 }
 0x59b   : > { %7087 = vmatmul.mubr.msk.bf16.gmra.mrb[184].mxu0 %vm2680_vm6, %v7697_v62 }
 0x59c   : > { %7090 = vmatprep.mubr.msk.bf16.mxu0 %vm2680_vm6, %v7698_v6  ;;  %v3854_v6 = vpop.permute.xlu1 %3853 }
 0x5a3   : > { %7091 = vmatmul.mubr.msk.bf16.gmra.mrb[188].mxu0 %vm2680_vm6, %v7699_v40 }
 0x5a4   : > { %7106 = vmatprep.mubr.msk.bf16.mxu0 %vm2680_vm6, %v7700_v41 }
 0x5ab   : > { %7107 = vmatmul.mubr.msk.bf16.vlgmr.msra.gmra.mrb[172].mxu0 %vm2680_vm6, %v7701_v47 }
 0x5ac   : > { %7127 = vmatpush3.bf16.msra.mxu0 %v3350_v59  ;;  %7110 = vmatprep.mubr.msk.bf16.mxu0 %vm2680_vm6, %v7702_v14 }
 0x5ad   : > { %7128 = vmatprep.subr.bf16.mxu0 %v3352_v31 }
 0x5b0   : > { %7129 = vmatpush3.bf16.msra.mxu0 %v3352_v31 }
 0x5b1   : > { %7130 = vmatprep.subr.bf16.mxu0 %v3354_v25 }
 0x5b3   : > { %7111 = vmatmul.mubr.msk.bf16.gmra.mrb[176].mxu0 %vm2680_vm6, %v7703_v35 }
 0x5b4   : > { %7131 = vmatpush3.bf16.msra.mxu0 %v3354_v25  ;;  %7114 = vmatprep.mubr.msk.bf16.mxu0 %vm2680_vm6, %v7704_v34  ;;  %v3859_v25 = vpop.permute.xlu0 %3858 }
 0x5b5   : > { %7132 = vmatprep.subr.bf16.mxu0 %v3356_v13 }
 0x5b8   : > { %7133 = vmatpush3.bf16.msra.mxu0 %v3356_v13 }
 0x5b9   : > { %7134 = vmatprep.subr.bf16.mxu0 %v3358_v37 }
 0x5bb   : > { %7115 = vmatmul.mubr.msk.bf16.gmra.mrb[180].mxu0 %vm2680_vm6, %v7705_v12 }
 0x5bc   : > { %7135 = vmatpush3.bf16.msra.mxu0 %v3358_v37  ;;  %7118 = vmatprep.mubr.msk.bf16.mxu0 %vm2680_vm6, %v7706_v39  ;;  %v3864_v39 = vpop.permute.xlu1 %3863 }
 0x5bd   : > { %7553 = vmatprep.subr.msk.bf16.mxu0 %vm2711_vm7, %v3360_v26 }
 0x5c0   : > { %7137 = vmatpush3.bf16.msra.mxu0 %v3397_v15 }
 0x5c1   : > { %7158 = vmatprep.subr.bf16.mxu0 %v3604_v60 }
 0x5c3   : > { %7119 = vmatmul.mubr.msk.bf16.gmra.mrb[184].mxu0 %vm2680_vm6, %v7707_v33 }
 0x5c4   : > { %7122 = vmatprep.mubr.msk.bf16.mxu0 %vm2680_vm6, %v7708_v11 }
 0x5cb   : > { %7123 = vmatmul.mubr.msk.bf16.gmra.mrb[188].mxu0 %vm2680_vm6, %v7709_v43 }
 0x5cc   : > { %7138 = vmatprep.mubr.msk.bf16.mxu0 %vm2680_vm6, %v7710_v50 }
 0x5d3   : > { %7139 = vmatmul.mubr.msk.bf16.vlgmr.msra.gmra.mrb[172].mxu0 %vm2680_vm6, %v7711_v63  ;;  %v3869_v63 = vpop.permute.xlu0 %3868 }
 0x5d4   : > { %7159 = vmatpush3.bf16.msra.mxu0 %v3604_v60  ;;  %7142 = vmatprep.mubr.msk.bf16.mxu0 %vm2680_vm6, %v7712_v36 }
 0x5d5   : > { %7160 = vmatprep.subr.bf16.mxu0 %v3606_v52 }
 0x5d8   : > { %7161 = vmatpush3.bf16.msra.mxu0 %v3606_v52 }
 0x5d9   : > { %7162 = vmatprep.subr.bf16.mxu0 %v3608_v23 }
 0x5db   : > { %7143 = vmatmul.mubr.msk.bf16.gmra.mrb[176].mxu0 %vm2680_vm6, %v7713_v5 }
 0x5dc   : > { %7163 = vmatpush3.bf16.msra.mxu0 %v3608_v23  ;;  %7146 = vmatprep.mubr.msk.bf16.mxu0 %vm2680_vm6, %v7714_v55  ;;  %v3874_v23 = vpop.permute.xlu1 %3873 }
 0x5dd   : > { %7164 = vmatprep.subr.bf16.mxu0 %v3610_v48 }
 0x5e0   : > { %7165 = vmatpush3.bf16.msra.mxu0 %v3610_v48 }
 0x5e1   : > { %7166 = vmatprep.subr.bf16.mxu0 %v3612_v18 }
 0x5e3   : > { %7147 = vmatmul.mubr.msk.bf16.gmra.mrb[180].mxu0 %vm2680_vm6, %v7715_v2 }
 0x5e4   : > { %7167 = vmatpush3.bf16.msra.mxu0 %v3612_v18  ;;  %7150 = vmatprep.mubr.msk.bf16.mxu0 %vm2680_vm6, %v7716_v56 }
 0x5e5   : > { %7554 = vmatprep.subr.msk.bf16.mxu0 %vm2711_vm7, %v3614_v49 }
 0x5e8   : > { %7169 = vmatpush3.bf16.msra.mxu0 %v3651_v61 }
 0x5eb   : > { %7151 = vmatmul.mubr.msk.bf16.gmra.mrb[184].mxu0 %vm2680_vm6, %v7717_v16 }
 0x5ec   : > { %7154 = vmatprep.mubr.msk.bf16.mxu0 %vm2680_vm6, %v7718_v58  ;;  %v3879_v58 = vpop.permute.xlu0 %3878 }
 0x5f0   : > { %v3889_v8 = vpop.permute.xlu0 %3888 }
 0x5f3   : > { %7155 = vmatmul.mubr.msk.bf16.gmra.mrb[188].mxu0 %vm2680_vm6, %v7719_v53 }
 0x5f4   : > { %7170 = vmatprep.mubr.msk.bf16.mxu0 %vm2680_vm6, %v7720_v45 }
 0x5fb   : > { %7171 = vmatmul.mubr.msk.bf16.vlgmr.msra.gmra.mrb[172].mxu0 %vm2680_vm6, %v7721_v57 }
 0x5fc   : > { %7174 = vmatprep.mubr.msk.bf16.mxu0 %vm2680_vm6, %v7722_v28  ;;  %v3884_v28 = vpop.permute.xlu1 %3883 }
 0x603   : > { %7175 = vmatmul.mubr.msk.bf16.gmra.mrb[176].mxu0 %vm2680_vm6, %v7723_v38 }
 0x604   : > { %7178 = vmatprep.mubr.msk.bf16.mxu0 %vm2680_vm6, %v7724_v20 }
 0x60b   : > { %7179 = vmatmul.mubr.msk.bf16.gmra.mrb[180].mxu0 %vm2680_vm6, %v7725_v19 }
 0x60c   : > { %7182 = vmatprep.mubr.msk.bf16.mxu0 %vm2680_vm6, %v7726_v3 }
 0x613   : > { %7183 = vmatmul.mubr.msk.bf16.gmra.mrb[184].mxu0 %vm2680_vm6, %v7727_v17 }
 0x614   : > { %7186 = vmatprep.mubr.msk.bf16.mxu0 %vm2680_vm6, %v7728_v42 }
 0x61b   : > { %7187 = vmatmul.mubr.msk.bf16.gmra.mrb[188].mxu0 %vm2680_vm6, %v7729_v4 }
 0x6ce   : > { %v7172_v1 = vpop.f32.mrb[172].mxu0 }
 0x6cf   : > { %v3908_v24 = vadd.f32 %v7172_v1, %v3819_v51  ;;  %v3687_v7 = vpop.f32.mrb[173].mxu0 }
 0x6d0   : > { %v3906_v32 = vadd.f32 %v3809_v27, %v3687_v7  ;;  %v7173_v44 = vpop.f32.mrb[174].mxu0 }
 0x6d1   : > { %v3909_v62 = vadd.f32 %v7173_v44, %v3824_v54  ;;  %v3690_v59 = vpop.f32.mrb[175].mxu0  ;;  %v3928_v41 = vmax.f32 %v3908_v24, 0.0 }
 0x6d2   : > { %v3907_v40 = vadd.f32 %v3814_v9, %v3690_v59  ;;  %v3926_v14 = vmax.f32 %v3906_v32, 0.0 }
 0x6d3   : > { %v3929_v47 = vmax.f32 %v3909_v62, 0.0 }
 0x6d4   : > { %v3927_v31 = vmax.f32 %v3907_v40, 0.0 }
 0x6d5   : > { %v9219_v35 = vpack.c.bf16 %v3929_v47, %v3928_v41 }
 0x6d6   : > { %v9221_v34 = vpack.c.bf16 %v3927_v31, %v3926_v14  ;;  %v7176_v13 = vpop.f32.mrb[176].mxu0 }
 0x6d7   : > { %v3912_v12 = vadd.f32 %v7176_v13, %v3839_v22  ;;  %v3703_v37 = vpop.f32.mrb[177].mxu0 }
 0x6d8   : > { %v3910_v26 = vadd.f32 %v3829_v10, %v3703_v37  ;;  %v7177_v15 = vpop.f32.mrb[178].mxu0  ;;  %4028 = vmatpush1.bf16.msra.mxu1 %v9221_v34  ;;  %v3894_v10 = vpop.permute.xlu1 %3893 }
 0x6d9   : > { %v3913_v33 = vadd.f32 %v7177_v15, %v3844_v30  ;;  %v3706_v60 = vpop.f32.mrb[179].mxu0  ;;  %4029 = vmatprep.subr.bf16.mxu1 %v7858_v21  ;;  %v3932_v43 = vmax.f32 %v3912_v12, 0.0  ;;  %v7730_v15 = vld [vmem:[#allocation2] ss:$8 sps:$4 sm:$0xff]  }
 0x6da   : > { %v3911_v11 = vadd.f32 %v3834_v46, %v3706_v60  ;;  %v3930_v36 = vmax.f32 %v3910_v26, 0.0  ;;  %v7735_v60 = vld [vmem:[#allocation2 + $0x10] ss:$8 sps:$4 sm:$0xff]  }
 0x6db   : > { %v3933_v50 = vmax.f32 %v3913_v33, 0.0  ;;  %v7733_v33 = vld [vmem:[#allocation2 + $0x14] ss:$8 sps:$4 sm:$0xff]  }
 0x6dc   : > { %v3931_v52 = vmax.f32 %v3911_v11, 0.0  ;;  %4030 = vmatpush1.bf16.msra.mxu1 %v9219_v35  ;;  %v7736_v11 = vld [vmem:[#allocation2 + $0x24] ss:$8 sps:$4 sm:$0xff]  }
 0x6dd   : > { %v9226_v5 = vpack.c.bf16 %v3933_v50, %v3932_v43  ;;  %4031 = vmatprep.subr.bf16.mxu1 %v7858_v21  ;;  %v7738_v43 = vld [vmem:[#allocation2 + $0x20] ss:$8 sps:$4 sm:$0xff]   ;;  %v7742_v50 = vld [vmem:[#allocation2 + $0x44] ss:$8 sps:$4 sm:$0xff]  }
 0x6de   : > { %v9229_v55 = vpack.c.bf16 %v3931_v52, %v3930_v36  ;;  %v7180_v48 = vpop.f32.mrb[180].mxu0  ;;  %v7747_v36 = vld [vmem:[#allocation2 + $0x54] ss:$8 sps:$4 sm:$0xff]   ;;  %v7745_v52 = vld [vmem:[#allocation2 + $0x50] ss:$8 sps:$4 sm:$0xff]  }
 0x6df   : > { %v3916_v2 = vadd.f32 %v7180_v48, %v3859_v25  ;;  %v3719_v18 = vpop.f32.mrb[181].mxu0  ;;  %v7753_v48 = vld [vmem:[#allocation2 + $0x70] ss:$8 sps:$4 sm:$0xff]  }
 0x6e0   : > { %v3914_v56 = vadd.f32 %v3849_v29, %v3719_v18  ;;  %v7181_v49 = vpop.f32.mrb[182].mxu0  ;;  %4032 = vmatpush1.bf16.msra.mxu1 %v9229_v55  ;;  %v3899_v29 = vpop.permute.xlu0 %3898  ;;  %v7756_v18 = vld [vmem:[#allocation2 + $0x80] ss:$8 sps:$4 sm:$0xff]  }
 0x6e1   : > { %v3917_v61 = vadd.f32 %v7181_v49, %v3864_v39  ;;  %v3722_v16 = vpop.f32.mrb[183].mxu0  ;;  %4033 = vmatprep.subr.bf16.mxu1 %v7858_v21  ;;  %v3936_v45 = vmax.f32 %v3916_v2, 0.0  ;;  %v7754_v2 = vld [vmem:[#allocation2 + $0x84] ss:$8 sps:$4 sm:$0xff]  }
 0x6e2   : > { %v3915_v53 = vadd.f32 %v3854_v6, %v3722_v16  ;;  %v3934_v38 = vmax.f32 %v3914_v56, 0.0  ;;  %v3904_v6 = vpop.permute.xlu1 %3903  ;;  %v7759_v56 = vld [vmem:[#allocation2 + $0x90] ss:$8 sps:$4 sm:$0xff]   ;;  %v7760_v49 = vld [vmem:[%s9662_s8] sm:$0x1f]  }
 0x6e3   : > { %v3937_v57 = vmax.f32 %v3917_v61, 0.0  ;;  %v4284_v61 = vsel %vm4282_vm9, %v7760_v49, 0 }
 0x6e4   : > { %v3935_v20 = vmax.f32 %v3915_v53, 0.0  ;;  %4034 = vmatpush1.bf16.msra.mxu1 %v9226_v5 }
 0x6e5   : > { %v9234_v19 = vpack.c.bf16 %v3937_v57, %v3936_v45  ;;  %4035 = vmatprep.subr.bf16.mxu1 %v7858_v21 }
 0x6e6   : > { %v9237_v3 = vpack.c.bf16 %v3935_v20, %v3934_v38  ;;  %v7184_v17 = vpop.f32.mrb[184].mxu0 }
 0x6e7   : > { %v3920_v42 = vadd.f32 %v7184_v17, %v3879_v58  ;;  %v3735_v4 = vpop.f32.mrb[185].mxu0 }
 0x6e8   : > { %v3918_v27 = vadd.f32 %v3869_v63, %v3735_v4  ;;  %v7185_v9 = vpop.f32.mrb[186].mxu0  ;;  %4036 = vmatpush1.bf16.msra.mxu1 %v9237_v3  ;;  %v7744_v63 = vld [vmem:[#allocation2 + $0x40] ss:$8 sps:$4 sm:$0xff]  }
 0x6e9   : > { %v3921_v51 = vadd.f32 %v7185_v9, %v3884_v28  ;;  %v3738_v54 = vpop.f32.mrb[187].mxu0  ;;  %4037 = vmatprep.subr.bf16.mxu1 %v7858_v21  ;;  %v3940_v22 = vmax.f32 %v3920_v42, 0.0 }
 0x6ea   : > { %v3919_v46 = vadd.f32 %v3874_v23, %v3738_v54  ;;  %v3938_v1 = vmax.f32 %v3918_v27, 0.0  ;;  %v7750_v23 = vld [vmem:[#allocation2 + $0x60] ss:$8 sps:$4 sm:$0xff]  }
 0x6eb   : > { %v3941_v30 = vmax.f32 %v3921_v51, 0.0 }
 0x6ec   : > { %v3939_v24 = vmax.f32 %v3919_v46, 0.0  ;;  %4038 = vmatpush1.bf16.msra.mxu1 %v9234_v19 }
 0x6ed   : > { %v3953_v7 = vpack.c.bf16 %v3941_v30, %v3940_v22  ;;  %4039 = vmatprep.subr.bf16.mxu1 %v7858_v21 }
 0x6ee   : > { %v3952_v32 = vpack.c.bf16 %v3939_v24, %v3938_v1  ;;  %v7188_v44 = vpop.f32.mrb[188].mxu0  ;;  %v7761_v24 = vld [vmem:[%s9662_s8 + $0x8] sm:$0x1f]  }
 0x6ef   : > { %v3924_v62 = vadd.f32 %v7188_v44, %v3899_v29  ;;  %v3751_v59 = vpop.f32.mrb[189].mxu0 }
 0x6f0   : > { %v3922_v40 = vadd.f32 %v3889_v8, %v3751_v59  ;;  %v7189_v41 = vpop.f32.mrb[190].mxu0  ;;  %4040 = vmatpush1.bf16.msra.mxu1 %v3952_v32 }
 0x6f1   : > { %v3925_v47 = vadd.f32 %v7189_v41, %v3904_v6  ;;  %v3754_v14 = vpop.f32.mrb[191].mxu0  ;;  %4041 = vmatprep.subr.bf16.mxu1 %v7858_v21  ;;  %v3944_v25 = vmax.f32 %v3924_v62, 0.0  ;;  %v4368_v62 = vsel %vm4282_vm9, %v7761_v24, 0 }
 0x6f2   : > { %v3923_v31 = vadd.f32 %v3894_v10, %v3754_v14  ;;  %v3942_v12 = vmax.f32 %v3922_v40, 0.0 }
 0x6f3   : > { %v3945_v13 = vmax.f32 %v3925_v47, 0.0 }
 0x6f4   : > { %v3943_v37 = vmax.f32 %v3923_v31, 0.0  ;;  %4042 = vmatpush1.bf16.msra.mxu1 %v3953_v7 }
 0x6f5   : > { %v3955_v39 = vpack.c.bf16 %v3945_v13, %v3944_v25  ;;  %4043 = vmatprep.subr.bf16.mxu1 %v7858_v21 }
 0x6f6   : > { %v3954_v26 = vpack.c.bf16 %v3943_v37, %v3942_v12 }
 0x6f8   : > { %4044 = vmatpush1.bf16.msra.mxu1 %v3954_v26 }
 0x6f9   : > { %4045 = vmatprep.subr.bf16.mxu1 %v7858_v21 }
 0x6fc   : > { %4046 = vmatpush1.bf16.msra.mxu1 %v3955_v39 }
 0x6fd   : > { %4171 = vmatprep.subr.bf16.mxu1 %v7858_v21 }
 0x6ff   : > { %4060 = vmatmul.mubr.bf16.vlgmr.msra.gmra.mrb[120].mxu1 %v7730_v15 }
 0x700   : > { %4172 = vmatpush1.bf16.msra.mxu1 %v9221_v34  ;;  %6249 = vmatprep.mubr.msk.bf16.mxu1 %vm4011_vm8, %v7733_v33  ;;  %v7739_v34 = vld [vmem:[#allocation2 + $0x34] ss:$8 sps:$4 sm:$0xff]  }
 0x701   : > { %4173 = vmatprep.subr.bf16.mxu1 %v7858_v21 }
 0x704   : > { %4174 = vmatpush1.bf16.msra.mxu1 %v9219_v35  ;;  %v7741_v35 = vld [vmem:[#allocation2 + $0x30] ss:$8 sps:$4 sm:$0xff]  }
 0x705   : > { %4175 = vmatprep.subr.bf16.mxu1 %v7858_v21 }
 0x707   : > { %4068 = vmatmul.mubr.bf16.gmra.mrb[124].mxu1 %v7735_v60 }
 0x708   : > { %4176 = vmatpush1.bf16.msra.mxu1 %v9229_v55  ;;  %6250 = vmatprep.mubr.msk.bf16.mxu1 %vm4011_vm8, %v7736_v11  ;;  %v7751_v55 = vld [vmem:[#allocation2 + $0x74] ss:$8 sps:$4 sm:$0xff]  }
 0x709   : > { %4177 = vmatprep.subr.bf16.mxu1 %v7858_v21 }
 0x70c   : > { %4178 = vmatpush1.bf16.msra.mxu1 %v9226_v5  ;;  %v7748_v5 = vld [vmem:[#allocation2 + $0x64] ss:$8 sps:$4 sm:$0xff]  }
 0x70d   : > { %4179 = vmatprep.subr.bf16.mxu1 %v7858_v21 }
 0x70f   : > { %4076 = vmatmul.mubr.bf16.gmra.mrb[128].mxu1 %v7738_v43 }
 0x710   : > { %4180 = vmatpush1.bf16.msra.mxu1 %v9237_v3  ;;  %6251 = vmatprep.mubr.msk.bf16.mxu1 %vm4011_vm8, %v7739_v34 }
 0x711   : > { %4181 = vmatprep.subr.bf16.mxu1 %v7858_v21 }
 0x714   : > { %4182 = vmatpush1.bf16.msra.mxu1 %v9234_v19 }
 0x715   : > { %4183 = vmatprep.subr.bf16.mxu1 %v7858_v21 }
 0x717   : > { %4084 = vmatmul.mubr.bf16.gmra.mrb[132].mxu1 %v7741_v35 }
 0x718   : > { %4184 = vmatpush1.bf16.msra.mxu1 %v3952_v32  ;;  %6252 = vmatprep.mubr.msk.bf16.mxu1 %vm4011_vm8, %v7742_v50 }
 0x719   : > { %4185 = vmatprep.subr.bf16.mxu1 %v7858_v21 }
 0x71c   : > { %4186 = vmatpush1.bf16.msra.mxu1 %v3953_v7 }
 0x71d   : > { %4187 = vmatprep.subr.bf16.mxu1 %v7858_v21 }
 0x71f   : > { %4092 = vmatmul.mubr.bf16.gmra.mrb[136].mxu1 %v7744_v63 }
 0x720   : > { %4188 = vmatpush1.bf16.msra.mxu1 %v3954_v26  ;;  %6263 = vmatprep.mubr.msk.bf16.mxu1 %vm4011_vm8, %v7747_v36 }
 0x721   : > { %4189 = vmatprep.subr.bf16.mxu1 %v7858_v21  ;;  %v7757_v21 = vld [vmem:[#allocation2 + $0x94] ss:$8 sps:$4 sm:$0xff]  }
 0x724   : > { %4190 = vmatpush1.bf16.msra.mxu1 %v3955_v39 }
 0x725   : > { %7190 = vmatprep.subr.bf16.mxu1 %v7852_v0 }
 0x727   : > { %4204 = vmatmul.mubr.bf16.vlgmr.msra.gmra.mrb[140].mxu1 %v7745_v52 }
 0x728   : > { %6264 = vmatprep.mubr.msk.bf16.mxu1 %vm4011_vm8, %v7748_v5  ;;  %7191 = vmatpush3.bf16.msra.mxu1 %v4284_v61 }
 0x729   : > { %7212 = vmatprep.subr.bf16.mxu1 %v7852_v0 }
 0x72f   : > { %4212 = vmatmul.mubr.bf16.gmra.mrb[144].mxu1 %v7750_v23 }
 0x730   : > { %6265 = vmatprep.mubr.msk.bf16.mxu1 %vm4011_vm8, %v7751_v55 }
 0x737   : > { %4220 = vmatmul.mubr.bf16.gmra.mrb[148].mxu1 %v7753_v48 }
 0x738   : > { %6266 = vmatprep.mubr.msk.bf16.mxu1 %vm4011_vm8, %v7754_v2 }
 0x73f   : > { %4228 = vmatmul.mubr.bf16.gmra.mrb[152].mxu1 %v7756_v18 }
 0x740   : > { %6267 = vmatprep.mubr.msk.bf16.mxu1 %vm4011_vm8, %v7757_v21 }
 0x747   : > { %4236 = vmatmul.mubr.bf16.gmra.mrb[156].mxu1 %v7759_v56 }
 0x748   : > { %7192 = vmatprep.mubr.msk.bf16.mxu1 %vm7854_vm0, %v7852_v0 }
 0x7d2   : > { %v4061_v16 = vpop.f32.mrb[120].mxu1 }
 0x7d3   : > { %v4063_v58 = vpop.f32.mrb[121].mxu1 }
 0x7d4   : > { %v4064_v53 = vpop.f32.mrb[122].mxu1 }
 0x7d5   : > { %v4066_v45 = vpop.f32.mrb[123].mxu1 }
 0x7da   : > { %v4069_v57 = vpop.f32.mrb[124].mxu1 }
 0x7db   : > { %v4071_v28 = vpop.f32.mrb[125].mxu1 }
 0x7dc   : > { %v4072_v38 = vpop.f32.mrb[126].mxu1 }
 0x7dd   : > { %v4074_v20 = vpop.f32.mrb[127].mxu1 }
 0x7e2   : > { %v4077_v19 = vpop.f32.mrb[128].mxu1 }
 0x7e3   : > { %v4079_v3 = vpop.f32.mrb[129].mxu1 }
 0x7e4   : > { %v4080_v17 = vpop.f32.mrb[130].mxu1 }
 0x7e5   : > { %v4082_v42 = vpop.f32.mrb[131].mxu1 }
 0x7ea   : > { %v4085_v4 = vpop.f32.mrb[132].mxu1 }
 0x7eb   : > { %v4087_v8 = vpop.f32.mrb[133].mxu1 }
 0x7ec   : > { %v4088_v27 = vpop.f32.mrb[134].mxu1 }
 0x7ed   : > { %v4090_v9 = vpop.f32.mrb[135].mxu1 }
 0x7f2   : > { %v4093_v51 = vpop.f32.mrb[136].mxu1 }
 0x7f3   : > { %v4095_v54 = vpop.f32.mrb[137].mxu1 }
 0x7f4   : > { %v4096_v10 = vpop.f32.mrb[138].mxu1 }
 0x7f5   : > { %v4098_v46 = vpop.f32.mrb[139].mxu1 }
 0x7fa   : > { %v4205_v22 = vpop.f32.mrb[140].mxu1 }
 0x7fb   : > { %v4244_v30 = vmax.f32 %v4061_v16, %v4205_v22  ;;  %v4207_v1 = vpop.f32.mrb[141].mxu1 }
 0x7fc   : > { %v4208_v7 = vpop.f32.mrb[142].mxu1 }
 0x7fd   : > { %v4245_v29 = vmax.f32 %v4064_v53, %v4208_v7  ;;  %v4210_v32 = vpop.f32.mrb[143].mxu1 }
 0x7ff   : > { %v4254_v44 = vpack.c.bf16 %v4245_v29, %v4244_v30 }
 0x801   : > { %7193 = vmatmul.mubr.msk.bf16.vlgmr.msra.gmra.mrb[160].mxu1 %vm4266_vm10, %v4254_v44 }
 0x802   : > { %v4213_v59 = vpop.f32.mrb[144].mxu1  ;;  %7196 = vmatprep.mubr.msk.bf16.mxu1 %vm7854_vm0, %v7852_v0  ;;  %7213 = vmatpush3.bf16.msra.mxu1 %v4368_v62 }
 0x803   : > { %v4246_v6 = vmax.f32 %v4069_v57, %v4213_v59  ;;  %v4215_v40 = vpop.f32.mrb[145].mxu1 }
 0x804   : > { %v4216_v41 = vpop.f32.mrb[146].mxu1 }
 0x805   : > { %v4247_v47 = vmax.f32 %v4072_v38, %v4216_v41  ;;  %v4218_v14 = vpop.f32.mrb[147].mxu1 }
 0x807   : > { %v4255_v31 = vpack.c.bf16 %v4247_v47, %v4246_v6 }
 0x809   : > { %7197 = vmatmul.mubr.msk.bf16.gmra.mrb[164].mxu1 %vm4266_vm10, %v4255_v31 }
 0x80a   : > { %v4221_v25 = vpop.f32.mrb[148].mxu1  ;;  %7200 = vmatprep.mubr.msk.bf16.mxu1 %vm7854_vm0, %v7852_v0 }
 0x80b   : > { %v4248_v13 = vmax.f32 %v4077_v19, %v4221_v25  ;;  %v4223_v12 = vpop.f32.mrb[149].mxu1 }
 0x80c   : > { %v4224_v37 = vpop.f32.mrb[150].mxu1 }
 0x80d   : > { %v4249_v39 = vmax.f32 %v4080_v17, %v4224_v37  ;;  %v4226_v26 = vpop.f32.mrb[151].mxu1 }
 0x80e   : > { %v7762_v26 = vld [vmem:[%s9663_s9 + $0x3c] sm:$0xff]  }
 0x80f   : > { %v4256_v15 = vpack.c.bf16 %v4249_v39, %v4248_v13 }
 0x811   : > { %7201 = vmatmul.mubr.msk.bf16.gmra.mrb[168].mxu1 %vm4266_vm10, %v4256_v15 }
 0x812   : > { %v4229_v33 = vpop.f32.mrb[152].mxu1  ;;  %7204 = vmatprep.mubr.msk.bf16.mxu1 %vm7854_vm0, %v7852_v0 }
 0x813   : > { %v4250_v60 = vmax.f32 %v4085_v4, %v4229_v33  ;;  %v4231_v11 = vpop.f32.mrb[153].mxu1 }
 0x814   : > { %v4232_v43 = vpop.f32.mrb[154].mxu1 }
 0x815   : > { %v4251_v34 = vmax.f32 %v4088_v27, %v4232_v43  ;;  %v4234_v35 = vpop.f32.mrb[155].mxu1 }
 0x817   : > { %v4257_v50 = vpack.c.bf16 %v4251_v34, %v4250_v60 }
 0x819   : > { %7205 = vmatmul.mubr.msk.bf16.gmra.mrb[172].mxu1 %vm4266_vm10, %v4257_v50 }
 0x81a   : > { %v4237_v63 = vpop.f32.mrb[156].mxu1  ;;  %7208 = vmatprep.mubr.msk.bf16.mxu1 %vm7854_vm0, %v7852_v0 }
 0x81b   : > { %v4252_v36 = vmax.f32 %v4093_v51, %v4237_v63  ;;  %v4239_v52 = vpop.f32.mrb[157].mxu1 }
 0x81c   : > { %v4240_v5 = vpop.f32.mrb[158].mxu1 }
 0x81d   : > { %v4253_v23 = vmax.f32 %v4096_v10, %v4240_v5  ;;  %v4242_v55 = vpop.f32.mrb[159].mxu1 }
 0x81e   : > { %v7763_v55 = vld [vmem:[%s9663_s9 + $0x44] sm:$0xff]  }
 0x81f   : > { %v4258_v48 = vpack.c.bf16 %v4253_v23, %v4252_v36 }
 0x821   : > { %7209 = vmatmul.mubr.msk.bf16.gmra.mrb[176].mxu1 %vm4266_vm10, %v4258_v48 }
 0x822   : > { %7214 = vmatprep.mubr.msk.bf16.mxu1 %vm7854_vm0, %v7852_v0 }
 0x829   : > { %7215 = vmatmul.mubr.msk.bf16.vlgmr.msra.gmra.mrb[180].mxu1 %vm4266_vm10, %v4254_v44 }
 0x82a   : > { %7218 = vmatprep.mubr.msk.bf16.mxu1 %vm7854_vm0, %v7852_v0 }
 0x831   : > { %7219 = vmatmul.mubr.msk.bf16.gmra.mrb[184].mxu1 %vm4266_vm10, %v4255_v31 }
 0x832   : > { %7222 = vmatprep.mubr.msk.bf16.mxu1 %vm7854_vm0, %v7852_v0 }
 0x839   : > { %7223 = vmatmul.mubr.msk.bf16.gmra.mrb[188].mxu1 %vm4266_vm10, %v4256_v15 }
 0x83a   : > { %7226 = vmatprep.mubr.msk.bf16.mxu1 %vm7854_vm0, %v7852_v0 }
 0x841   : > { %7227 = vmatmul.mubr.msk.bf16.gmra.mrb[192].mxu1 %vm4266_vm10, %v4257_v50 }
 0x842   : > { %7230 = vmatprep.mubr.msk.bf16.mxu1 %vm7854_vm0, %v7852_v0 }
 0x849   : > { %7231 = vmatmul.mubr.msk.bf16.gmra.mrb[196].mxu1 %vm4266_vm10, %v4258_v48  ;;  %v7764_v48 = vld [vmem:[%s9663_s9 + $0x4c] sm:$0xff]  }
 0x84a   : > { %7244 = vmatprep.mubr.msk.bf16.mxu1 %vm4547_vm11, %v7762_v26  ;;  %v7797_v26 = vld [vmem:[%s9663_s9 + $0x108] sm:$0xff]  }
 0x8d4   : > { %v4320_v2 = vpop.f32.mrb[160].mxu1 }
 0x8d5   : > { %v7194_v18 = vpop.f32.mrb[161].mxu1 }
 0x8d6   : > { %v4323_v21 = vpop.f32.mrb[162].mxu1  ;;  %v7766_v18 = vld [vmem:[%s9663_s9 + $0x5c] sm:$0xff]  }
 0x8d7   : > { %v7195_v56 = vpop.f32.mrb[163].mxu1 }
 0x8d8   : > { %v7768_v56 = vld [vmem:[%s9663_s9 + $0x6c] sm:$0xff]  }
 0x8dc   : > { %v4328_v49 = vpop.f32.mrb[164].mxu1 }
 0x8dd   : > { %v7198_v61 = vpop.f32.mrb[165].mxu1 }
 0x8de   : > { %v4331_v16 = vpop.f32.mrb[166].mxu1  ;;  %v7769_v61 = vld [vmem:[%s9663_s9 + $0x74] ss:$0 sps:$4 sm:$0xff]  }
 0x8df   : > { %v7199_v58 = vpop.f32.mrb[167].mxu1 }
 0x8e0   : > { %v7771_v58 = vld [vmem:[%s9663_s9 + $0x8] sm:$0xff]  }
 0x8e4   : > { %v4336_v53 = vpop.f32.mrb[168].mxu1 }
 0x8e5   : > { %v7202_v45 = vpop.f32.mrb[169].mxu1 }
 0x8e6   : > { %v4339_v57 = vpop.f32.mrb[170].mxu1 }
 0x8e7   : > { %v7203_v28 = vpop.f32.mrb[171].mxu1 }
 0x8ec   : > { %v4344_v38 = vpop.f32.mrb[172].mxu1 }
 0x8ed   : > { %v7206_v20 = vpop.f32.mrb[173].mxu1 }
 0x8ee   : > { %v4347_v19 = vpop.f32.mrb[174].mxu1 }
 0x8ef   : > { %v7207_v3 = vpop.f32.mrb[175].mxu1 }
 0x8f4   : > { %v4352_v17 = vpop.f32.mrb[176].mxu1 }
 0x8f5   : > { %v7210_v42 = vpop.f32.mrb[177].mxu1 }
 0x8f6   : > { %v4355_v4 = vpop.f32.mrb[178].mxu1 }
 0x8f7   : > { %v7211_v8 = vpop.f32.mrb[179].mxu1 }
 0x8f8   : > { %v7778_v8 = vld [vmem:[%s9663_s9 + $0x78] sm:$0xff]  }
 0x8fc   : > { %v4404_v27 = vpop.f32.mrb[180].mxu1 }
 0x8fd   : > { %v4443_v9 = vmax.f32 %v4320_v2, %v4404_v27  ;;  %v7216_v51 = vpop.f32.mrb[181].mxu1  ;;  %v7765_v2 = vld [vmem:[%s9663_s9 + $0x54] sm:$0xff]   ;;  %v7779_v27 = vld [vmem:[%s9663_s9 + $0x80] sm:$0xff]  }
 0x8fe   : > { %v4407_v54 = vpop.f32.mrb[182].mxu1 }
 0x8ff   : > { %v4444_v10 = vmax.f32 %v4323_v21, %v4407_v54  ;;  %v7217_v46 = vpop.f32.mrb[183].mxu1  ;;  %v7767_v21 = vld [vmem:[%s9663_s9 + $0x64] sm:$0xff]   ;;  %v7781_v54 = vld [vmem:[%s9663_s9 + $0x90] sm:$0xff]  }
 0x900   : > { %v7782_v46 = vld [vmem:[%s9663_s9 + $0x98] sm:$0xff]  }
 0x901   : > { %v9311_v22 = vpack.c.bf16 %v4444_v10, %v4443_v9  ;;  %v7780_v9 = vld [vmem:[%s9663_s9 + $0x88] sm:$0xff]  }
 0x903   : > { %4532 = vrot.lane.b32.xlu0 %v9311_v22, %s7853_s27 }
 0x904   : > { %v4412_v30 = vpop.f32.mrb[184].mxu1 }
 0x905   : > { %v4445_v1 = vmax.f32 %v4328_v49, %v4412_v30  ;;  %v7220_v24 = vpop.f32.mrb[185].mxu1  ;;  %v7783_v30 = vld [vmem:[%s9663_s9 + $0xa0] sm:$0xff]  }
 0x906   : > { %v4415_v7 = vpop.f32.mrb[186].mxu1  ;;  %v7784_v24 = vld [vmem:[%s9663_s9 + $0xa8] sm:$0xff]  }
 0x907   : > { %v4446_v29 = vmax.f32 %v4331_v16, %v4415_v7  ;;  %v7221_v32 = vpop.f32.mrb[187].mxu1  ;;  %v7770_v16 = vld [vmem:[%s9663_s9] sm:$0xff]  }
 0x908   : > { %v7786_v32 = vld [vmem:[%s9663_s9 + $0xb4] sm:$0xff]  }
 0x909   : > { %v9315_v44 = vpack.c.bf16 %v4446_v29, %v4445_v1  ;;  %v7785_v29 = vld [vmem:[%s9663_s9 + $0xb0] ss:$0 sps:$4 sm:$0xff]  }
 0x90b   : > { %4534 = vrot.lane.b32.xlu1 %v9315_v44, %s7853_s27 }
 0x90c   : > { %v4420_v62 = vpop.f32.mrb[188].mxu1 }
 0x90d   : > { %v4447_v59 = vmax.f32 %v4336_v53, %v4420_v62  ;;  %v7224_v6 = vpop.f32.mrb[189].mxu1  ;;  %v7772_v53 = vld [vmem:[%s9663_s9 + $0x10] sm:$0xff]   ;;  %v7788_v62 = vld [vmem:[%s9663_s9 + $0xc4] sm:$0xff]  }
 0x90e   : > { %v4423_v40 = vpop.f32.mrb[190].mxu1  ;;  %v7789_v6 = vld [vmem:[%s9663_s9 + $0xcc] sm:$0xff]  }
 0x90f   : > { %v4448_v41 = vmax.f32 %v4339_v57, %v4423_v40  ;;  %v7225_v47 = vpop.f32.mrb[191].mxu1  ;;  %v7773_v57 = vld [vmem:[%s9663_s9 + $0x18] sm:$0xff]  }
 0x911   : > { %v9319_v14 = vpack.c.bf16 %v4448_v41, %v4447_v59  ;;  %v7790_v41 = vld [vmem:[%s9663_s9 + $0xd4] sm:$0xff]  }
 0x913   : > { %4536 = vrot.lane.b32.xlu0 %v9319_v14, %s7853_s27 }
 0x914   : > { %v4428_v31 = vpop.f32.mrb[192].mxu1 }
 0x915   : > { %v4449_v25 = vmax.f32 %v4344_v38, %v4428_v31  ;;  %v7228_v13 = vpop.f32.mrb[193].mxu1  ;;  %v7774_v38 = vld [vmem:[%s9663_s9 + $0x20] sm:$0xff]  }
 0x916   : > { %v4431_v12 = vpop.f32.mrb[194].mxu1  ;;  %v7793_v13 = vld [vmem:[%s9663_s9 + $0xec] ss:$0 sps:$4 sm:$0xff]  }
 0x917   : > { %v4450_v37 = vmax.f32 %v4347_v19, %v4431_v12  ;;  %v7229_v39 = vpop.f32.mrb[195].mxu1  ;;  %v7775_v19 = vld [vmem:[%s9663_s9 + $0x28] sm:$0xff]   ;;  %v7794_v12 = vld [vmem:[%s9663_s9 + $0xf0] sm:$0xff]  }
 0x918   : > { %v7796_v39 = vld [vmem:[%s9663_s9 + $0x100] sm:$0xff]  }
 0x919   : > { %v4456_v15 = vpack.c.bf16 %v4450_v37, %v4449_v25  ;;  %v7792_v25 = vld [vmem:[%s9663_s9 + $0xe4] sm:$0xff]   ;;  %v7795_v37 = vld [vmem:[%s9663_s9 + $0xf8] sm:$0xff]  }
 0x91b   : > { %4538 = vrot.lane.b32.xlu1 %v4456_v15, %s7853_s27 }
 0x91c   : > { %v4436_v33 = vpop.f32.mrb[196].mxu1 }
 0x91d   : > { %v4451_v60 = vmax.f32 %v4352_v17, %v4436_v33  ;;  %v7232_v11 = vpop.f32.mrb[197].mxu1  ;;  %v7776_v17 = vld [vmem:[%s9663_s9 + $0x30] sm:$0xff]   ;;  %v7799_v33 = vld [vmem:[%s9663_s9 + $0x118] sm:$0xff]  }
 0x91e   : > { %v4439_v43 = vpop.f32.mrb[198].mxu1  ;;  %v7801_v11 = vld [vmem:[%s9663_s9 + $0x128] ss:$0 sps:$4 sm:$0xff]  }
 0x91f   : > { %v4452_v34 = vmax.f32 %v4355_v4, %v4439_v43  ;;  %4880 = vrot.lane.b32.xlu1 %v9311_v22, %s7855_s28  ;;  %v7233_v35 = vpop.f32.mrb[199].mxu1  ;;  %v7777_v4 = vld [vmem:[%s9663_s9 + $0x38] ss:$0 sps:$4 sm:$0xff]  }
 0x921   : > { %v4457_v50 = vpack.c.bf16 %v4452_v34, %v4451_v60  ;;  %v7800_v60 = vld [vmem:[%s9663_s9 + $0x120] sm:$0xff]  }
 0x923   : > { %4884 = vrot.lane.b32.xlu1 %v9319_v14, %s7855_s28  ;;  %4540 = vrot.lane.b32.xlu0 %v4457_v50, %s7853_s27 }
 0x927   : > { %4888 = vrot.lane.b32.xlu1 %v4457_v50, %s7855_s28  ;;  %4882 = vrot.lane.b32.xlu0 %v9315_v44, %s7855_s28 }
 0x92b   : > { %5086 = vrot.lane.b32.xlu1 %v9315_v44, %s9682_s17  ;;  %4886 = vrot.lane.b32.xlu0 %v4456_v15, %s7855_s28  ;;  %s6438_s28 = sshll.u32 %s9684_s19, 4 }
 0x92c   : > { %s509_s21 = scalar_lea.vmem %s9669_s15, %s6438_s28 }
 0x92f   : > { %5090 = vrot.lane.b32.xlu1 %v4456_v15, %s9682_s17  ;;  %5084 = vrot.lane.b32.xlu0 %v9311_v22, %s9682_s17 }
 0x933   : > { %5288 = vrot.lane.b32.xlu1 %v9311_v22, %s9681_s22  ;;  %5088 = vrot.lane.b32.xlu0 %v9319_v14, %s9682_s17 }
 0x937   : > { %5292 = vrot.lane.b32.xlu1 %v9319_v14, %s9681_s22  ;;  %5092 = vrot.lane.b32.xlu0 %v4457_v50, %s9682_s17 }
 0x93b   : > { %5296 = vrot.lane.b32.xlu1 %v4457_v50, %s9681_s22  ;;  %5290 = vrot.lane.b32.xlu0 %v9315_v44, %s9681_s22 }
 0x93f   : > { %5294 = vrot.lane.b32.xlu0 %v4456_v15, %s9681_s22 }
 0x975   : > { %v4533_v63 = vpop.permute.xlu0 %4532 }
 0x976   : > { %7234 = vmatprep.subr.bf16.mxu1 %v4533_v63 }
 0x977   : > { %7235 = vmatpush3.bf16.msra.mxu1 %v4533_v63  ;;  %v7802_v63 = vld [vmem:[%s9665_s11] sm:$0xff]  }
 0x978   : > { %7380 = vmatprep.mubr.msk.bf16.mxu0 %vm5541_vm12, %v7802_v63 }
 0x97d   : > { %v4535_v36 = vpop.permute.xlu1 %4534 }
 0x97e   : > { %7236 = vmatprep.subr.bf16.mxu1 %v4535_v36 }
 0x97f   : > { %7237 = vmatpush3.bf16.msra.mxu1 %v4535_v36 }
 0x985   : > { %v4537_v52 = vpop.permute.xlu0 %4536 }
 0x986   : > { %7238 = vmatprep.subr.bf16.mxu1 %v4537_v52 }
 0x987   : > { %7239 = vmatpush3.bf16.msra.mxu1 %v4537_v52 }
 0x98d   : > { %v4539_v5 = vpop.permute.xlu1 %4538 }
 0x98e   : > { %7240 = vmatprep.subr.bf16.mxu1 %v4539_v5 }
 0x98f   : > { %7241 = vmatpush3.bf16.msra.mxu1 %v4539_v5 }
 0x991   : > { %v4881_v49 = vpop.permute.xlu1 %4880 }
 0x995   : > { %v4541_v23 = vpop.permute.xlu0 %4540  ;;  %v4885_v28 = vpop.permute.xlu1 %4884 }
 0x996   : > { %7242 = vmatprep.subr.bf16.mxu1 %v4541_v23 }
 0x997   : > { %7243 = vmatpush3.bf16.msra.mxu1 %v4541_v23 }
 0x998   : > { %7260 = vmatprep.subr.bf16.mxu1 %v9311_v22 }
 0x999   : > { %v4883_v45 = vpop.permute.xlu0 %4882  ;;  %v4889_v3 = vpop.permute.xlu1 %4888 }
 0x99a   : > { %7245 = vmatmul.mubr.msk.bf16.vlgmr.msra.gmra.mrb[200].mxu1 %vm4547_vm11, %v7763_v55 }
 0x99b   : > { %7261 = vmatpush3.bf16.msra.mxu1 %v9311_v22  ;;  %7248 = vmatprep.mubr.msk.bf16.mxu1 %vm4547_vm11, %v7764_v48 }
 0x99c   : > { %7262 = vmatprep.subr.bf16.mxu1 %v9315_v44 }
 0x99d   : > { %v4887_v20 = vpop.permute.xlu0 %4886  ;;  %v5087_v51 = vpop.permute.xlu1 %5086 }
 0x99f   : > { %7263 = vmatpush3.bf16.msra.mxu1 %v9315_v44  ;;  %v7787_v44 = vld [vmem:[%s9663_s9 + $0xbc] sm:$0xff]  }
 0x9a0   : > { %7264 = vmatprep.subr.bf16.mxu1 %v9319_v14 }
 0x9a1   : > { %v5085_v42 = vpop.permute.xlu0 %5084  ;;  %v5091_v22 = vpop.permute.xlu1 %5090 }
 0x9a2   : > { %7249 = vmatmul.mubr.msk.bf16.gmra.mrb[204].mxu1 %vm4547_vm11, %v7765_v2 }
 0x9a3   : > { %7265 = vmatpush3.bf16.msra.mxu1 %v9319_v14  ;;  %7252 = vmatprep.mubr.msk.bf16.mxu1 %vm4547_vm11, %v7766_v18  ;;  %v7791_v14 = vld [vmem:[%s9663_s9 + $0xdc] sm:$0xff]  }
 0x9a4   : > { %7266 = vmatprep.subr.bf16.mxu1 %v4456_v15 }
 0x9a5   : > { %v5089_v10 = vpop.permute.xlu0 %5088  ;;  %v5289_v7 = vpop.permute.xlu1 %5288 }
 0x9a7   : > { %7267 = vmatpush3.bf16.msra.mxu1 %v4456_v15  ;;  %v7798_v15 = vld [vmem:[%s9663_s9 + $0x110] sm:$0xff]  }
 0x9a8   : > { %7268 = vmatprep.subr.bf16.mxu1 %v4457_v50 }
 0x9a9   : > { %v5093_v1 = vpop.permute.xlu0 %5092  ;;  %v5293_v40 = vpop.permute.xlu1 %5292 }
 0x9aa   : > { %7253 = vmatmul.mubr.msk.bf16.gmra.mrb[208].mxu1 %vm4547_vm11, %v7767_v21 }
 0x9ab   : > { %7269 = vmatpush3.bf16.msra.mxu1 %v4457_v50  ;;  %7256 = vmatprep.mubr.msk.bf16.mxu1 %vm4547_vm11, %v7768_v56 }
 0x9ac   : > { %7286 = vmatprep.subr.bf16.mxu1 %v4881_v49 }
 0x9ad   : > { %v5291_v59 = vpop.permute.xlu0 %5290  ;;  %v5297_v31 = vpop.permute.xlu1 %5296 }
 0x9b1   : > { %v5295_v47 = vpop.permute.xlu0 %5294 }
 0x9b2   : > { %7257 = vmatmul.mubr.msk.bf16.gmra.mrb[212].mxu1 %vm4547_vm11, %v7769_v61 }
 0x9b3   : > { %7270 = vmatprep.mubr.msk.bf16.mxu1 %vm4547_vm11, %v7770_v16 }
 0x9ba   : > { %7271 = vmatmul.mubr.msk.bf16.vlgmr.msra.gmra.mrb[200].mxu1 %vm4547_vm11, %v7771_v58 }
 0x9bb   : > { %7287 = vmatpush3.bf16.msra.mxu1 %v4881_v49  ;;  %7274 = vmatprep.mubr.msk.bf16.mxu1 %vm4547_vm11, %v7772_v53 }
 0x9bc   : > { %7288 = vmatprep.subr.bf16.mxu1 %v4883_v45 }
 0x9bf   : > { %7289 = vmatpush3.bf16.msra.mxu1 %v4883_v45 }
 0x9c0   : > { %7290 = vmatprep.subr.bf16.mxu1 %v4885_v28 }
 0x9c2   : > { %7275 = vmatmul.mubr.msk.bf16.gmra.mrb[204].mxu1 %vm4547_vm11, %v7773_v57 }
 0x9c3   : > { %7291 = vmatpush3.bf16.msra.mxu1 %v4885_v28  ;;  %7278 = vmatprep.mubr.msk.bf16.mxu1 %vm4547_vm11, %v7774_v38 }
 0x9c4   : > { %7292 = vmatprep.subr.bf16.mxu1 %v4887_v20 }
 0x9c7   : > { %7293 = vmatpush3.bf16.msra.mxu1 %v4887_v20 }
 0x9c8   : > { %7294 = vmatprep.subr.bf16.mxu1 %v4889_v3 }
 0x9ca   : > { %7279 = vmatmul.mubr.msk.bf16.gmra.mrb[208].mxu1 %vm4547_vm11, %v7775_v19 }
 0x9cb   : > { %7295 = vmatpush3.bf16.msra.mxu1 %v4889_v3  ;;  %7282 = vmatprep.mubr.msk.bf16.mxu1 %vm4547_vm11, %v7776_v17  ;;  %v5440_v3 = vld [vmem:[%s9664_s10 + $0x10] sm:$0xff]  ;;  %v5438_v17 = vld [vmem:[%s9664_s10] sm:$0xff] }
 0x9cc   : > { %7312 = vmatprep.subr.bf16.mxu1 %v5085_v42 }
 0x9d2   : > { %7283 = vmatmul.mubr.msk.bf16.gmra.mrb[216].mxu1 %vm4547_vm11, %v7777_v4  ;;  %v5441_v4 = vld [vmem:[%s9664_s10 + $0x18] sm:$0xff] }
 0x9d3   : > { %7296 = vmatprep.mubr.msk.bf16.mxu1 %vm4547_vm11, %v7778_v8 }
 0x9da   : > { %7297 = vmatmul.mubr.msk.bf16.vlgmr.msra.gmra.mrb[200].mxu1 %vm4547_vm11, %v7779_v27 }
 0x9db   : > { %7313 = vmatpush3.bf16.msra.mxu1 %v5085_v42  ;;  %7300 = vmatprep.mubr.msk.bf16.mxu1 %vm4547_vm11, %v7780_v9  ;;  %v5439_v9 = vld [vmem:[%s9664_s10 + $0x8] sm:$0xff] }
 0x9dc   : > { %7314 = vmatprep.subr.bf16.mxu1 %v5087_v51 }
 0x9df   : > { %7315 = vmatpush3.bf16.msra.mxu1 %v5087_v51 }
 0x9e0   : > { %7316 = vmatprep.subr.bf16.mxu1 %v5089_v10 }
 0x9e2   : > { %7301 = vmatmul.mubr.msk.bf16.gmra.mrb[204].mxu1 %vm4547_vm11, %v7781_v54 }
 0x9e3   : > { %7317 = vmatpush3.bf16.msra.mxu1 %v5089_v10  ;;  %7304 = vmatprep.mubr.msk.bf16.mxu1 %vm4547_vm11, %v7782_v46 }
 0x9e4   : > { %7318 = vmatprep.subr.bf16.mxu1 %v5091_v22 }
 0x9e7   : > { %7319 = vmatpush3.bf16.msra.mxu1 %v5091_v22 }
 0x9e8   : > { %7320 = vmatprep.subr.bf16.mxu1 %v5093_v1 }
 0x9ea   : > { %7305 = vmatmul.mubr.msk.bf16.gmra.mrb[208].mxu1 %vm4547_vm11, %v7783_v30 }
 0x9eb   : > { %7321 = vmatpush3.bf16.msra.mxu1 %v5093_v1  ;;  %7308 = vmatprep.mubr.msk.bf16.mxu1 %vm4547_vm11, %v7784_v24 }
 0x9ec   : > { %7338 = vmatprep.subr.bf16.mxu1 %v5289_v7 }
 0x9f2   : > { %7309 = vmatmul.mubr.msk.bf16.gmra.mrb[220].mxu1 %vm4547_vm11, %v7785_v29  ;;  %v5444_v29 = vld [vmem:[%s9664_s10 + $0x30] sm:$0xff] }
 0x9f3   : > { %7322 = vmatprep.mubr.msk.bf16.mxu1 %vm4547_vm11, %v7786_v32 }
 0x9fa   : > { %7323 = vmatmul.mubr.msk.bf16.vlgmr.msra.gmra.mrb[200].mxu1 %vm4547_vm11, %v7787_v44  ;;  %v5442_v44 = vld [vmem:[%s9664_s10 + $0x20] sm:$0xff] }
 0x9fb   : > { %7339 = vmatpush3.bf16.msra.mxu1 %v5289_v7  ;;  %7326 = vmatprep.mubr.msk.bf16.mxu1 %vm4547_vm11, %v7788_v62 }
 0x9fc   : > { %7340 = vmatprep.subr.bf16.mxu1 %v5291_v59 }
 0x9ff   : > { %7341 = vmatpush3.bf16.msra.mxu1 %v5291_v59 }
 0xa00   : > { %7342 = vmatprep.subr.bf16.mxu1 %v5293_v40 }
 0xa02   : > { %7327 = vmatmul.mubr.msk.bf16.gmra.mrb[204].mxu1 %vm4547_vm11, %v7789_v6  ;;  %v5445_v6 = vld [vmem:[%s9664_s10 + $0x38] sm:$0xff] }
 0xa03   : > { %7343 = vmatpush3.bf16.msra.mxu1 %v5293_v40  ;;  %7330 = vmatprep.mubr.msk.bf16.mxu1 %vm4547_vm11, %v7790_v41 }
 0xa04   : > { %7344 = vmatprep.subr.bf16.mxu1 %v5295_v47 }
 0xa07   : > { %7345 = vmatpush3.bf16.msra.mxu1 %v5295_v47  ;;  %v5443_v47 = vld [vmem:[%s9664_s10 + $0x28] sm:$0xff] }
 0xa08   : > { %7346 = vmatprep.subr.bf16.mxu1 %v5297_v31 }
 0xa0a   : > { %7331 = vmatmul.mubr.msk.bf16.gmra.mrb[208].mxu1 %vm4547_vm11, %v7791_v14 }
 0xa0b   : > { %7347 = vmatpush3.bf16.msra.mxu1 %v5297_v31  ;;  %7334 = vmatprep.mubr.msk.bf16.mxu1 %vm4547_vm11, %v7792_v25 }
 0xa12   : > { %7335 = vmatmul.mubr.msk.bf16.gmra.mrb[224].mxu1 %vm4547_vm11, %v7793_v13 }
 0xa13   : > { %7348 = vmatprep.mubr.msk.bf16.mxu1 %vm4547_vm11, %v7794_v12 }
 0xa1a   : > { %7349 = vmatmul.mubr.msk.bf16.vlgmr.msra.gmra.mrb[200].mxu1 %vm4547_vm11, %v7795_v37 }
 0xa1b   : > { %7352 = vmatprep.mubr.msk.bf16.mxu1 %vm4547_vm11, %v7796_v39 }
 0xa22   : > { %7353 = vmatmul.mubr.msk.bf16.gmra.mrb[204].mxu1 %vm4547_vm11, %v7797_v26 }
 0xa23   : > { %7356 = vmatprep.mubr.msk.bf16.mxu1 %vm4547_vm11, %v7798_v15 }
 0xa2a   : > { %7357 = vmatmul.mubr.msk.bf16.gmra.mrb[208].mxu1 %vm4547_vm11, %v7799_v33  ;;  %v5448_v33 = vld [vmem:[%s9664_s10 + $0x50] sm:$0xff] }
 0xa2b   : > { %7360 = vmatprep.mubr.msk.bf16.mxu1 %vm4547_vm11, %v7800_v60 }
 0xa32   : > { %7361 = vmatmul.mubr.msk.bf16.gmra.mrb[228].mxu1 %vm4547_vm11, %v7801_v11  ;;  %v5446_v11 = vld [vmem:[%s9664_s10 + $0x40] sm:$0xff] }
 0xa85   : > { %v7258_v43 = vpop.f32.mrb[212].mxu1 }
 0xa86   : > { %v4654_v34 = vpop.f32.mrb[213].mxu1 }
 0xa87   : > { %v7259_v35 = vpop.f32.mrb[214].mxu1 }
 0xa88   : > { %v4657_v50 = vpop.f32.mrb[215].mxu1  ;;  %v5449_v35 = vld [vmem:[%s9664_s10 + $0x58] sm:$0xff] }
 0xaa5   : > { %v7284_v36 = vpop.f32.mrb[216].mxu1 }
 0xaa6   : > { %v4821_v52 = vadd.f32 %v7284_v36, %v7258_v43  ;;  %v4812_v5 = vpop.f32.mrb[217].mxu1  ;;  %v5447_v36 = vld [vmem:[%s9664_s10 + $0x48] sm:$0xff] }
 0xaa7   : > { %v4813_v23 = vadd.f32 %v4812_v5, %v4654_v34  ;;  %v7285_v55 = vpop.f32.mrb[218].mxu1 }
 0xaa8   : > { %v4815_v48 = vpop.f32.mrb[219].mxu1 }
 0xaa9   : > { %v4816_v2 = vadd.f32 %v4815_v48, %v4657_v50 }
 0xac5   : > { %v7310_v18 = vpop.f32.mrb[220].mxu1 }
 0xac6   : > { %v5029_v21 = vadd.f32 %v7310_v18, %v4821_v52  ;;  %v5001_v56 = vpop.f32.mrb[221].mxu1 }
 0xac7   : > { %v5027_v49 = vadd.f32 %v5001_v56, %v4813_v23  ;;  %v7311_v61 = vpop.f32.mrb[222].mxu1 }
 0xac8   : > { %v5004_v16 = vpop.f32.mrb[223].mxu1 }
 0xac9   : > { %v5028_v58 = vadd.f32 %v5004_v16, %v4816_v2 }
 0xae5   : > { %v7336_v53 = vpop.f32.mrb[224].mxu1 }
 0xae6   : > { %v9519_v45 = vadd.f32 %v7336_v53, %v5029_v21  ;;  %v5205_v57 = vpop.f32.mrb[225].mxu1  ;;  %v5452_v53 = vld [vmem:[%s9664_s10 + $0x70] sm:$0xff] }
 0xae7   : > { %v9521_v28 = vadd.f32 %v5205_v57, %v5027_v49  ;;  %v7337_v38 = vpop.f32.mrb[226].mxu1 }
 0xae8   : > { %v5208_v20 = vpop.f32.mrb[227].mxu1  ;;  %v5450_v38 = vld [vmem:[%s9664_s10 + $0x60] sm:$0xff] }
 0xae9   : > { %v9523_v19 = vadd.f32 %v5208_v20, %v5028_v58 }
 0xaed   : > { %v7350_v42 = vpop.f32.mrb[200].mxu1 }
 0xaee   : > { %v5455_v8 = vadd.f32 %v7350_v42, %v5440_v3  ;;  %v5361_v27 = vpop.f32.mrb[201].mxu1  ;;  %v5451_v42 = vld [vmem:[%s9664_s10 + $0x68] sm:$0xff] }
 0xaef   : > { %v5453_v51 = vadd.f32 %v5438_v17, %v5361_v27  ;;  %v7351_v54 = vpop.f32.mrb[202].mxu1 }
 0xaf0   : > { %v5456_v10 = vadd.f32 %v7351_v54, %v5441_v4  ;;  %v5364_v46 = vpop.f32.mrb[203].mxu1  ;;  %v5470_v30 = vmax.f32 %v5455_v8, 0.0 }
 0xaf1   : > { %v5454_v22 = vadd.f32 %v5439_v9, %v5364_v46  ;;  %v5468_v24 = vmax.f32 %v5453_v51, 0.0 }
 0xaf2   : > { %v5471_v1 = vmax.f32 %v5456_v10, 0.0 }
 0xaf3   : > { %v5469_v7 = vmax.f32 %v5454_v22, 0.0  ;;  %v7803_v22 = vld [vmem:[%s9665_s11 + $0x8] sm:$0xff]  }
 0xaf4   : > { %v5484_v32 = vpack.c.bf16 %v5471_v1, %v5470_v30  ;;  %v7805_v30 = vld [vmem:[%s9665_s11 + $0x18] sm:$0xff]   ;;  %v7806_v1 = vld [vmem:[%s9665_s11 + $0x20] sm:$0xff]  }
 0xaf5   : > { %v5483_v62 = vpack.c.bf16 %v5469_v7, %v5468_v24  ;;  %v7354_v59 = vpop.f32.mrb[204].mxu1  ;;  %v7807_v24 = vld [vmem:[%s9665_s11 + $0x28] ss:$0 sps:$4 sm:$0x33]   ;;  %v5504_v7 = vld [vmem:[%s9666_s12 + $0x10] sm:$0xff] }
 0xaf6   : > { %v5459_v40 = vadd.f32 %v7354_v59, %v5444_v29  ;;  %v5377_v41 = vpop.f32.mrb[205].mxu1  ;;  %v5502_v29 = vld [vmem:[%s9666_s12] sm:$0xff] }
 0xaf7   : > { %v5457_v14 = vadd.f32 %v5442_v44, %v5377_v41  ;;  %v7355_v31 = vpop.f32.mrb[206].mxu1  ;;  %7364 = vmatprep.subr.bf16.mxu0 %v5483_v62  ;;  %v5505_v44 = vld [vmem:[%s9666_s12 + $0x18] sm:$0xff] }
 0xaf8   : > { %v5460_v25 = vadd.f32 %v7355_v31, %v5445_v6  ;;  %v5380_v13 = vpop.f32.mrb[207].mxu1  ;;  %7365 = vmatpush3.bf16.msra.mxu0 %v5483_v62  ;;  %v5474_v37 = vmax.f32 %v5459_v40, 0.0  ;;  %v5503_v6 = vld [vmem:[%s9666_s12 + $0x8] sm:$0xff] }
 0xaf9   : > { %v5458_v12 = vadd.f32 %v5443_v47, %v5380_v13  ;;  %7366 = vmatprep.subr.bf16.mxu0 %v5484_v32  ;;  %v5472_v26 = vmax.f32 %v5457_v14, 0.0 }
 0xafa   : > { %v5475_v39 = vmax.f32 %v5460_v25, 0.0 }
 0xafb   : > { %v5473_v15 = vmax.f32 %v5458_v12, 0.0 }
 0xafc   : > { %v5486_v60 = vpack.c.bf16 %v5475_v39, %v5474_v37  ;;  %7367 = vmatpush3.bf16.msra.mxu0 %v5484_v32  ;;  %v5508_v39 = vld [vmem:[%s9666_s12 + $0x30] sm:$0xff] }
 0xafd   : > { %v5485_v43 = vpack.c.bf16 %v5473_v15, %v5472_v26  ;;  %v7358_v34 = vpop.f32.mrb[208].mxu1  ;;  %v5506_v15 = vld [vmem:[%s9666_s12 + $0x20] sm:$0xff] }
 0xafe   : > { %v5463_v50 = vadd.f32 %v7358_v34, %v5448_v33  ;;  %v5393_v63 = vpop.f32.mrb[209].mxu1 }
 0xaff   : > { %v5461_v52 = vadd.f32 %v5446_v11, %v5393_v63  ;;  %v7359_v5 = vpop.f32.mrb[210].mxu1  ;;  %7368 = vmatprep.subr.bf16.mxu0 %v5485_v43  ;;  %v5509_v11 = vld [vmem:[%s9666_s12 + $0x38] sm:$0xff] }
 0xb00   : > { %v5464_v23 = vadd.f32 %v7359_v5, %v5449_v35  ;;  %v5396_v55 = vpop.f32.mrb[211].mxu1  ;;  %7369 = vmatpush3.bf16.msra.mxu0 %v5485_v43  ;;  %v5478_v2 = vmax.f32 %v5463_v50, 0.0  ;;  %v5507_v35 = vld [vmem:[%s9666_s12 + $0x28] sm:$0xff] }
 0xb01   : > { %v5462_v48 = vadd.f32 %v5447_v36, %v5396_v55  ;;  %7370 = vmatprep.subr.bf16.mxu0 %v5486_v60  ;;  %v5476_v21 = vmax.f32 %v5461_v52, 0.0 }
 0xb02   : > { %v5479_v18 = vmax.f32 %v5464_v23, 0.0 }
 0xb03   : > { %v5477_v56 = vmax.f32 %v5462_v48, 0.0 }
 0xb04   : > { %v5488_v49 = vpack.c.bf16 %v5479_v18, %v5478_v2  ;;  %7371 = vmatpush3.bf16.msra.mxu0 %v5486_v60  ;;  %v5512_v18 = vld [vmem:[%s9666_s12 + $0x50] sm:$0xf] }
 0xb05   : > { %v5487_v61 = vpack.c.bf16 %v5477_v56, %v5476_v21  ;;  %v7362_v16 = vpop.f32.mrb[228].mxu1  ;;  %v5510_v56 = vld [vmem:[%s9666_s12 + $0x40] sm:$0xff] }
 0xb06   : > { %v5437_v58 = vadd.f32 %v7362_v16, %v9519_v45  ;;  %v5409_v57 = vpop.f32.mrb[229].mxu1 }
 0xb07   : > { %v5435_v20 = vadd.f32 %v5409_v57, %v9521_v28  ;;  %v7363_v3 = vpop.f32.mrb[230].mxu1  ;;  %7372 = vmatprep.subr.bf16.mxu0 %v5487_v61 }
 0xb08   : > { %v5412_v17 = vpop.f32.mrb[231].mxu1  ;;  %7373 = vmatpush3.bf16.msra.mxu0 %v5487_v61  ;;  %v5467_v45 = vadd.f32 %v5452_v53, %v5437_v58  ;;  %v5511_v53 = vld [vmem:[%s9666_s12 + $0x48] sm:$0xff] }
 0xb09   : > { %v5465_v4 = vadd.f32 %v5450_v38, %v5435_v20  ;;  %v5436_v8 = vadd.f32 %v5412_v17, %v9523_v19  ;;  %7374 = vmatprep.subr.bf16.mxu0 %v5488_v49  ;;  %v7804_v19 = vld [vmem:[%s9665_s11 + $0x10] sm:$0xff]  }
 0xb0a   : > { %v5482_v9 = vmax.f32 %v5467_v45, 0.0 }
 0xb0b   : > { %v5466_v27 = vadd.f32 %v5451_v42, %v5436_v8  ;;  %v5480_v51 = vmax.f32 %v5465_v4, 0.0 }
 0xb0c   : > { %7375 = vmatpush3.bf16.msra.mxu0 %v5488_v49  ;;  %v5490_v28 = vpack.c.bf16 %v5482_v9, %v5482_v9  ;;  %v7808_v9 = vld [vmem:[%s9667_s13] sm:$0x1f]  }
 0xb0d   : > { %v5481_v54 = vmax.f32 %v5466_v27, 0.0 }
 0xb0e   : > { %v5561_v46 = vsel %vm2070_vm3, %v5490_v28, 0 }
 0xb0f   : > { %v5489_v10 = vpack.c.bf16 %v5481_v54, %v5480_v51  ;;  %v5662_v51 = vld [vmem:[%s9668_s14] sm:$0xff] }
 0xb11   : > { %7376 = vmatprep.subr.bf16.mxu0 %v5489_v10 }
 0xb12   : > { %7377 = vmatpush3.bf16.msra.mxu0 %v5489_v10 }
 0xb13   : > { %7555 = vmatprep.subr.msk.bf16.mxu0 %vm2070_vm3, %v5490_v28 }
 0xb16   : > { %7379 = vmatpush3.bf16.msra.mxu0 %v5561_v46 }
 0xb17   : > { %7392 = vmatprep.subr.bf16.mxu0 %v7852_v0 }
 0xb19   : > { %7381 = vmatmul.mubr.msk.bf16.vlgmr.msra.gmra.mrb[192].mxu0 %vm5541_vm12, %v7803_v22 }
 0xb1a   : > { %7384 = vmatprep.mubr.msk.bf16.mxu0 %vm5541_vm12, %v7804_v19 }
 0xb21   : > { %7385 = vmatmul.mubr.msk.bf16.gmra.mrb[196].mxu0 %vm5541_vm12, %v7805_v30 }
 0xb22   : > { %7388 = vmatprep.mubr.msk.bf16.mxu0 %vm5541_vm12, %v7806_v1 }
 0xb29   : > { %7389 = vmatmul.mubr.msk.bf16.gmra.mrb[200].mxu0 %vm5541_vm12, %v7807_v24 }
 0xb2a   : > { %7404 = vmatprep.mubr.msk.bf16.mxu0 %vm7854_vm0, %v7852_v0 }
 0xbec   : > { %v7382_v32 = vpop.f32.mrb[192].mxu0 }
 0xbed   : > { %v5606_v62 = vadd.f32 %v7382_v32, %v5504_v7  ;;  %v5597_v59 = vpop.f32.mrb[193].mxu0 }
 0xbee   : > { %v5598_v40 = vadd.f32 %v5597_v59, %v5502_v29  ;;  %v7383_v41 = vpop.f32.mrb[194].mxu0 }
 0xbef   : > { %v5609_v47 = vadd.f32 %v7383_v41, %v5505_v44  ;;  %v5600_v14 = vpop.f32.mrb[195].mxu0  ;;  %v5645_v25 = vmax.f32 %v5606_v62, 0.0 }
 0xbf0   : > { %v5601_v31 = vadd.f32 %v5600_v14, %v5503_v6  ;;  %v5643_v12 = vmax.f32 %v5598_v40, 0.0 }
 0xbf1   : > { %v5646_v13 = vmax.f32 %v5609_v47, 0.0 }
 0xbf2   : > { %v5644_v37 = vmax.f32 %v5601_v31, 0.0 }
 0xbf3   : > { %v5657_v26 = vpack.c.bf16 %v5646_v13, %v5645_v25 }
 0xbf4   : > { %v5656_v33 = vpack.c.bf16 %v5644_v37, %v5643_v12  ;;  %v7386_v60 = vpop.f32.mrb[196].mxu0 }
 0xbf5   : > { %v5622_v43 = vadd.f32 %v7386_v60, %v5508_v39  ;;  %v5613_v34 = vpop.f32.mrb[197].mxu0 }
 0xbf6   : > { %v5614_v50 = vadd.f32 %v5613_v34, %v5506_v15  ;;  %v7387_v63 = vpop.f32.mrb[198].mxu0  ;;  %7393 = vmatpush3.bf16.msra.mxu0 %v5656_v33 }
 0xbf7   : > { %v5625_v36 = vadd.f32 %v7387_v63, %v5509_v11  ;;  %v5616_v52 = vpop.f32.mrb[199].mxu0  ;;  %7394 = vmatprep.subr.bf16.mxu0 %v7852_v0  ;;  %v5649_v23 = vmax.f32 %v5622_v43, 0.0 }
 0xbf8   : > { %v5617_v5 = vadd.f32 %v5616_v52, %v5507_v35  ;;  %v5647_v48 = vmax.f32 %v5614_v50, 0.0 }
 0xbf9   : > { %v5650_v55 = vmax.f32 %v5625_v36, 0.0 }
 0xbfa   : > { %v5648_v2 = vmax.f32 %v5617_v5, 0.0  ;;  %7395 = vmatpush3.bf16.msra.mxu0 %v5657_v26 }
 0xbfb   : > { %v5659_v21 = vpack.c.bf16 %v5650_v55, %v5649_v23  ;;  %7396 = vmatprep.subr.bf16.mxu0 %v7852_v0 }
 0xbfc   : > { %v5658_v49 = vpack.c.bf16 %v5648_v2, %v5647_v48  ;;  %v7390_v61 = vpop.f32.mrb[200].mxu0 }
 0xbfd   : > { %v5638_v16 = vadd.f32 %v7390_v61, %v5512_v18  ;;  %v5629_v58 = vpop.f32.mrb[201].mxu0 }
 0xbfe   : > { %v5630_v57 = vadd.f32 %v5629_v58, %v5510_v56  ;;  %v7391_v38 = vpop.f32.mrb[202].mxu0  ;;  %7397 = vmatpush3.bf16.msra.mxu0 %v5658_v49 }
 0xbff   : > { %v5632_v20 = vpop.f32.mrb[203].mxu0  ;;  %7398 = vmatprep.subr.bf16.mxu0 %v7852_v0  ;;  %v5653_v17 = vmax.f32 %v5638_v16, 0.0 }
 0xc00   : > { %v5633_v3 = vadd.f32 %v5632_v20, %v5511_v53  ;;  %v5651_v42 = vmax.f32 %v5630_v57, 0.0 }
 0xc01   : > { %v5661_v8 = vpack.c.bf16 %v5653_v17, %v5653_v17 }
 0xc02   : > { %v5652_v45 = vmax.f32 %v5633_v3, 0.0  ;;  %7399 = vmatpush3.bf16.msra.mxu0 %v5659_v21 }
 0xc03   : > { %7400 = vmatprep.subr.bf16.mxu0 %v7852_v0  ;;  %v5673_v27 = vsel %vm2711_vm7, %v5661_v8, 0 }
 0xc04   : > { %v5660_v4 = vpack.c.bf16 %v5652_v45, %v5651_v42 }
 0xc06   : > { %7401 = vmatpush3.bf16.msra.mxu0 %v5660_v4 }
 0xc07   : > { %7402 = vmatprep.subr.bf16.mxu0 %v7852_v0  ;;  %v5663_v0 = vld [vmem:[%s9668_s14 + $0x8] sm:$0x3] }
 0xc0a   : > { %7403 = vmatpush3.bf16.msra.mxu0 %v5673_v27 }
 0xc0d   : > { %7405 = vmatmul.mubr.msk.bf16.vlgmr.msra.gmra.mrb[204].mxu0 %vm2680_vm6, %v7808_v9 }
 0xce0   : > { %v5709_v54 = vpop.f32.mrb[204].mxu0 }
 0xce1   : > { %v5710_v10 = vadd.f32 %v5709_v54, %v5662_v51  ;;  %v7406_v28 = vpop.f32.mrb[205].mxu0 }
 0xce2   : > { %v5712_v46 = vpop.f32.mrb[206].mxu0 }
 0xce3   : > { %5717 = vst.msk [vmem:[%s509_s21] sm:$0xff] %vm5716_vm13, %v5710_v10  ;;  %v5713_v22 = vadd.f32 %v5712_v46, %v5663_v0  ;;  %v7407_v19 = vpop.f32.mrb[207].mxu0 }
 0xce5   : > { %5719 = vst.msk [vmem:[%s509_s21 + $0x8] sm:$0x3] %vm5718_vm14, %v5713_v22 }
 0xce6 PF: > { %s26_s18 = sadd.s32 1, %s7847_s18  }
 0xce7   : > { %p23_p3 = scmp.ge.s32.totalorder %s26_s18, 4  }
 0xce9   :  { %25 = sbr.rel (!%p23_p3) target bundleno = 1 (0x1), region = 131 }
 0xcf0   :  { %5741 = vsyncpa [#allocation3], 1 }
 0xcf1   :  { %5743 = vsyncpa [#allocation3 + $0x1], 1 }

</bundles_post_ra>
